<compile_context>
chip_gen: v5e
topology: v5e:2x2
jax: 0.10.0
libtpu: 0.0.40
codegen_flags: <defaults>
</compile_context>

<pallas_src>
import functools

import jax
import jax.numpy as jnp
from jax.experimental import pallas as pl
from jax.experimental.pallas import tpu as pltpu

D_MODEL = 128
NUM_LAYERS = 6
NUM_HEADS = 8            # heads do not change the math when seq_len == 1
LATENT_DIM = 16
NUM_CLASSES = 10
FFN_DIM = 4 * D_MODEL
LN_EPS = 1e-5

EMB_ROWS = 16            # num_classes + 1 = 11, padded to 16 rows
X_DIM = LATENT_DIM + EMB_ROWS   # packed input width: [z | onehot(y)] = 32
MAX_B_TILE = 512         # upper bound on the batch tile (multiple of 128)

_SQRT_2_OVER_PI = 0.7978845608028654
_INV_SQRT_2 = 0.7071067811865476


def _round_up(x, m):
    return ((x + m - 1) // m) * m


def _choose_b_tile(B):
    """Adaptive batch tile: tiny batches -> round_up(B, 8); big batches -> >=2 even steps."""
    if B <= 128:
        return _round_up(max(B, 1), 8)
    return min(MAX_B_TILE, _round_up((B + 1) // 2, 128))


@functools.lru_cache(maxsize=1)
def _bf16_vpu_available():
    """bf16 VPU/EUP exists on v6e / v7x; fall back to f32 elementwise on older chips."""
    try:
        kind = jax.devices()[0].device_kind.lower()
    except Exception:
        return False
    return not any(old in kind for old in ("v2", "v3", "v4", "v5"))


def _gelu_tanh(x):
    # tanh-approximate GELU: the transcendental goes to the EUP slot.
    # TODO(synk): torch's default is exact-erf GELU; tanh approx deviates ~1e-3 (documented choice).
    inner = _SQRT_2_OVER_PI * (x + 0.044715 * (x * x * x))
    return 0.5 * x * (1.0 + jnp.tanh(inner))


def _gelu_erf(x):
    # exact (erf) GELU — used only by the pure-JAX reference.
    return 0.5 * x * (1.0 + jax.lax.erf(x * _INV_SQRT_2))


def _layernorm(x, gamma, beta):
    mu = jnp.mean(x, axis=-1, keepdims=True)
    xc = x - mu
    var = jnp.mean(xc * xc, axis=-1, keepdims=True)
    inv = jax.lax.rsqrt(var + LN_EPS)
    return xc * inv * gamma + beta


def diffusion_kernel(
    x_ref, t_ref,
    wx_ref, b0_ref,
    w_t1_ref, b_t1_ref, w_t2_ref,
    wvo_ref, bvo_ref,
    g1_ref, be1_ref,
    w1_ref, b1_ref, w2_ref, b2_ref,
    g2_ref, be2_ref,
    w_out_ref, b_out_ref,
    out_ref,
    *, ffn_gelu_bf16,
):
    f32 = jnp.float32
    bf16 = jnp.bfloat16

    # Fused input_proj + label embedding:
    #   [z | onehot(y)] (Bt, 32) @ [[W_in]; [Emb]] (32, 128).
    # b0 = b_in + b_t2 folded at pack time.
    h = jnp.dot(x_ref[...], wx_ref[...], preferred_element_type=f32) + b0_ref[...]

    # time_embed: Linear(1, D) -> GELU -> Linear(D, D).
    # (Bt,1) * (1,D) is a broadcasted outer product on the VPU (stays f32).
    th = t_ref[...] * w_t1_ref[...] + b_t1_ref[...]
    th = _gelu_tanh(th)
    th = jnp.dot(th.astype(bf16), w_t2_ref[...], preferred_element_type=f32)
    h = h + th

    # Transformer encoder (post-norm).  seq_len == 1 -> softmax over the single key is
    # exactly 1, so self-attention == out_proj(v_proj(h)), pre-fused into h @ W_vo + b_vo.
    for l in range(NUM_LAYERS):
        attn = jnp.dot(h.astype(bf16), wvo_ref[l],
                       preferred_element_type=f32) + bvo_ref[l]
        h = _layernorm(h + attn, g1_ref[l], be1_ref[l])

        ff = jnp.dot(h.astype(bf16), w1_ref[l],
                     preferred_element_type=f32) + b1_ref[l]
        if ffn_gelu_bf16:
            ff = _gelu_tanh(ff.astype(bf16))          # bf16 VPU/EUP (v6e / v7x)
        else:
            ff = _gelu_tanh(ff).astype(bf16)          # f32 elementwise (v5e and older)
        ff = jnp.dot(ff, w2_ref[l],
                     preferred_element_type=f32) + b2_ref[l]
        h = _layernorm(h + ff, g2_ref[l], be2_ref[l])

    # to_eps: narrow (16-lane) f32 output, no padded writeback / wrapper slice pass.
    out_ref[...] = (
        jnp.dot(h.astype(bf16), w_out_ref[...], preferred_element_type=f32)
        + b_out_ref[...]
    )


def init_params(key):
    """Raw f32 parameters mirroring the PyTorch module (weights stored [in, out])."""
    D, L, F = D_MODEL, NUM_LAYERS, FFN_DIM
    keys = iter(jax.random.split(key, 20))

    def w(shape, scale=0.02):
        return jax.random.normal(next(keys), shape, jnp.float32) * scale

    return dict(
        w_in=w((LATENT_DIM, D)), b_in=w((1, D)),
        w_t1=w((1, D)), b_t1=w((1, D)),
        w_t2=w((D, D)), b_t2=w((1, D)),
        # attention: only V and out-proj affect the output when seq_len == 1
        wv=w((L, D, D)), bv=w((L, 1, D)),
        wo=w((L, D, D)), bo=w((L, 1, D)),
        # feed-forward
        w1=w((L, D, F)), b1=w((L, 1, F)),
        w2=w((L, F, D)), b2=w((L, 1, D)),
        # layer norms
        g1=jnp.ones((L, 1, D), jnp.float32), be1=jnp.zeros((L, 1, D), jnp.float32),
        g2=jnp.ones((L, 1, D), jnp.float32), be2=jnp.zeros((L, 1, D), jnp.float32),
        # output head
        w_out=w((D, LATENT_DIM)), b_out=w((1, LATENT_DIM)),
        # label embedding table (num_classes + 1 rows; last row = "null" class)
        label_emb=w((NUM_CLASSES + 1, D), scale=1.0),
    )


def pack_params(params):
    """One-time prep: fuse V/out-proj, stack [W_in; Emb], fold biases, cast matmul weights to bf16."""
    bf16 = jnp.bfloat16
    # seq_len==1 attention fusion
    wvo = jnp.einsum("lij,ljk->lik", params["wv"], params["wo"])
    bvo = jnp.einsum("lij,ljk->lik", params["bv"], params["wo"]) + params["bo"]
    # padded embedding table (rows 11..15 zero, never selected) stacked under W_in
    emb = jnp.zeros((EMB_ROWS, D_MODEL), jnp.float32)
    emb = emb.at[: NUM_CLASSES + 1].set(params["label_emb"])
    wx = jnp.concatenate([params["w_in"], emb], axis=0)          # (32, 128)
    # fold constant biases: b_in + b_t2 added once in the prologue
    b0 = params["b_in"] + params["b_t2"]

    return dict(
        wx=wx.astype(bf16), b0=b0,
        w_t1=params["w_t1"], b_t1=params["b_t1"],
        w_t2=params["w_t2"].astype(bf16),
        wvo=wvo.astype(bf16), bvo=bvo,
        g1=params["g1"], be1=params["be1"],
        w1=params["w1"].astype(bf16), b1=params["b1"],
        w2=params["w2"].astype(bf16), b2=params["b2"],
        g2=params["g2"], be2=params["be2"],
        w_out=params["w_out"].astype(bf16), b_out=params["b_out"],
    )


_WEIGHT_ORDER = (
    "wx", "b0",
    "w_t1", "b_t1", "w_t2",
    "wvo", "bvo",
    "g1", "be1",
    "w1", "b1", "w2", "b2",
    "g2", "be2",
    "w_out", "b_out",
)


def conditioned_diffusion_forward(packed, z, t, y=None):
    B = z.shape[0]
    if y is None:
        y_idx = jnp.full((B,), NUM_CLASSES, dtype=jnp.int32)
    else:
        y_idx = y.astype(jnp.int32)

    # pack [z | onehot16(y)] -> one lane-contiguous bf16 input (one-hot done outside
    # the kernel; the in-kernel label matmul is merged with input_proj)
    onehot = (y_idx[:, None] == jnp.arange(EMB_ROWS, dtype=jnp.int32)[None, :]
              ).astype(jnp.float32)
    x = jnp.concatenate([z.astype(jnp.float32), onehot], axis=1)   # (B, 32)

    b_tile = _choose_b_tile(B)
    b_pad = _round_up(B, b_tile)
    pad = b_pad - B
    x_p = jnp.pad(x, ((0, pad), (0, 0))).astype(jnp.bfloat16)
    t_p = jnp.pad(t.astype(jnp.float32).reshape(B, 1), ((0, pad), (0, 0)))

    weights = [packed[k] for k in _WEIGHT_ORDER]

    def const_map(ndim):
        return lambda i: (0,) * ndim

    in_specs = [
        pl.BlockSpec((b_tile, X_DIM), lambda i: (i, 0)),   # packed [z | onehot]
        pl.BlockSpec((b_tile, 1), lambda i: (i, 0)),       # t
    ] + [
        # full-array blocks with constant index maps -> weights stay resident in VMEM
        pl.BlockSpec(w.shape, const_map(w.ndim)) for w in weights
    ]

    kernel = functools.partial(diffusion_kernel, ffn_gelu_bf16=_bf16_vpu_available())

    out = pl.pallas_call(
        kernel,
        out_shape=jax.ShapeDtypeStruct((b_pad, LATENT_DIM), jnp.float32),
        grid_spec=pltpu.PrefetchScalarGridSpec(
            num_scalar_prefetch=0,
            grid=(b_pad // b_tile,),
            in_specs=in_specs,
            out_specs=pl.BlockSpec((b_tile, LATENT_DIM), lambda i: (i, 0)),
        ),
        compiler_params=pltpu.CompilerParams(
            dimension_semantics=("parallel",),   # v7x: shard batch tiles across 2 TCs
        ),
    )(x_p, t_p, *weights)

    return out if pad == 0 else out[:B]


def reference_forward(params, z, t, y=None):
    """Pure-JAX f32 reference with un-fused weights and exact-erf GELU (mirrors PyTorch)."""
    B = z.shape[0]
    h = z @ params["w_in"] + params["b_in"]
    th = t.reshape(B, 1) @ params["w_t1"] + params["b_t1"]
    th = _gelu_erf(th)
    th = th @ params["w_t2"] + params["b_t2"]
    h = h + th
    if y is None:
        y_idx = jnp.full((B,), NUM_CLASSES, jnp.int32)
    else:
        y_idx = y.astype(jnp.int32)
    h = h + params["label_emb"][y_idx]
    for l in range(NUM_LAYERS):
        v = h @ params["wv"][l] + params["bv"][l]
        attn = v @ params["wo"][l] + params["bo"][l]
        h = _layernorm(h + attn, params["g1"][l], params["be1"][l])
        ff = _gelu_erf(h @ params["w1"][l] + params["b1"][l])
        ff = ff @ params["w2"][l] + params["b2"][l]
        h = _layernorm(h + ff, params["g2"][l], params["be2"][l])
    return h @ params["w_out"] + params["b_out"]


if __name__ == "__main__":
    B = 8
    key = jax.random.PRNGKey(0)
    kp, kz, kt, ky = jax.random.split(key, 4)

    params = init_params(kp)
    packed = pack_params(params)

    z = jax.random.normal(kz, (B, LATENT_DIM), jnp.float32)
    t = jax.random.uniform(kt, (B, 1), jnp.float32)
    y = jax.random.randint(ky, (B,), 0, NUM_CLASSES)

    # conditioned path
    out = conditioned_diffusion_forward(packed, z, t, y)
    jax.block_until_ready(out)
    assert out.shape == (B, LATENT_DIM) and out.dtype == jnp.float32
    assert bool(jnp.all(jnp.isfinite(out)))

    # unconditional path (y=None -> null-class embedding index == num_classes)
    out_uncond = conditioned_diffusion_forward(packed, z, t, None)
    jax.block_until_ready(out_uncond)
    assert out_uncond.shape == (B, LATENT_DIM)

    # sanity vs. pure-JAX f32 reference (loose tolerance: bf16 weights + tanh GELU)
    ref = reference_forward(params, z, t, y)
    err = float(jnp.max(jnp.abs(out - ref)))
    assert err < 0.2, f"kernel vs reference max abs err {err}"

    print("KERNEL_OK")
</pallas_src>

<mosaic_0001>
module attributes {stable_mosaic.version = 11 : i64} {
  func.func @diffusion_kernel(%arg0: i32, %arg1: memref<8x32xbf16, #tpu.memory_space<vmem>>, %arg2: memref<8x1xf32, #tpu.memory_space<vmem>>, %arg3: memref<32x128xbf16, #tpu.memory_space<vmem>>, %arg4: memref<1x128xf32, #tpu.memory_space<vmem>>, %arg5: memref<1x128xf32, #tpu.memory_space<vmem>>, %arg6: memref<1x128xf32, #tpu.memory_space<vmem>>, %arg7: memref<128x128xbf16, #tpu.memory_space<vmem>>, %arg8: memref<6x128x128xbf16, #tpu.memory_space<vmem>>, %arg9: memref<6x1x128xf32, #tpu.memory_space<vmem>>, %arg10: memref<6x1x128xf32, #tpu.memory_space<vmem>>, %arg11: memref<6x1x128xf32, #tpu.memory_space<vmem>>, %arg12: memref<6x128x512xbf16, #tpu.memory_space<vmem>>, %arg13: memref<6x1x512xf32, #tpu.memory_space<vmem>>, %arg14: memref<6x512x128xbf16, #tpu.memory_space<vmem>>, %arg15: memref<6x1x128xf32, #tpu.memory_space<vmem>>, %arg16: memref<6x1x128xf32, #tpu.memory_space<vmem>>, %arg17: memref<6x1x128xf32, #tpu.memory_space<vmem>>, %arg18: memref<128x16xbf16, #tpu.memory_space<vmem>>, %arg19: memref<1x16xf32, #tpu.memory_space<vmem>>, %arg20: memref<8x16xf32, #tpu.memory_space<vmem>>) attributes {dimension_semantics = [#tpu.dimension_semantics<parallel>], iteration_bounds = array<i64: 1>, scalar_prefetch = 0 : i64, scratch_operands = 0 : i64, tpu.core_type = #tpu.core_type<tc>, window_params = [{transform_indices = @transform_0, window_bounds = array<i64: 8, 32>}, {transform_indices = @transform_1, window_bounds = array<i64: 8, 1>}, {pipeline_mode = #tpu.pipeline_mode<synchronous>, transform_indices = @transform_2, window_bounds = array<i64: 32, 128>}, {pipeline_mode = #tpu.pipeline_mode<synchronous>, transform_indices = @transform_3, window_bounds = array<i64: 1, 128>}, {pipeline_mode = #tpu.pipeline_mode<synchronous>, transform_indices = @transform_4, window_bounds = array<i64: 1, 128>}, {pipeline_mode = #tpu.pipeline_mode<synchronous>, transform_indices = @transform_5, window_bounds = array<i64: 1, 128>}, {pipeline_mode = #tpu.pipeline_mode<synchronous>, transform_indices = @transform_6, window_bounds = array<i64: 128, 128>}, {pipeline_mode = #tpu.pipeline_mode<synchronous>, transform_indices = @transform_7, window_bounds = array<i64: 6, 128, 128>}, {pipeline_mode = #tpu.pipeline_mode<synchronous>, transform_indices = @transform_8, window_bounds = array<i64: 6, 1, 128>}, {pipeline_mode = #tpu.pipeline_mode<synchronous>, transform_indices = @transform_9, window_bounds = array<i64: 6, 1, 128>}, {pipeline_mode = #tpu.pipeline_mode<synchronous>, transform_indices = @transform_10, window_bounds = array<i64: 6, 1, 128>}, {pipeline_mode = #tpu.pipeline_mode<synchronous>, transform_indices = @transform_11, window_bounds = array<i64: 6, 128, 512>}, {pipeline_mode = #tpu.pipeline_mode<synchronous>, transform_indices = @transform_12, window_bounds = array<i64: 6, 1, 512>}, {pipeline_mode = #tpu.pipeline_mode<synchronous>, transform_indices = @transform_13, window_bounds = array<i64: 6, 512, 128>}, {pipeline_mode = #tpu.pipeline_mode<synchronous>, transform_indices = @transform_14, window_bounds = array<i64: 6, 1, 128>}, {pipeline_mode = #tpu.pipeline_mode<synchronous>, transform_indices = @transform_15, window_bounds = array<i64: 6, 1, 128>}, {pipeline_mode = #tpu.pipeline_mode<synchronous>, transform_indices = @transform_16, window_bounds = array<i64: 6, 1, 128>}, {pipeline_mode = #tpu.pipeline_mode<synchronous>, transform_indices = @transform_17, window_bounds = array<i64: 128, 16>}, {pipeline_mode = #tpu.pipeline_mode<synchronous>, transform_indices = @transform_18, window_bounds = array<i64: 1, 16>}, {transform_indices = @transform_19, window_bounds = array<i64: 8, 16>}]} {
    %c0 = arith.constant 0 : index
    %c0_0 = arith.constant 0 : index
    %0 = vector.load %arg1[%c0, %c0_0] : memref<8x32xbf16, #tpu.memory_space<vmem>>, vector<8x32xbf16>
    %c0_1 = arith.constant 0 : index
    %c0_2 = arith.constant 0 : index
    %1 = vector.load %arg3[%c0_1, %c0_2] : memref<32x128xbf16, #tpu.memory_space<vmem>>, vector<32x128xbf16>
    %cst = arith.constant dense<0.000000e+00> : vector<8x128xf32>
    %2 = tpu.matmul %0, %1, %cst {dimension_numbers = #tpu.dot_dimension_numbers<[1], [0], [0], [1], [0, 0, 1, 1], [], []>} : vector<8x32xbf16>, vector<32x128xbf16>, vector<8x128xf32> -> vector<8x128xf32>
    %c0_3 = arith.constant 0 : index
    %c0_4 = arith.constant 0 : index
    %3 = vector.load %arg4[%c0_3, %c0_4] : memref<1x128xf32, #tpu.memory_space<vmem>>, vector<1x128xf32>
    %4 = vector.broadcast %3 : vector<1x128xf32> to vector<8x128xf32>
    %5 = arith.addf %2, %4 : vector<8x128xf32>
    %c0_5 = arith.constant 0 : index
    %c0_6 = arith.constant 0 : index
    %6 = vector.load %arg2[%c0_5, %c0_6] : memref<8x1xf32, #tpu.memory_space<vmem>>, vector<8x1xf32>
    %c0_7 = arith.constant 0 : index
    %c0_8 = arith.constant 0 : index
    %7 = vector.load %arg5[%c0_7, %c0_8] : memref<1x128xf32, #tpu.memory_space<vmem>>, vector<1x128xf32>
    %8 = vector.broadcast %6 : vector<8x1xf32> to vector<8x128xf32>
    %9 = vector.broadcast %7 : vector<1x128xf32> to vector<8x128xf32>
    %10 = arith.mulf %8, %9 : vector<8x128xf32>
    %c0_9 = arith.constant 0 : index
    %c0_10 = arith.constant 0 : index
    %11 = vector.load %arg6[%c0_9, %c0_10] : memref<1x128xf32, #tpu.memory_space<vmem>>, vector<1x128xf32>
    %12 = vector.broadcast %11 : vector<1x128xf32> to vector<8x128xf32>
    %13 = arith.addf %10, %12 : vector<8x128xf32>
    %14 = arith.mulf %13, %13 : vector<8x128xf32>
    %15 = arith.mulf %14, %13 : vector<8x128xf32>
    %cst_11 = arith.constant 4.471500e-02 : f32
    %16 = vector.broadcast %cst_11 : f32 to vector<8x128xf32>
    %17 = arith.mulf %16, %15 : vector<8x128xf32>
    %18 = arith.addf %13, %17 : vector<8x128xf32>
    %cst_12 = arith.constant 0.797884583 : f32
    %19 = vector.broadcast %cst_12 : f32 to vector<8x128xf32>
    %20 = arith.mulf %19, %18 : vector<8x128xf32>
    %cst_13 = arith.constant 5.000000e-01 : f32
    %21 = vector.broadcast %cst_13 : f32 to vector<8x128xf32>
    %22 = arith.mulf %21, %13 : vector<8x128xf32>
    %23 = math.tanh %20 : vector<8x128xf32>
    %cst_14 = arith.constant 1.000000e+00 : f32
    %24 = vector.broadcast %cst_14 : f32 to vector<8x128xf32>
    %25 = arith.addf %24, %23 : vector<8x128xf32>
    %26 = arith.mulf %22, %25 : vector<8x128xf32>
    %27 = arith.truncf %26 : vector<8x128xf32> to vector<8x128xbf16>
    %c0_15 = arith.constant 0 : index
    %c0_16 = arith.constant 0 : index
    %28 = vector.load %arg7[%c0_15, %c0_16] : memref<128x128xbf16, #tpu.memory_space<vmem>>, vector<128x128xbf16>
    %cst_17 = arith.constant dense<0.000000e+00> : vector<8x128xf32>
    %29 = tpu.matmul %27, %28, %cst_17 {dimension_numbers = #tpu.dot_dimension_numbers<[1], [0], [0], [1], [0, 0, 1, 1], [], []>} : vector<8x128xbf16>, vector<128x128xbf16>, vector<8x128xf32> -> vector<8x128xf32>
    %30 = arith.addf %5, %29 : vector<8x128xf32>
    %31 = arith.truncf %30 : vector<8x128xf32> to vector<8x128xbf16>
    %c0_18 = arith.constant 0 : index
    %c0_19 = arith.constant 0 : index
    %c0_20 = arith.constant 0 : index
    %32 = vector.load %arg8[%c0_18, %c0_19, %c0_20] : memref<6x128x128xbf16, #tpu.memory_space<vmem>>, vector<1x128x128xbf16>
    %33 = vector.shape_cast %32 : vector<1x128x128xbf16> to vector<128x128xbf16>
    %cst_21 = arith.constant dense<0.000000e+00> : vector<8x128xf32>
    %34 = tpu.matmul %31, %33, %cst_21 {dimension_numbers = #tpu.dot_dimension_numbers<[1], [0], [0], [1], [0, 0, 1, 1], [], []>} : vector<8x128xbf16>, vector<128x128xbf16>, vector<8x128xf32> -> vector<8x128xf32>
    %c0_22 = arith.constant 0 : index
    %c0_23 = arith.constant 0 : index
    %c0_24 = arith.constant 0 : index
    %35 = vector.load %arg9[%c0_22, %c0_23, %c0_24] : memref<6x1x128xf32, #tpu.memory_space<vmem>>, vector<1x1x128xf32>
    %36 = vector.shape_cast %35 : vector<1x1x128xf32> to vector<1x128xf32>
    %37 = vector.broadcast %36 : vector<1x128xf32> to vector<8x128xf32>
    %38 = arith.addf %34, %37 : vector<8x128xf32>
    %39 = arith.addf %30, %38 : vector<8x128xf32>
    %c0_25 = arith.constant 0 : index
    %c0_26 = arith.constant 0 : index
    %c0_27 = arith.constant 0 : index
    %40 = vector.load %arg10[%c0_25, %c0_26, %c0_27] : memref<6x1x128xf32, #tpu.memory_space<vmem>>, vector<1x1x128xf32>
    %41 = vector.shape_cast %40 : vector<1x1x128xf32> to vector<1x128xf32>
    %c0_28 = arith.constant 0 : index
    %c0_29 = arith.constant 0 : index
    %c0_30 = arith.constant 0 : index
    %42 = vector.load %arg11[%c0_28, %c0_29, %c0_30] : memref<6x1x128xf32, #tpu.memory_space<vmem>>, vector<1x1x128xf32>
    %43 = vector.shape_cast %42 : vector<1x1x128xf32> to vector<1x128xf32>
    %cst_31 = arith.constant dense<0.000000e+00> : vector<8xf32>
    %44 = vector.multi_reduction <add>, %39, %cst_31 [1] : vector<8x128xf32> to vector<8xf32>
    %45 = vector.shape_cast %44 : vector<8xf32> to vector<8x1xf32>
    %cst_32 = arith.constant 1.280000e+02 : f32
    %46 = vector.broadcast %cst_32 : f32 to vector<8x1xf32>
    %47 = arith.divf %45, %46 : vector<8x1xf32>
    %48 = vector.broadcast %47 : vector<8x1xf32> to vector<8x128xf32>
    %49 = arith.subf %39, %48 : vector<8x128xf32>
    %50 = arith.mulf %49, %49 : vector<8x128xf32>
    %cst_33 = arith.constant dense<0.000000e+00> : vector<8xf32>
    %51 = vector.multi_reduction <add>, %50, %cst_33 [1] : vector<8x128xf32> to vector<8xf32>
    %52 = vector.shape_cast %51 : vector<8xf32> to vector<8x1xf32>
    %cst_34 = arith.constant 1.280000e+02 : f32
    %53 = vector.broadcast %cst_34 : f32 to vector<8x1xf32>
    %54 = arith.divf %52, %53 : vector<8x1xf32>
    %cst_35 = arith.constant 9.99999974E-6 : f32
    %55 = vector.broadcast %cst_35 : f32 to vector<8x1xf32>
    %56 = arith.addf %54, %55 : vector<8x1xf32>
    %57 = math.rsqrt %56 : vector<8x1xf32>
    %58 = vector.broadcast %57 : vector<8x1xf32> to vector<8x128xf32>
    %59 = arith.mulf %49, %58 : vector<8x128xf32>
    %60 = vector.broadcast %41 : vector<1x128xf32> to vector<8x128xf32>
    %61 = arith.mulf %59, %60 : vector<8x128xf32>
    %62 = vector.broadcast %43 : vector<1x128xf32> to vector<8x128xf32>
    %63 = arith.addf %61, %62 : vector<8x128xf32>
    %64 = arith.truncf %63 : vector<8x128xf32> to vector<8x128xbf16>
    %c0_36 = arith.constant 0 : index
    %c0_37 = arith.constant 0 : index
    %c0_38 = arith.constant 0 : index
    %65 = vector.load %arg12[%c0_36, %c0_37, %c0_38] : memref<6x128x512xbf16, #tpu.memory_space<vmem>>, vector<1x128x512xbf16>
    %66 = vector.shape_cast %65 : vector<1x128x512xbf16> to vector<128x512xbf16>
    %cst_39 = arith.constant dense<0.000000e+00> : vector<8x512xf32>
    %67 = tpu.matmul %64, %66, %cst_39 {dimension_numbers = #tpu.dot_dimension_numbers<[1], [0], [0], [1], [0, 0, 1, 1], [], []>} : vector<8x128xbf16>, vector<128x512xbf16>, vector<8x512xf32> -> vector<8x512xf32>
    %c0_40 = arith.constant 0 : index
    %c0_41 = arith.constant 0 : index
    %c0_42 = arith.constant 0 : index
    %68 = vector.load %arg13[%c0_40, %c0_41, %c0_42] : memref<6x1x512xf32, #tpu.memory_space<vmem>>, vector<1x1x512xf32>
    %69 = vector.shape_cast %68 : vector<1x1x512xf32> to vector<1x512xf32>
    %70 = vector.broadcast %69 : vector<1x512xf32> to vector<8x512xf32>
    %71 = arith.addf %67, %70 : vector<8x512xf32>
    %72 = arith.truncf %71 : vector<8x512xf32> to vector<8x512xbf16>
    %73 = arith.mulf %72, %72 : vector<8x512xbf16>
    %74 = arith.mulf %73, %72 : vector<8x512xbf16>
    %cst_43 = arith.constant 4.467770e-02 : bf16
    %75 = vector.broadcast %cst_43 : bf16 to vector<8x512xbf16>
    %76 = arith.mulf %75, %74 : vector<8x512xbf16>
    %77 = arith.addf %72, %76 : vector<8x512xbf16>
    %cst_44 = arith.constant 7.968750e-01 : bf16
    %78 = vector.broadcast %cst_44 : bf16 to vector<8x512xbf16>
    %79 = arith.mulf %78, %77 : vector<8x512xbf16>
    %cst_45 = arith.constant 5.000000e-01 : bf16
    %80 = vector.broadcast %cst_45 : bf16 to vector<8x512xbf16>
    %81 = arith.mulf %80, %72 : vector<8x512xbf16>
    %82 = math.tanh %79 : vector<8x512xbf16>
    %cst_46 = arith.constant 1.000000e+00 : bf16
    %83 = vector.broadcast %cst_46 : bf16 to vector<8x512xbf16>
    %84 = arith.addf %83, %82 : vector<8x512xbf16>
    %85 = arith.mulf %81, %84 : vector<8x512xbf16>
    %c0_47 = arith.constant 0 : index
    %c0_48 = arith.constant 0 : index
    %c0_49 = arith.constant 0 : index
    %86 = vector.load %arg14[%c0_47, %c0_48, %c0_49] : memref<6x512x128xbf16, #tpu.memory_space<vmem>>, vector<1x512x128xbf16>
    %87 = vector.shape_cast %86 : vector<1x512x128xbf16> to vector<512x128xbf16>
    %cst_50 = arith.constant dense<0.000000e+00> : vector<8x128xf32>
    %88 = tpu.matmul %85, %87, %cst_50 {dimension_numbers = #tpu.dot_dimension_numbers<[1], [0], [0], [1], [0, 0, 1, 1], [], []>} : vector<8x512xbf16>, vector<512x128xbf16>, vector<8x128xf32> -> vector<8x128xf32>
    %c0_51 = arith.constant 0 : index
    %c0_52 = arith.constant 0 : index
    %c0_53 = arith.constant 0 : index
    %89 = vector.load %arg15[%c0_51, %c0_52, %c0_53] : memref<6x1x128xf32, #tpu.memory_space<vmem>>, vector<1x1x128xf32>
    %90 = vector.shape_cast %89 : vector<1x1x128xf32> to vector<1x128xf32>
    %91 = vector.broadcast %90 : vector<1x128xf32> to vector<8x128xf32>
    %92 = arith.addf %88, %91 : vector<8x128xf32>
    %93 = arith.addf %63, %92 : vector<8x128xf32>
    %c0_54 = arith.constant 0 : index
    %c0_55 = arith.constant 0 : index
    %c0_56 = arith.constant 0 : index
    %94 = vector.load %arg16[%c0_54, %c0_55, %c0_56] : memref<6x1x128xf32, #tpu.memory_space<vmem>>, vector<1x1x128xf32>
    %95 = vector.shape_cast %94 : vector<1x1x128xf32> to vector<1x128xf32>
    %c0_57 = arith.constant 0 : index
    %c0_58 = arith.constant 0 : index
    %c0_59 = arith.constant 0 : index
    %96 = vector.load %arg17[%c0_57, %c0_58, %c0_59] : memref<6x1x128xf32, #tpu.memory_space<vmem>>, vector<1x1x128xf32>
    %97 = vector.shape_cast %96 : vector<1x1x128xf32> to vector<1x128xf32>
    %cst_60 = arith.constant dense<0.000000e+00> : vector<8xf32>
    %98 = vector.multi_reduction <add>, %93, %cst_60 [1] : vector<8x128xf32> to vector<8xf32>
    %99 = vector.shape_cast %98 : vector<8xf32> to vector<8x1xf32>
    %cst_61 = arith.constant 1.280000e+02 : f32
    %100 = vector.broadcast %cst_61 : f32 to vector<8x1xf32>
    %101 = arith.divf %99, %100 : vector<8x1xf32>
    %102 = vector.broadcast %101 : vector<8x1xf32> to vector<8x128xf32>
    %103 = arith.subf %93, %102 : vector<8x128xf32>
    %104 = arith.mulf %103, %103 : vector<8x128xf32>
    %cst_62 = arith.constant dense<0.000000e+00> : vector<8xf32>
    %105 = vector.multi_reduction <add>, %104, %cst_62 [1] : vector<8x128xf32> to vector<8xf32>
    %106 = vector.shape_cast %105 : vector<8xf32> to vector<8x1xf32>
    %cst_63 = arith.constant 1.280000e+02 : f32
    %107 = vector.broadcast %cst_63 : f32 to vector<8x1xf32>
    %108 = arith.divf %106, %107 : vector<8x1xf32>
    %cst_64 = arith.constant 9.99999974E-6 : f32
    %109 = vector.broadcast %cst_64 : f32 to vector<8x1xf32>
    %110 = arith.addf %108, %109 : vector<8x1xf32>
    %111 = math.rsqrt %110 : vector<8x1xf32>
    %112 = vector.broadcast %111 : vector<8x1xf32> to vector<8x128xf32>
    %113 = arith.mulf %103, %112 : vector<8x128xf32>
    %114 = vector.broadcast %95 : vector<1x128xf32> to vector<8x128xf32>
    %115 = arith.mulf %113, %114 : vector<8x128xf32>
    %116 = vector.broadcast %97 : vector<1x128xf32> to vector<8x128xf32>
    %117 = arith.addf %115, %116 : vector<8x128xf32>
    %118 = arith.truncf %117 : vector<8x128xf32> to vector<8x128xbf16>
    %c1 = arith.constant 1 : index
    %c0_65 = arith.constant 0 : index
    %c0_66 = arith.constant 0 : index
    %119 = vector.load %arg8[%c1, %c0_65, %c0_66] : memref<6x128x128xbf16, #tpu.memory_space<vmem>>, vector<1x128x128xbf16>
    %120 = vector.shape_cast %119 : vector<1x128x128xbf16> to vector<128x128xbf16>
    %cst_67 = arith.constant dense<0.000000e+00> : vector<8x128xf32>
    %121 = tpu.matmul %118, %120, %cst_67 {dimension_numbers = #tpu.dot_dimension_numbers<[1], [0], [0], [1], [0, 0, 1, 1], [], []>} : vector<8x128xbf16>, vector<128x128xbf16>, vector<8x128xf32> -> vector<8x128xf32>
    %c1_68 = arith.constant 1 : index
    %c0_69 = arith.constant 0 : index
    %c0_70 = arith.constant 0 : index
    %122 = vector.load %arg9[%c1_68, %c0_69, %c0_70] : memref<6x1x128xf32, #tpu.memory_space<vmem>>, vector<1x1x128xf32>
    %123 = vector.shape_cast %122 : vector<1x1x128xf32> to vector<1x128xf32>
    %124 = vector.broadcast %123 : vector<1x128xf32> to vector<8x128xf32>
    %125 = arith.addf %121, %124 : vector<8x128xf32>
    %126 = arith.addf %117, %125 : vector<8x128xf32>
    %c1_71 = arith.constant 1 : index
    %c0_72 = arith.constant 0 : index
    %c0_73 = arith.constant 0 : index
    %127 = vector.load %arg10[%c1_71, %c0_72, %c0_73] : memref<6x1x128xf32, #tpu.memory_space<vmem>>, vector<1x1x128xf32>
    %128 = vector.shape_cast %127 : vector<1x1x128xf32> to vector<1x128xf32>
    %c1_74 = arith.constant 1 : index
    %c0_75 = arith.constant 0 : index
    %c0_76 = arith.constant 0 : index
    %129 = vector.load %arg11[%c1_74, %c0_75, %c0_76] : memref<6x1x128xf32, #tpu.memory_space<vmem>>, vector<1x1x128xf32>
    %130 = vector.shape_cast %129 : vector<1x1x128xf32> to vector<1x128xf32>
    %cst_77 = arith.constant dense<0.000000e+00> : vector<8xf32>
    %131 = vector.multi_reduction <add>, %126, %cst_77 [1] : vector<8x128xf32> to vector<8xf32>
    %132 = vector.shape_cast %131 : vector<8xf32> to vector<8x1xf32>
    %cst_78 = arith.constant 1.280000e+02 : f32
    %133 = vector.broadcast %cst_78 : f32 to vector<8x1xf32>
    %134 = arith.divf %132, %133 : vector<8x1xf32>
    %135 = vector.broadcast %134 : vector<8x1xf32> to vector<8x128xf32>
    %136 = arith.subf %126, %135 : vector<8x128xf32>
    %137 = arith.mulf %136, %136 : vector<8x128xf32>
    %cst_79 = arith.constant dense<0.000000e+00> : vector<8xf32>
    %138 = vector.multi_reduction <add>, %137, %cst_79 [1] : vector<8x128xf32> to vector<8xf32>
    %139 = vector.shape_cast %138 : vector<8xf32> to vector<8x1xf32>
    %cst_80 = arith.constant 1.280000e+02 : f32
    %140 = vector.broadcast %cst_80 : f32 to vector<8x1xf32>
    %141 = arith.divf %139, %140 : vector<8x1xf32>
    %cst_81 = arith.constant 9.99999974E-6 : f32
    %142 = vector.broadcast %cst_81 : f32 to vector<8x1xf32>
    %143 = arith.addf %141, %142 : vector<8x1xf32>
    %144 = math.rsqrt %143 : vector<8x1xf32>
    %145 = vector.broadcast %144 : vector<8x1xf32> to vector<8x128xf32>
    %146 = arith.mulf %136, %145 : vector<8x128xf32>
    %147 = vector.broadcast %128 : vector<1x128xf32> to vector<8x128xf32>
    %148 = arith.mulf %146, %147 : vector<8x128xf32>
    %149 = vector.broadcast %130 : vector<1x128xf32> to vector<8x128xf32>
    %150 = arith.addf %148, %149 : vector<8x128xf32>
    %151 = arith.truncf %150 : vector<8x128xf32> to vector<8x128xbf16>
    %c1_82 = arith.constant 1 : index
    %c0_83 = arith.constant 0 : index
    %c0_84 = arith.constant 0 : index
    %152 = vector.load %arg12[%c1_82, %c0_83, %c0_84] : memref<6x128x512xbf16, #tpu.memory_space<vmem>>, vector<1x128x512xbf16>
    %153 = vector.shape_cast %152 : vector<1x128x512xbf16> to vector<128x512xbf16>
    %cst_85 = arith.constant dense<0.000000e+00> : vector<8x512xf32>
    %154 = tpu.matmul %151, %153, %cst_85 {dimension_numbers = #tpu.dot_dimension_numbers<[1], [0], [0], [1], [0, 0, 1, 1], [], []>} : vector<8x128xbf16>, vector<128x512xbf16>, vector<8x512xf32> -> vector<8x512xf32>
    %c1_86 = arith.constant 1 : index
    %c0_87 = arith.constant 0 : index
    %c0_88 = arith.constant 0 : index
    %155 = vector.load %arg13[%c1_86, %c0_87, %c0_88] : memref<6x1x512xf32, #tpu.memory_space<vmem>>, vector<1x1x512xf32>
    %156 = vector.shape_cast %155 : vector<1x1x512xf32> to vector<1x512xf32>
    %157 = vector.broadcast %156 : vector<1x512xf32> to vector<8x512xf32>
    %158 = arith.addf %154, %157 : vector<8x512xf32>
    %159 = arith.truncf %158 : vector<8x512xf32> to vector<8x512xbf16>
    %160 = arith.mulf %159, %159 : vector<8x512xbf16>
    %161 = arith.mulf %160, %159 : vector<8x512xbf16>
    %cst_89 = arith.constant 4.467770e-02 : bf16
    %162 = vector.broadcast %cst_89 : bf16 to vector<8x512xbf16>
    %163 = arith.mulf %162, %161 : vector<8x512xbf16>
    %164 = arith.addf %159, %163 : vector<8x512xbf16>
    %cst_90 = arith.constant 7.968750e-01 : bf16
    %165 = vector.broadcast %cst_90 : bf16 to vector<8x512xbf16>
    %166 = arith.mulf %165, %164 : vector<8x512xbf16>
    %cst_91 = arith.constant 5.000000e-01 : bf16
    %167 = vector.broadcast %cst_91 : bf16 to vector<8x512xbf16>
    %168 = arith.mulf %167, %159 : vector<8x512xbf16>
    %169 = math.tanh %166 : vector<8x512xbf16>
    %cst_92 = arith.constant 1.000000e+00 : bf16
    %170 = vector.broadcast %cst_92 : bf16 to vector<8x512xbf16>
    %171 = arith.addf %170, %169 : vector<8x512xbf16>
    %172 = arith.mulf %168, %171 : vector<8x512xbf16>
    %c1_93 = arith.constant 1 : index
    %c0_94 = arith.constant 0 : index
    %c0_95 = arith.constant 0 : index
    %173 = vector.load %arg14[%c1_93, %c0_94, %c0_95] : memref<6x512x128xbf16, #tpu.memory_space<vmem>>, vector<1x512x128xbf16>
    %174 = vector.shape_cast %173 : vector<1x512x128xbf16> to vector<512x128xbf16>
    %cst_96 = arith.constant dense<0.000000e+00> : vector<8x128xf32>
    %175 = tpu.matmul %172, %174, %cst_96 {dimension_numbers = #tpu.dot_dimension_numbers<[1], [0], [0], [1], [0, 0, 1, 1], [], []>} : vector<8x512xbf16>, vector<512x128xbf16>, vector<8x128xf32> -> vector<8x128xf32>
    %c1_97 = arith.constant 1 : index
    %c0_98 = arith.constant 0 : index
    %c0_99 = arith.constant 0 : index
    %176 = vector.load %arg15[%c1_97, %c0_98, %c0_99] : memref<6x1x128xf32, #tpu.memory_space<vmem>>, vector<1x1x128xf32>
    %177 = vector.shape_cast %176 : vector<1x1x128xf32> to vector<1x128xf32>
    %178 = vector.broadcast %177 : vector<1x128xf32> to vector<8x128xf32>
    %179 = arith.addf %175, %178 : vector<8x128xf32>
    %180 = arith.addf %150, %179 : vector<8x128xf32>
    %c1_100 = arith.constant 1 : index
    %c0_101 = arith.constant 0 : index
    %c0_102 = arith.constant 0 : index
    %181 = vector.load %arg16[%c1_100, %c0_101, %c0_102] : memref<6x1x128xf32, #tpu.memory_space<vmem>>, vector<1x1x128xf32>
    %182 = vector.shape_cast %181 : vector<1x1x128xf32> to vector<1x128xf32>
    %c1_103 = arith.constant 1 : index
    %c0_104 = arith.constant 0 : index
    %c0_105 = arith.constant 0 : index
    %183 = vector.load %arg17[%c1_103, %c0_104, %c0_105] : memref<6x1x128xf32, #tpu.memory_space<vmem>>, vector<1x1x128xf32>
    %184 = vector.shape_cast %183 : vector<1x1x128xf32> to vector<1x128xf32>
    %cst_106 = arith.constant dense<0.000000e+00> : vector<8xf32>
    %185 = vector.multi_reduction <add>, %180, %cst_106 [1] : vector<8x128xf32> to vector<8xf32>
    %186 = vector.shape_cast %185 : vector<8xf32> to vector<8x1xf32>
    %cst_107 = arith.constant 1.280000e+02 : f32
    %187 = vector.broadcast %cst_107 : f32 to vector<8x1xf32>
    %188 = arith.divf %186, %187 : vector<8x1xf32>
    %189 = vector.broadcast %188 : vector<8x1xf32> to vector<8x128xf32>
    %190 = arith.subf %180, %189 : vector<8x128xf32>
    %191 = arith.mulf %190, %190 : vector<8x128xf32>
    %cst_108 = arith.constant dense<0.000000e+00> : vector<8xf32>
    %192 = vector.multi_reduction <add>, %191, %cst_108 [1] : vector<8x128xf32> to vector<8xf32>
    %193 = vector.shape_cast %192 : vector<8xf32> to vector<8x1xf32>
    %cst_109 = arith.constant 1.280000e+02 : f32
    %194 = vector.broadcast %cst_109 : f32 to vector<8x1xf32>
    %195 = arith.divf %193, %194 : vector<8x1xf32>
    %cst_110 = arith.constant 9.99999974E-6 : f32
    %196 = vector.broadcast %cst_110 : f32 to vector<8x1xf32>
    %197 = arith.addf %195, %196 : vector<8x1xf32>
    %198 = math.rsqrt %197 : vector<8x1xf32>
    %199 = vector.broadcast %198 : vector<8x1xf32> to vector<8x128xf32>
    %200 = arith.mulf %190, %199 : vector<8x128xf32>
    %201 = vector.broadcast %182 : vector<1x128xf32> to vector<8x128xf32>
    %202 = arith.mulf %200, %201 : vector<8x128xf32>
    %203 = vector.broadcast %184 : vector<1x128xf32> to vector<8x128xf32>
    %204 = arith.addf %202, %203 : vector<8x128xf32>
    %205 = arith.truncf %204 : vector<8x128xf32> to vector<8x128xbf16>
    %c2 = arith.constant 2 : index
    %c0_111 = arith.constant 0 : index
    %c0_112 = arith.constant 0 : index
    %206 = vector.load %arg8[%c2, %c0_111, %c0_112] : memref<6x128x128xbf16, #tpu.memory_space<vmem>>, vector<1x128x128xbf16>
    %207 = vector.shape_cast %206 : vector<1x128x128xbf16> to vector<128x128xbf16>
    %cst_113 = arith.constant dense<0.000000e+00> : vector<8x128xf32>
    %208 = tpu.matmul %205, %207, %cst_113 {dimension_numbers = #tpu.dot_dimension_numbers<[1], [0], [0], [1], [0, 0, 1, 1], [], []>} : vector<8x128xbf16>, vector<128x128xbf16>, vector<8x128xf32> -> vector<8x128xf32>
    %c2_114 = arith.constant 2 : index
    %c0_115 = arith.constant 0 : index
    %c0_116 = arith.constant 0 : index
    %209 = vector.load %arg9[%c2_114, %c0_115, %c0_116] : memref<6x1x128xf32, #tpu.memory_space<vmem>>, vector<1x1x128xf32>
    %210 = vector.shape_cast %209 : vector<1x1x128xf32> to vector<1x128xf32>
    %211 = vector.broadcast %210 : vector<1x128xf32> to vector<8x128xf32>
    %212 = arith.addf %208, %211 : vector<8x128xf32>
    %213 = arith.addf %204, %212 : vector<8x128xf32>
    %c2_117 = arith.constant 2 : index
    %c0_118 = arith.constant 0 : index
    %c0_119 = arith.constant 0 : index
    %214 = vector.load %arg10[%c2_117, %c0_118, %c0_119] : memref<6x1x128xf32, #tpu.memory_space<vmem>>, vector<1x1x128xf32>
    %215 = vector.shape_cast %214 : vector<1x1x128xf32> to vector<1x128xf32>
    %c2_120 = arith.constant 2 : index
    %c0_121 = arith.constant 0 : index
    %c0_122 = arith.constant 0 : index
    %216 = vector.load %arg11[%c2_120, %c0_121, %c0_122] : memref<6x1x128xf32, #tpu.memory_space<vmem>>, vector<1x1x128xf32>
    %217 = vector.shape_cast %216 : vector<1x1x128xf32> to vector<1x128xf32>
    %cst_123 = arith.constant dense<0.000000e+00> : vector<8xf32>
    %218 = vector.multi_reduction <add>, %213, %cst_123 [1] : vector<8x128xf32> to vector<8xf32>
    %219 = vector.shape_cast %218 : vector<8xf32> to vector<8x1xf32>
    %cst_124 = arith.constant 1.280000e+02 : f32
    %220 = vector.broadcast %cst_124 : f32 to vector<8x1xf32>
    %221 = arith.divf %219, %220 : vector<8x1xf32>
    %222 = vector.broadcast %221 : vector<8x1xf32> to vector<8x128xf32>
    %223 = arith.subf %213, %222 : vector<8x128xf32>
    %224 = arith.mulf %223, %223 : vector<8x128xf32>
    %cst_125 = arith.constant dense<0.000000e+00> : vector<8xf32>
    %225 = vector.multi_reduction <add>, %224, %cst_125 [1] : vector<8x128xf32> to vector<8xf32>
    %226 = vector.shape_cast %225 : vector<8xf32> to vector<8x1xf32>
    %cst_126 = arith.constant 1.280000e+02 : f32
    %227 = vector.broadcast %cst_126 : f32 to vector<8x1xf32>
    %228 = arith.divf %226, %227 : vector<8x1xf32>
    %cst_127 = arith.constant 9.99999974E-6 : f32
    %229 = vector.broadcast %cst_127 : f32 to vector<8x1xf32>
    %230 = arith.addf %228, %229 : vector<8x1xf32>
    %231 = math.rsqrt %230 : vector<8x1xf32>
    %232 = vector.broadcast %231 : vector<8x1xf32> to vector<8x128xf32>
    %233 = arith.mulf %223, %232 : vector<8x128xf32>
    %234 = vector.broadcast %215 : vector<1x128xf32> to vector<8x128xf32>
    %235 = arith.mulf %233, %234 : vector<8x128xf32>
    %236 = vector.broadcast %217 : vector<1x128xf32> to vector<8x128xf32>
    %237 = arith.addf %235, %236 : vector<8x128xf32>
    %238 = arith.truncf %237 : vector<8x128xf32> to vector<8x128xbf16>
    %c2_128 = arith.constant 2 : index
    %c0_129 = arith.constant 0 : index
    %c0_130 = arith.constant 0 : index
    %239 = vector.load %arg12[%c2_128, %c0_129, %c0_130] : memref<6x128x512xbf16, #tpu.memory_space<vmem>>, vector<1x128x512xbf16>
    %240 = vector.shape_cast %239 : vector<1x128x512xbf16> to vector<128x512xbf16>
    %cst_131 = arith.constant dense<0.000000e+00> : vector<8x512xf32>
    %241 = tpu.matmul %238, %240, %cst_131 {dimension_numbers = #tpu.dot_dimension_numbers<[1], [0], [0], [1], [0, 0, 1, 1], [], []>} : vector<8x128xbf16>, vector<128x512xbf16>, vector<8x512xf32> -> vector<8x512xf32>
    %c2_132 = arith.constant 2 : index
    %c0_133 = arith.constant 0 : index
    %c0_134 = arith.constant 0 : index
    %242 = vector.load %arg13[%c2_132, %c0_133, %c0_134] : memref<6x1x512xf32, #tpu.memory_space<vmem>>, vector<1x1x512xf32>
    %243 = vector.shape_cast %242 : vector<1x1x512xf32> to vector<1x512xf32>
    %244 = vector.broadcast %243 : vector<1x512xf32> to vector<8x512xf32>
    %245 = arith.addf %241, %244 : vector<8x512xf32>
    %246 = arith.truncf %245 : vector<8x512xf32> to vector<8x512xbf16>
    %247 = arith.mulf %246, %246 : vector<8x512xbf16>
    %248 = arith.mulf %247, %246 : vector<8x512xbf16>
    %cst_135 = arith.constant 4.467770e-02 : bf16
    %249 = vector.broadcast %cst_135 : bf16 to vector<8x512xbf16>
    %250 = arith.mulf %249, %248 : vector<8x512xbf16>
    %251 = arith.addf %246, %250 : vector<8x512xbf16>
    %cst_136 = arith.constant 7.968750e-01 : bf16
    %252 = vector.broadcast %cst_136 : bf16 to vector<8x512xbf16>
    %253 = arith.mulf %252, %251 : vector<8x512xbf16>
    %cst_137 = arith.constant 5.000000e-01 : bf16
    %254 = vector.broadcast %cst_137 : bf16 to vector<8x512xbf16>
    %255 = arith.mulf %254, %246 : vector<8x512xbf16>
    %256 = math.tanh %253 : vector<8x512xbf16>
    %cst_138 = arith.constant 1.000000e+00 : bf16
    %257 = vector.broadcast %cst_138 : bf16 to vector<8x512xbf16>
    %258 = arith.addf %257, %256 : vector<8x512xbf16>
    %259 = arith.mulf %255, %258 : vector<8x512xbf16>
    %c2_139 = arith.constant 2 : index
    %c0_140 = arith.constant 0 : index
    %c0_141 = arith.constant 0 : index
    %260 = vector.load %arg14[%c2_139, %c0_140, %c0_141] : memref<6x512x128xbf16, #tpu.memory_space<vmem>>, vector<1x512x128xbf16>
    %261 = vector.shape_cast %260 : vector<1x512x128xbf16> to vector<512x128xbf16>
    %cst_142 = arith.constant dense<0.000000e+00> : vector<8x128xf32>
    %262 = tpu.matmul %259, %261, %cst_142 {dimension_numbers = #tpu.dot_dimension_numbers<[1], [0], [0], [1], [0, 0, 1, 1], [], []>} : vector<8x512xbf16>, vector<512x128xbf16>, vector<8x128xf32> -> vector<8x128xf32>
    %c2_143 = arith.constant 2 : index
    %c0_144 = arith.constant 0 : index
    %c0_145 = arith.constant 0 : index
    %263 = vector.load %arg15[%c2_143, %c0_144, %c0_145] : memref<6x1x128xf32, #tpu.memory_space<vmem>>, vector<1x1x128xf32>
    %264 = vector.shape_cast %263 : vector<1x1x128xf32> to vector<1x128xf32>
    %265 = vector.broadcast %264 : vector<1x128xf32> to vector<8x128xf32>
    %266 = arith.addf %262, %265 : vector<8x128xf32>
    %267 = arith.addf %237, %266 : vector<8x128xf32>
    %c2_146 = arith.constant 2 : index
    %c0_147 = arith.constant 0 : index
    %c0_148 = arith.constant 0 : index
    %268 = vector.load %arg16[%c2_146, %c0_147, %c0_148] : memref<6x1x128xf32, #tpu.memory_space<vmem>>, vector<1x1x128xf32>
    %269 = vector.shape_cast %268 : vector<1x1x128xf32> to vector<1x128xf32>
    %c2_149 = arith.constant 2 : index
    %c0_150 = arith.constant 0 : index
    %c0_151 = arith.constant 0 : index
    %270 = vector.load %arg17[%c2_149, %c0_150, %c0_151] : memref<6x1x128xf32, #tpu.memory_space<vmem>>, vector<1x1x128xf32>
    %271 = vector.shape_cast %270 : vector<1x1x128xf32> to vector<1x128xf32>
    %cst_152 = arith.constant dense<0.000000e+00> : vector<8xf32>
    %272 = vector.multi_reduction <add>, %267, %cst_152 [1] : vector<8x128xf32> to vector<8xf32>
    %273 = vector.shape_cast %272 : vector<8xf32> to vector<8x1xf32>
    %cst_153 = arith.constant 1.280000e+02 : f32
    %274 = vector.broadcast %cst_153 : f32 to vector<8x1xf32>
    %275 = arith.divf %273, %274 : vector<8x1xf32>
    %276 = vector.broadcast %275 : vector<8x1xf32> to vector<8x128xf32>
    %277 = arith.subf %267, %276 : vector<8x128xf32>
    %278 = arith.mulf %277, %277 : vector<8x128xf32>
    %cst_154 = arith.constant dense<0.000000e+00> : vector<8xf32>
    %279 = vector.multi_reduction <add>, %278, %cst_154 [1] : vector<8x128xf32> to vector<8xf32>
    %280 = vector.shape_cast %279 : vector<8xf32> to vector<8x1xf32>
    %cst_155 = arith.constant 1.280000e+02 : f32
    %281 = vector.broadcast %cst_155 : f32 to vector<8x1xf32>
    %282 = arith.divf %280, %281 : vector<8x1xf32>
    %cst_156 = arith.constant 9.99999974E-6 : f32
    %283 = vector.broadcast %cst_156 : f32 to vector<8x1xf32>
    %284 = arith.addf %282, %283 : vector<8x1xf32>
    %285 = math.rsqrt %284 : vector<8x1xf32>
    %286 = vector.broadcast %285 : vector<8x1xf32> to vector<8x128xf32>
    %287 = arith.mulf %277, %286 : vector<8x128xf32>
    %288 = vector.broadcast %269 : vector<1x128xf32> to vector<8x128xf32>
    %289 = arith.mulf %287, %288 : vector<8x128xf32>
    %290 = vector.broadcast %271 : vector<1x128xf32> to vector<8x128xf32>
    %291 = arith.addf %289, %290 : vector<8x128xf32>
    %292 = arith.truncf %291 : vector<8x128xf32> to vector<8x128xbf16>
    %c3 = arith.constant 3 : index
    %c0_157 = arith.constant 0 : index
    %c0_158 = arith.constant 0 : index
    %293 = vector.load %arg8[%c3, %c0_157, %c0_158] : memref<6x128x128xbf16, #tpu.memory_space<vmem>>, vector<1x128x128xbf16>
    %294 = vector.shape_cast %293 : vector<1x128x128xbf16> to vector<128x128xbf16>
    %cst_159 = arith.constant dense<0.000000e+00> : vector<8x128xf32>
    %295 = tpu.matmul %292, %294, %cst_159 {dimension_numbers = #tpu.dot_dimension_numbers<[1], [0], [0], [1], [0, 0, 1, 1], [], []>} : vector<8x128xbf16>, vector<128x128xbf16>, vector<8x128xf32> -> vector<8x128xf32>
    %c3_160 = arith.constant 3 : index
    %c0_161 = arith.constant 0 : index
    %c0_162 = arith.constant 0 : index
    %296 = vector.load %arg9[%c3_160, %c0_161, %c0_162] : memref<6x1x128xf32, #tpu.memory_space<vmem>>, vector<1x1x128xf32>
    %297 = vector.shape_cast %296 : vector<1x1x128xf32> to vector<1x128xf32>
    %298 = vector.broadcast %297 : vector<1x128xf32> to vector<8x128xf32>
    %299 = arith.addf %295, %298 : vector<8x128xf32>
    %300 = arith.addf %291, %299 : vector<8x128xf32>
    %c3_163 = arith.constant 3 : index
    %c0_164 = arith.constant 0 : index
    %c0_165 = arith.constant 0 : index
    %301 = vector.load %arg10[%c3_163, %c0_164, %c0_165] : memref<6x1x128xf32, #tpu.memory_space<vmem>>, vector<1x1x128xf32>
    %302 = vector.shape_cast %301 : vector<1x1x128xf32> to vector<1x128xf32>
    %c3_166 = arith.constant 3 : index
    %c0_167 = arith.constant 0 : index
    %c0_168 = arith.constant 0 : index
    %303 = vector.load %arg11[%c3_166, %c0_167, %c0_168] : memref<6x1x128xf32, #tpu.memory_space<vmem>>, vector<1x1x128xf32>
    %304 = vector.shape_cast %303 : vector<1x1x128xf32> to vector<1x128xf32>
    %cst_169 = arith.constant dense<0.000000e+00> : vector<8xf32>
    %305 = vector.multi_reduction <add>, %300, %cst_169 [1] : vector<8x128xf32> to vector<8xf32>
    %306 = vector.shape_cast %305 : vector<8xf32> to vector<8x1xf32>
    %cst_170 = arith.constant 1.280000e+02 : f32
    %307 = vector.broadcast %cst_170 : f32 to vector<8x1xf32>
    %308 = arith.divf %306, %307 : vector<8x1xf32>
    %309 = vector.broadcast %308 : vector<8x1xf32> to vector<8x128xf32>
    %310 = arith.subf %300, %309 : vector<8x128xf32>
    %311 = arith.mulf %310, %310 : vector<8x128xf32>
    %cst_171 = arith.constant dense<0.000000e+00> : vector<8xf32>
    %312 = vector.multi_reduction <add>, %311, %cst_171 [1] : vector<8x128xf32> to vector<8xf32>
    %313 = vector.shape_cast %312 : vector<8xf32> to vector<8x1xf32>
    %cst_172 = arith.constant 1.280000e+02 : f32
    %314 = vector.broadcast %cst_172 : f32 to vector<8x1xf32>
    %315 = arith.divf %313, %314 : vector<8x1xf32>
    %cst_173 = arith.constant 9.99999974E-6 : f32
    %316 = vector.broadcast %cst_173 : f32 to vector<8x1xf32>
    %317 = arith.addf %315, %316 : vector<8x1xf32>
    %318 = math.rsqrt %317 : vector<8x1xf32>
    %319 = vector.broadcast %318 : vector<8x1xf32> to vector<8x128xf32>
    %320 = arith.mulf %310, %319 : vector<8x128xf32>
    %321 = vector.broadcast %302 : vector<1x128xf32> to vector<8x128xf32>
    %322 = arith.mulf %320, %321 : vector<8x128xf32>
    %323 = vector.broadcast %304 : vector<1x128xf32> to vector<8x128xf32>
    %324 = arith.addf %322, %323 : vector<8x128xf32>
    %325 = arith.truncf %324 : vector<8x128xf32> to vector<8x128xbf16>
    %c3_174 = arith.constant 3 : index
    %c0_175 = arith.constant 0 : index
    %c0_176 = arith.constant 0 : index
    %326 = vector.load %arg12[%c3_174, %c0_175, %c0_176] : memref<6x128x512xbf16, #tpu.memory_space<vmem>>, vector<1x128x512xbf16>
    %327 = vector.shape_cast %326 : vector<1x128x512xbf16> to vector<128x512xbf16>
    %cst_177 = arith.constant dense<0.000000e+00> : vector<8x512xf32>
    %328 = tpu.matmul %325, %327, %cst_177 {dimension_numbers = #tpu.dot_dimension_numbers<[1], [0], [0], [1], [0, 0, 1, 1], [], []>} : vector<8x128xbf16>, vector<128x512xbf16>, vector<8x512xf32> -> vector<8x512xf32>
    %c3_178 = arith.constant 3 : index
    %c0_179 = arith.constant 0 : index
    %c0_180 = arith.constant 0 : index
    %329 = vector.load %arg13[%c3_178, %c0_179, %c0_180] : memref<6x1x512xf32, #tpu.memory_space<vmem>>, vector<1x1x512xf32>
    %330 = vector.shape_cast %329 : vector<1x1x512xf32> to vector<1x512xf32>
    %331 = vector.broadcast %330 : vector<1x512xf32> to vector<8x512xf32>
    %332 = arith.addf %328, %331 : vector<8x512xf32>
    %333 = arith.truncf %332 : vector<8x512xf32> to vector<8x512xbf16>
    %334 = arith.mulf %333, %333 : vector<8x512xbf16>
    %335 = arith.mulf %334, %333 : vector<8x512xbf16>
    %cst_181 = arith.constant 4.467770e-02 : bf16
    %336 = vector.broadcast %cst_181 : bf16 to vector<8x512xbf16>
    %337 = arith.mulf %336, %335 : vector<8x512xbf16>
    %338 = arith.addf %333, %337 : vector<8x512xbf16>
    %cst_182 = arith.constant 7.968750e-01 : bf16
    %339 = vector.broadcast %cst_182 : bf16 to vector<8x512xbf16>
    %340 = arith.mulf %339, %338 : vector<8x512xbf16>
    %cst_183 = arith.constant 5.000000e-01 : bf16
    %341 = vector.broadcast %cst_183 : bf16 to vector<8x512xbf16>
    %342 = arith.mulf %341, %333 : vector<8x512xbf16>
    %343 = math.tanh %340 : vector<8x512xbf16>
    %cst_184 = arith.constant 1.000000e+00 : bf16
    %344 = vector.broadcast %cst_184 : bf16 to vector<8x512xbf16>
    %345 = arith.addf %344, %343 : vector<8x512xbf16>
    %346 = arith.mulf %342, %345 : vector<8x512xbf16>
    %c3_185 = arith.constant 3 : index
    %c0_186 = arith.constant 0 : index
    %c0_187 = arith.constant 0 : index
    %347 = vector.load %arg14[%c3_185, %c0_186, %c0_187] : memref<6x512x128xbf16, #tpu.memory_space<vmem>>, vector<1x512x128xbf16>
    %348 = vector.shape_cast %347 : vector<1x512x128xbf16> to vector<512x128xbf16>
    %cst_188 = arith.constant dense<0.000000e+00> : vector<8x128xf32>
    %349 = tpu.matmul %346, %348, %cst_188 {dimension_numbers = #tpu.dot_dimension_numbers<[1], [0], [0], [1], [0, 0, 1, 1], [], []>} : vector<8x512xbf16>, vector<512x128xbf16>, vector<8x128xf32> -> vector<8x128xf32>
    %c3_189 = arith.constant 3 : index
    %c0_190 = arith.constant 0 : index
    %c0_191 = arith.constant 0 : index
    %350 = vector.load %arg15[%c3_189, %c0_190, %c0_191] : memref<6x1x128xf32, #tpu.memory_space<vmem>>, vector<1x1x128xf32>
    %351 = vector.shape_cast %350 : vector<1x1x128xf32> to vector<1x128xf32>
    %352 = vector.broadcast %351 : vector<1x128xf32> to vector<8x128xf32>
    %353 = arith.addf %349, %352 : vector<8x128xf32>
    %354 = arith.addf %324, %353 : vector<8x128xf32>
    %c3_192 = arith.constant 3 : index
    %c0_193 = arith.constant 0 : index
    %c0_194 = arith.constant 0 : index
    %355 = vector.load %arg16[%c3_192, %c0_193, %c0_194] : memref<6x1x128xf32, #tpu.memory_space<vmem>>, vector<1x1x128xf32>
    %356 = vector.shape_cast %355 : vector<1x1x128xf32> to vector<1x128xf32>
    %c3_195 = arith.constant 3 : index
    %c0_196 = arith.constant 0 : index
    %c0_197 = arith.constant 0 : index
    %357 = vector.load %arg17[%c3_195, %c0_196, %c0_197] : memref<6x1x128xf32, #tpu.memory_space<vmem>>, vector<1x1x128xf32>
    %358 = vector.shape_cast %357 : vector<1x1x128xf32> to vector<1x128xf32>
    %cst_198 = arith.constant dense<0.000000e+00> : vector<8xf32>
    %359 = vector.multi_reduction <add>, %354, %cst_198 [1] : vector<8x128xf32> to vector<8xf32>
    %360 = vector.shape_cast %359 : vector<8xf32> to vector<8x1xf32>
    %cst_199 = arith.constant 1.280000e+02 : f32
    %361 = vector.broadcast %cst_199 : f32 to vector<8x1xf32>
    %362 = arith.divf %360, %361 : vector<8x1xf32>
    %363 = vector.broadcast %362 : vector<8x1xf32> to vector<8x128xf32>
    %364 = arith.subf %354, %363 : vector<8x128xf32>
    %365 = arith.mulf %364, %364 : vector<8x128xf32>
    %cst_200 = arith.constant dense<0.000000e+00> : vector<8xf32>
    %366 = vector.multi_reduction <add>, %365, %cst_200 [1] : vector<8x128xf32> to vector<8xf32>
    %367 = vector.shape_cast %366 : vector<8xf32> to vector<8x1xf32>
    %cst_201 = arith.constant 1.280000e+02 : f32
    %368 = vector.broadcast %cst_201 : f32 to vector<8x1xf32>
    %369 = arith.divf %367, %368 : vector<8x1xf32>
    %cst_202 = arith.constant 9.99999974E-6 : f32
    %370 = vector.broadcast %cst_202 : f32 to vector<8x1xf32>
    %371 = arith.addf %369, %370 : vector<8x1xf32>
    %372 = math.rsqrt %371 : vector<8x1xf32>
    %373 = vector.broadcast %372 : vector<8x1xf32> to vector<8x128xf32>
    %374 = arith.mulf %364, %373 : vector<8x128xf32>
    %375 = vector.broadcast %356 : vector<1x128xf32> to vector<8x128xf32>
    %376 = arith.mulf %374, %375 : vector<8x128xf32>
    %377 = vector.broadcast %358 : vector<1x128xf32> to vector<8x128xf32>
    %378 = arith.addf %376, %377 : vector<8x128xf32>
    %379 = arith.truncf %378 : vector<8x128xf32> to vector<8x128xbf16>
    %c4 = arith.constant 4 : index
    %c0_203 = arith.constant 0 : index
    %c0_204 = arith.constant 0 : index
    %380 = vector.load %arg8[%c4, %c0_203, %c0_204] : memref<6x128x128xbf16, #tpu.memory_space<vmem>>, vector<1x128x128xbf16>
    %381 = vector.shape_cast %380 : vector<1x128x128xbf16> to vector<128x128xbf16>
    %cst_205 = arith.constant dense<0.000000e+00> : vector<8x128xf32>
    %382 = tpu.matmul %379, %381, %cst_205 {dimension_numbers = #tpu.dot_dimension_numbers<[1], [0], [0], [1], [0, 0, 1, 1], [], []>} : vector<8x128xbf16>, vector<128x128xbf16>, vector<8x128xf32> -> vector<8x128xf32>
    %c4_206 = arith.constant 4 : index
    %c0_207 = arith.constant 0 : index
    %c0_208 = arith.constant 0 : index
    %383 = vector.load %arg9[%c4_206, %c0_207, %c0_208] : memref<6x1x128xf32, #tpu.memory_space<vmem>>, vector<1x1x128xf32>
    %384 = vector.shape_cast %383 : vector<1x1x128xf32> to vector<1x128xf32>
    %385 = vector.broadcast %384 : vector<1x128xf32> to vector<8x128xf32>
    %386 = arith.addf %382, %385 : vector<8x128xf32>
    %387 = arith.addf %378, %386 : vector<8x128xf32>
    %c4_209 = arith.constant 4 : index
    %c0_210 = arith.constant 0 : index
    %c0_211 = arith.constant 0 : index
    %388 = vector.load %arg10[%c4_209, %c0_210, %c0_211] : memref<6x1x128xf32, #tpu.memory_space<vmem>>, vector<1x1x128xf32>
    %389 = vector.shape_cast %388 : vector<1x1x128xf32> to vector<1x128xf32>
    %c4_212 = arith.constant 4 : index
    %c0_213 = arith.constant 0 : index
    %c0_214 = arith.constant 0 : index
    %390 = vector.load %arg11[%c4_212, %c0_213, %c0_214] : memref<6x1x128xf32, #tpu.memory_space<vmem>>, vector<1x1x128xf32>
    %391 = vector.shape_cast %390 : vector<1x1x128xf32> to vector<1x128xf32>
    %cst_215 = arith.constant dense<0.000000e+00> : vector<8xf32>
    %392 = vector.multi_reduction <add>, %387, %cst_215 [1] : vector<8x128xf32> to vector<8xf32>
    %393 = vector.shape_cast %392 : vector<8xf32> to vector<8x1xf32>
    %cst_216 = arith.constant 1.280000e+02 : f32
    %394 = vector.broadcast %cst_216 : f32 to vector<8x1xf32>
    %395 = arith.divf %393, %394 : vector<8x1xf32>
    %396 = vector.broadcast %395 : vector<8x1xf32> to vector<8x128xf32>
    %397 = arith.subf %387, %396 : vector<8x128xf32>
    %398 = arith.mulf %397, %397 : vector<8x128xf32>
    %cst_217 = arith.constant dense<0.000000e+00> : vector<8xf32>
    %399 = vector.multi_reduction <add>, %398, %cst_217 [1] : vector<8x128xf32> to vector<8xf32>
    %400 = vector.shape_cast %399 : vector<8xf32> to vector<8x1xf32>
    %cst_218 = arith.constant 1.280000e+02 : f32
    %401 = vector.broadcast %cst_218 : f32 to vector<8x1xf32>
    %402 = arith.divf %400, %401 : vector<8x1xf32>
    %cst_219 = arith.constant 9.99999974E-6 : f32
    %403 = vector.broadcast %cst_219 : f32 to vector<8x1xf32>
    %404 = arith.addf %402, %403 : vector<8x1xf32>
    %405 = math.rsqrt %404 : vector<8x1xf32>
    %406 = vector.broadcast %405 : vector<8x1xf32> to vector<8x128xf32>
    %407 = arith.mulf %397, %406 : vector<8x128xf32>
    %408 = vector.broadcast %389 : vector<1x128xf32> to vector<8x128xf32>
    %409 = arith.mulf %407, %408 : vector<8x128xf32>
    %410 = vector.broadcast %391 : vector<1x128xf32> to vector<8x128xf32>
    %411 = arith.addf %409, %410 : vector<8x128xf32>
    %412 = arith.truncf %411 : vector<8x128xf32> to vector<8x128xbf16>
    %c4_220 = arith.constant 4 : index
    %c0_221 = arith.constant 0 : index
    %c0_222 = arith.constant 0 : index
    %413 = vector.load %arg12[%c4_220, %c0_221, %c0_222] : memref<6x128x512xbf16, #tpu.memory_space<vmem>>, vector<1x128x512xbf16>
    %414 = vector.shape_cast %413 : vector<1x128x512xbf16> to vector<128x512xbf16>
    %cst_223 = arith.constant dense<0.000000e+00> : vector<8x512xf32>
    %415 = tpu.matmul %412, %414, %cst_223 {dimension_numbers = #tpu.dot_dimension_numbers<[1], [0], [0], [1], [0, 0, 1, 1], [], []>} : vector<8x128xbf16>, vector<128x512xbf16>, vector<8x512xf32> -> vector<8x512xf32>
    %c4_224 = arith.constant 4 : index
    %c0_225 = arith.constant 0 : index
    %c0_226 = arith.constant 0 : index
    %416 = vector.load %arg13[%c4_224, %c0_225, %c0_226] : memref<6x1x512xf32, #tpu.memory_space<vmem>>, vector<1x1x512xf32>
    %417 = vector.shape_cast %416 : vector<1x1x512xf32> to vector<1x512xf32>
    %418 = vector.broadcast %417 : vector<1x512xf32> to vector<8x512xf32>
    %419 = arith.addf %415, %418 : vector<8x512xf32>
    %420 = arith.truncf %419 : vector<8x512xf32> to vector<8x512xbf16>
    %421 = arith.mulf %420, %420 : vector<8x512xbf16>
    %422 = arith.mulf %421, %420 : vector<8x512xbf16>
    %cst_227 = arith.constant 4.467770e-02 : bf16
    %423 = vector.broadcast %cst_227 : bf16 to vector<8x512xbf16>
    %424 = arith.mulf %423, %422 : vector<8x512xbf16>
    %425 = arith.addf %420, %424 : vector<8x512xbf16>
    %cst_228 = arith.constant 7.968750e-01 : bf16
    %426 = vector.broadcast %cst_228 : bf16 to vector<8x512xbf16>
    %427 = arith.mulf %426, %425 : vector<8x512xbf16>
    %cst_229 = arith.constant 5.000000e-01 : bf16
    %428 = vector.broadcast %cst_229 : bf16 to vector<8x512xbf16>
    %429 = arith.mulf %428, %420 : vector<8x512xbf16>
    %430 = math.tanh %427 : vector<8x512xbf16>
    %cst_230 = arith.constant 1.000000e+00 : bf16
    %431 = vector.broadcast %cst_230 : bf16 to vector<8x512xbf16>
    %432 = arith.addf %431, %430 : vector<8x512xbf16>
    %433 = arith.mulf %429, %432 : vector<8x512xbf16>
    %c4_231 = arith.constant 4 : index
    %c0_232 = arith.constant 0 : index
    %c0_233 = arith.constant 0 : index
    %434 = vector.load %arg14[%c4_231, %c0_232, %c0_233] : memref<6x512x128xbf16, #tpu.memory_space<vmem>>, vector<1x512x128xbf16>
    %435 = vector.shape_cast %434 : vector<1x512x128xbf16> to vector<512x128xbf16>
    %cst_234 = arith.constant dense<0.000000e+00> : vector<8x128xf32>
    %436 = tpu.matmul %433, %435, %cst_234 {dimension_numbers = #tpu.dot_dimension_numbers<[1], [0], [0], [1], [0, 0, 1, 1], [], []>} : vector<8x512xbf16>, vector<512x128xbf16>, vector<8x128xf32> -> vector<8x128xf32>
    %c4_235 = arith.constant 4 : index
    %c0_236 = arith.constant 0 : index
    %c0_237 = arith.constant 0 : index
    %437 = vector.load %arg15[%c4_235, %c0_236, %c0_237] : memref<6x1x128xf32, #tpu.memory_space<vmem>>, vector<1x1x128xf32>
    %438 = vector.shape_cast %437 : vector<1x1x128xf32> to vector<1x128xf32>
    %439 = vector.broadcast %438 : vector<1x128xf32> to vector<8x128xf32>
    %440 = arith.addf %436, %439 : vector<8x128xf32>
    %441 = arith.addf %411, %440 : vector<8x128xf32>
    %c4_238 = arith.constant 4 : index
    %c0_239 = arith.constant 0 : index
    %c0_240 = arith.constant 0 : index
    %442 = vector.load %arg16[%c4_238, %c0_239, %c0_240] : memref<6x1x128xf32, #tpu.memory_space<vmem>>, vector<1x1x128xf32>
    %443 = vector.shape_cast %442 : vector<1x1x128xf32> to vector<1x128xf32>
    %c4_241 = arith.constant 4 : index
    %c0_242 = arith.constant 0 : index
    %c0_243 = arith.constant 0 : index
    %444 = vector.load %arg17[%c4_241, %c0_242, %c0_243] : memref<6x1x128xf32, #tpu.memory_space<vmem>>, vector<1x1x128xf32>
    %445 = vector.shape_cast %444 : vector<1x1x128xf32> to vector<1x128xf32>
    %cst_244 = arith.constant dense<0.000000e+00> : vector<8xf32>
    %446 = vector.multi_reduction <add>, %441, %cst_244 [1] : vector<8x128xf32> to vector<8xf32>
    %447 = vector.shape_cast %446 : vector<8xf32> to vector<8x1xf32>
    %cst_245 = arith.constant 1.280000e+02 : f32
    %448 = vector.broadcast %cst_245 : f32 to vector<8x1xf32>
    %449 = arith.divf %447, %448 : vector<8x1xf32>
    %450 = vector.broadcast %449 : vector<8x1xf32> to vector<8x128xf32>
    %451 = arith.subf %441, %450 : vector<8x128xf32>
    %452 = arith.mulf %451, %451 : vector<8x128xf32>
    %cst_246 = arith.constant dense<0.000000e+00> : vector<8xf32>
    %453 = vector.multi_reduction <add>, %452, %cst_246 [1] : vector<8x128xf32> to vector<8xf32>
    %454 = vector.shape_cast %453 : vector<8xf32> to vector<8x1xf32>
    %cst_247 = arith.constant 1.280000e+02 : f32
    %455 = vector.broadcast %cst_247 : f32 to vector<8x1xf32>
    %456 = arith.divf %454, %455 : vector<8x1xf32>
    %cst_248 = arith.constant 9.99999974E-6 : f32
    %457 = vector.broadcast %cst_248 : f32 to vector<8x1xf32>
    %458 = arith.addf %456, %457 : vector<8x1xf32>
    %459 = math.rsqrt %458 : vector<8x1xf32>
    %460 = vector.broadcast %459 : vector<8x1xf32> to vector<8x128xf32>
    %461 = arith.mulf %451, %460 : vector<8x128xf32>
    %462 = vector.broadcast %443 : vector<1x128xf32> to vector<8x128xf32>
    %463 = arith.mulf %461, %462 : vector<8x128xf32>
    %464 = vector.broadcast %445 : vector<1x128xf32> to vector<8x128xf32>
    %465 = arith.addf %463, %464 : vector<8x128xf32>
    %466 = arith.truncf %465 : vector<8x128xf32> to vector<8x128xbf16>
    %c5 = arith.constant 5 : index
    %c0_249 = arith.constant 0 : index
    %c0_250 = arith.constant 0 : index
    %467 = vector.load %arg8[%c5, %c0_249, %c0_250] : memref<6x128x128xbf16, #tpu.memory_space<vmem>>, vector<1x128x128xbf16>
    %468 = vector.shape_cast %467 : vector<1x128x128xbf16> to vector<128x128xbf16>
    %cst_251 = arith.constant dense<0.000000e+00> : vector<8x128xf32>
    %469 = tpu.matmul %466, %468, %cst_251 {dimension_numbers = #tpu.dot_dimension_numbers<[1], [0], [0], [1], [0, 0, 1, 1], [], []>} : vector<8x128xbf16>, vector<128x128xbf16>, vector<8x128xf32> -> vector<8x128xf32>
    %c5_252 = arith.constant 5 : index
    %c0_253 = arith.constant 0 : index
    %c0_254 = arith.constant 0 : index
    %470 = vector.load %arg9[%c5_252, %c0_253, %c0_254] : memref<6x1x128xf32, #tpu.memory_space<vmem>>, vector<1x1x128xf32>
    %471 = vector.shape_cast %470 : vector<1x1x128xf32> to vector<1x128xf32>
    %472 = vector.broadcast %471 : vector<1x128xf32> to vector<8x128xf32>
    %473 = arith.addf %469, %472 : vector<8x128xf32>
    %474 = arith.addf %465, %473 : vector<8x128xf32>
    %c5_255 = arith.constant 5 : index
    %c0_256 = arith.constant 0 : index
    %c0_257 = arith.constant 0 : index
    %475 = vector.load %arg10[%c5_255, %c0_256, %c0_257] : memref<6x1x128xf32, #tpu.memory_space<vmem>>, vector<1x1x128xf32>
    %476 = vector.shape_cast %475 : vector<1x1x128xf32> to vector<1x128xf32>
    %c5_258 = arith.constant 5 : index
    %c0_259 = arith.constant 0 : index
    %c0_260 = arith.constant 0 : index
    %477 = vector.load %arg11[%c5_258, %c0_259, %c0_260] : memref<6x1x128xf32, #tpu.memory_space<vmem>>, vector<1x1x128xf32>
    %478 = vector.shape_cast %477 : vector<1x1x128xf32> to vector<1x128xf32>
    %cst_261 = arith.constant dense<0.000000e+00> : vector<8xf32>
    %479 = vector.multi_reduction <add>, %474, %cst_261 [1] : vector<8x128xf32> to vector<8xf32>
    %480 = vector.shape_cast %479 : vector<8xf32> to vector<8x1xf32>
    %cst_262 = arith.constant 1.280000e+02 : f32
    %481 = vector.broadcast %cst_262 : f32 to vector<8x1xf32>
    %482 = arith.divf %480, %481 : vector<8x1xf32>
    %483 = vector.broadcast %482 : vector<8x1xf32> to vector<8x128xf32>
    %484 = arith.subf %474, %483 : vector<8x128xf32>
    %485 = arith.mulf %484, %484 : vector<8x128xf32>
    %cst_263 = arith.constant dense<0.000000e+00> : vector<8xf32>
    %486 = vector.multi_reduction <add>, %485, %cst_263 [1] : vector<8x128xf32> to vector<8xf32>
    %487 = vector.shape_cast %486 : vector<8xf32> to vector<8x1xf32>
    %cst_264 = arith.constant 1.280000e+02 : f32
    %488 = vector.broadcast %cst_264 : f32 to vector<8x1xf32>
    %489 = arith.divf %487, %488 : vector<8x1xf32>
    %cst_265 = arith.constant 9.99999974E-6 : f32
    %490 = vector.broadcast %cst_265 : f32 to vector<8x1xf32>
    %491 = arith.addf %489, %490 : vector<8x1xf32>
    %492 = math.rsqrt %491 : vector<8x1xf32>
    %493 = vector.broadcast %492 : vector<8x1xf32> to vector<8x128xf32>
    %494 = arith.mulf %484, %493 : vector<8x128xf32>
    %495 = vector.broadcast %476 : vector<1x128xf32> to vector<8x128xf32>
    %496 = arith.mulf %494, %495 : vector<8x128xf32>
    %497 = vector.broadcast %478 : vector<1x128xf32> to vector<8x128xf32>
    %498 = arith.addf %496, %497 : vector<8x128xf32>
    %499 = arith.truncf %498 : vector<8x128xf32> to vector<8x128xbf16>
    %c5_266 = arith.constant 5 : index
    %c0_267 = arith.constant 0 : index
    %c0_268 = arith.constant 0 : index
    %500 = vector.load %arg12[%c5_266, %c0_267, %c0_268] : memref<6x128x512xbf16, #tpu.memory_space<vmem>>, vector<1x128x512xbf16>
    %501 = vector.shape_cast %500 : vector<1x128x512xbf16> to vector<128x512xbf16>
    %cst_269 = arith.constant dense<0.000000e+00> : vector<8x512xf32>
    %502 = tpu.matmul %499, %501, %cst_269 {dimension_numbers = #tpu.dot_dimension_numbers<[1], [0], [0], [1], [0, 0, 1, 1], [], []>} : vector<8x128xbf16>, vector<128x512xbf16>, vector<8x512xf32> -> vector<8x512xf32>
    %c5_270 = arith.constant 5 : index
    %c0_271 = arith.constant 0 : index
    %c0_272 = arith.constant 0 : index
    %503 = vector.load %arg13[%c5_270, %c0_271, %c0_272] : memref<6x1x512xf32, #tpu.memory_space<vmem>>, vector<1x1x512xf32>
    %504 = vector.shape_cast %503 : vector<1x1x512xf32> to vector<1x512xf32>
    %505 = vector.broadcast %504 : vector<1x512xf32> to vector<8x512xf32>
    %506 = arith.addf %502, %505 : vector<8x512xf32>
    %507 = arith.truncf %506 : vector<8x512xf32> to vector<8x512xbf16>
    %508 = arith.mulf %507, %507 : vector<8x512xbf16>
    %509 = arith.mulf %508, %507 : vector<8x512xbf16>
    %cst_273 = arith.constant 4.467770e-02 : bf16
    %510 = vector.broadcast %cst_273 : bf16 to vector<8x512xbf16>
    %511 = arith.mulf %510, %509 : vector<8x512xbf16>
    %512 = arith.addf %507, %511 : vector<8x512xbf16>
    %cst_274 = arith.constant 7.968750e-01 : bf16
    %513 = vector.broadcast %cst_274 : bf16 to vector<8x512xbf16>
    %514 = arith.mulf %513, %512 : vector<8x512xbf16>
    %cst_275 = arith.constant 5.000000e-01 : bf16
    %515 = vector.broadcast %cst_275 : bf16 to vector<8x512xbf16>
    %516 = arith.mulf %515, %507 : vector<8x512xbf16>
    %517 = math.tanh %514 : vector<8x512xbf16>
    %cst_276 = arith.constant 1.000000e+00 : bf16
    %518 = vector.broadcast %cst_276 : bf16 to vector<8x512xbf16>
    %519 = arith.addf %518, %517 : vector<8x512xbf16>
    %520 = arith.mulf %516, %519 : vector<8x512xbf16>
    %c5_277 = arith.constant 5 : index
    %c0_278 = arith.constant 0 : index
    %c0_279 = arith.constant 0 : index
    %521 = vector.load %arg14[%c5_277, %c0_278, %c0_279] : memref<6x512x128xbf16, #tpu.memory_space<vmem>>, vector<1x512x128xbf16>
    %522 = vector.shape_cast %521 : vector<1x512x128xbf16> to vector<512x128xbf16>
    %cst_280 = arith.constant dense<0.000000e+00> : vector<8x128xf32>
    %523 = tpu.matmul %520, %522, %cst_280 {dimension_numbers = #tpu.dot_dimension_numbers<[1], [0], [0], [1], [0, 0, 1, 1], [], []>} : vector<8x512xbf16>, vector<512x128xbf16>, vector<8x128xf32> -> vector<8x128xf32>
    %c5_281 = arith.constant 5 : index
    %c0_282 = arith.constant 0 : index
    %c0_283 = arith.constant 0 : index
    %524 = vector.load %arg15[%c5_281, %c0_282, %c0_283] : memref<6x1x128xf32, #tpu.memory_space<vmem>>, vector<1x1x128xf32>
    %525 = vector.shape_cast %524 : vector<1x1x128xf32> to vector<1x128xf32>
    %526 = vector.broadcast %525 : vector<1x128xf32> to vector<8x128xf32>
    %527 = arith.addf %523, %526 : vector<8x128xf32>
    %528 = arith.addf %498, %527 : vector<8x128xf32>
    %c5_284 = arith.constant 5 : index
    %c0_285 = arith.constant 0 : index
    %c0_286 = arith.constant 0 : index
    %529 = vector.load %arg16[%c5_284, %c0_285, %c0_286] : memref<6x1x128xf32, #tpu.memory_space<vmem>>, vector<1x1x128xf32>
    %530 = vector.shape_cast %529 : vector<1x1x128xf32> to vector<1x128xf32>
    %c5_287 = arith.constant 5 : index
    %c0_288 = arith.constant 0 : index
    %c0_289 = arith.constant 0 : index
    %531 = vector.load %arg17[%c5_287, %c0_288, %c0_289] : memref<6x1x128xf32, #tpu.memory_space<vmem>>, vector<1x1x128xf32>
    %532 = vector.shape_cast %531 : vector<1x1x128xf32> to vector<1x128xf32>
    %cst_290 = arith.constant dense<0.000000e+00> : vector<8xf32>
    %533 = vector.multi_reduction <add>, %528, %cst_290 [1] : vector<8x128xf32> to vector<8xf32>
    %534 = vector.shape_cast %533 : vector<8xf32> to vector<8x1xf32>
    %cst_291 = arith.constant 1.280000e+02 : f32
    %535 = vector.broadcast %cst_291 : f32 to vector<8x1xf32>
    %536 = arith.divf %534, %535 : vector<8x1xf32>
    %537 = vector.broadcast %536 : vector<8x1xf32> to vector<8x128xf32>
    %538 = arith.subf %528, %537 : vector<8x128xf32>
    %539 = arith.mulf %538, %538 : vector<8x128xf32>
    %cst_292 = arith.constant dense<0.000000e+00> : vector<8xf32>
    %540 = vector.multi_reduction <add>, %539, %cst_292 [1] : vector<8x128xf32> to vector<8xf32>
    %541 = vector.shape_cast %540 : vector<8xf32> to vector<8x1xf32>
    %cst_293 = arith.constant 1.280000e+02 : f32
    %542 = vector.broadcast %cst_293 : f32 to vector<8x1xf32>
    %543 = arith.divf %541, %542 : vector<8x1xf32>
    %cst_294 = arith.constant 9.99999974E-6 : f32
    %544 = vector.broadcast %cst_294 : f32 to vector<8x1xf32>
    %545 = arith.addf %543, %544 : vector<8x1xf32>
    %546 = math.rsqrt %545 : vector<8x1xf32>
    %547 = vector.broadcast %546 : vector<8x1xf32> to vector<8x128xf32>
    %548 = arith.mulf %538, %547 : vector<8x128xf32>
    %549 = vector.broadcast %530 : vector<1x128xf32> to vector<8x128xf32>
    %550 = arith.mulf %548, %549 : vector<8x128xf32>
    %551 = vector.broadcast %532 : vector<1x128xf32> to vector<8x128xf32>
    %552 = arith.addf %550, %551 : vector<8x128xf32>
    %553 = arith.truncf %552 : vector<8x128xf32> to vector<8x128xbf16>
    %c0_295 = arith.constant 0 : index
    %c0_296 = arith.constant 0 : index
    %554 = vector.load %arg18[%c0_295, %c0_296] : memref<128x16xbf16, #tpu.memory_space<vmem>>, vector<128x16xbf16>
    %cst_297 = arith.constant dense<0.000000e+00> : vector<8x16xf32>
    %555 = tpu.matmul %553, %554, %cst_297 {dimension_numbers = #tpu.dot_dimension_numbers<[1], [0], [0], [1], [0, 0, 1, 1], [], []>} : vector<8x128xbf16>, vector<128x16xbf16>, vector<8x16xf32> -> vector<8x16xf32>
    %c0_298 = arith.constant 0 : index
    %c0_299 = arith.constant 0 : index
    %556 = vector.load %arg19[%c0_298, %c0_299] : memref<1x16xf32, #tpu.memory_space<vmem>>, vector<1x16xf32>
    %557 = vector.broadcast %556 : vector<1x16xf32> to vector<8x16xf32>
    %558 = arith.addf %555, %557 : vector<8x16xf32>
    %c0_300 = arith.constant 0 : index
    %c0_301 = arith.constant 0 : index
    %559 = vector.load %arg20[%c0_300, %c0_301] : memref<8x16xf32, #tpu.memory_space<vmem>>, vector<8x16xf32>
    tpu.vector_store %arg20[%c0_300, %c0_301], %558 {strides = array<i32>} : memref<8x16xf32, #tpu.memory_space<vmem>>, vector<8x16xf32>,
    return
  }
  func.func @transform_0(%arg0: i32) -> (i32, i32) {
    %c0_i32 = arith.constant 0 : i32
    %c0_i32_0 = arith.constant 0 : i32
    return %arg0, %c0_i32 : i32, i32
  }
  func.func @transform_1(%arg0: i32) -> (i32, i32) {
    %c0_i32 = arith.constant 0 : i32
    %c0_i32_0 = arith.constant 0 : i32
    return %arg0, %c0_i32 : i32, i32
  }
  func.func @transform_2(%arg0: i32) -> (i32, i32) {
    %c0_i32 = arith.constant 0 : i32
    %c0_i32_0 = arith.constant 0 : i32
    %c0_i32_1 = arith.constant 0 : i32
    return %c0_i32, %c0_i32_0 : i32, i32
  }
  func.func @transform_3(%arg0: i32) -> (i32, i32) {
    %c0_i32 = arith.constant 0 : i32
    %c0_i32_0 = arith.constant 0 : i32
    %c0_i32_1 = arith.constant 0 : i32
    return %c0_i32, %c0_i32_0 : i32, i32
  }
  func.func @transform_4(%arg0: i32) -> (i32, i32) {
    %c0_i32 = arith.constant 0 : i32
    %c0_i32_0 = arith.constant 0 : i32
    %c0_i32_1 = arith.constant 0 : i32
    return %c0_i32, %c0_i32_0 : i32, i32
  }
  func.func @transform_5(%arg0: i32) -> (i32, i32) {
    %c0_i32 = arith.constant 0 : i32
    %c0_i32_0 = arith.constant 0 : i32
    %c0_i32_1 = arith.constant 0 : i32
    return %c0_i32, %c0_i32_0 : i32, i32
  }
  func.func @transform_6(%arg0: i32) -> (i32, i32) {
    %c0_i32 = arith.constant 0 : i32
    %c0_i32_0 = arith.constant 0 : i32
    %c0_i32_1 = arith.constant 0 : i32
    return %c0_i32, %c0_i32_0 : i32, i32
  }
  func.func @transform_7(%arg0: i32) -> (i32, i32, i32) {
    %c0_i32 = arith.constant 0 : i32
    %c0_i32_0 = arith.constant 0 : i32
    %c0_i32_1 = arith.constant 0 : i32
    %c0_i32_2 = arith.constant 0 : i32
    return %c0_i32, %c0_i32_0, %c0_i32_1 : i32, i32, i32
  }
  func.func @transform_8(%arg0: i32) -> (i32, i32, i32) {
    %c0_i32 = arith.constant 0 : i32
    %c0_i32_0 = arith.constant 0 : i32
    %c0_i32_1 = arith.constant 0 : i32
    %c0_i32_2 = arith.constant 0 : i32
    return %c0_i32, %c0_i32_0, %c0_i32_1 : i32, i32, i32
  }
  func.func @transform_9(%arg0: i32) -> (i32, i32, i32) {
    %c0_i32 = arith.constant 0 : i32
    %c0_i32_0 = arith.constant 0 : i32
    %c0_i32_1 = arith.constant 0 : i32
    %c0_i32_2 = arith.constant 0 : i32
    return %c0_i32, %c0_i32_0, %c0_i32_1 : i32, i32, i32
  }
  func.func @transform_10(%arg0: i32) -> (i32, i32, i32) {
    %c0_i32 = arith.constant 0 : i32
    %c0_i32_0 = arith.constant 0 : i32
    %c0_i32_1 = arith.constant 0 : i32
    %c0_i32_2 = arith.constant 0 : i32
    return %c0_i32, %c0_i32_0, %c0_i32_1 : i32, i32, i32
  }
  func.func @transform_11(%arg0: i32) -> (i32, i32, i32) {
    %c0_i32 = arith.constant 0 : i32
    %c0_i32_0 = arith.constant 0 : i32
    %c0_i32_1 = arith.constant 0 : i32
    %c0_i32_2 = arith.constant 0 : i32
    return %c0_i32, %c0_i32_0, %c0_i32_1 : i32, i32, i32
  }
  func.func @transform_12(%arg0: i32) -> (i32, i32, i32) {
    %c0_i32 = arith.constant 0 : i32
    %c0_i32_0 = arith.constant 0 : i32
    %c0_i32_1 = arith.constant 0 : i32
    %c0_i32_2 = arith.constant 0 : i32
    return %c0_i32, %c0_i32_0, %c0_i32_1 : i32, i32, i32
  }
  func.func @transform_13(%arg0: i32) -> (i32, i32, i32) {
    %c0_i32 = arith.constant 0 : i32
    %c0_i32_0 = arith.constant 0 : i32
    %c0_i32_1 = arith.constant 0 : i32
    %c0_i32_2 = arith.constant 0 : i32
    return %c0_i32, %c0_i32_0, %c0_i32_1 : i32, i32, i32
  }
  func.func @transform_14(%arg0: i32) -> (i32, i32, i32) {
    %c0_i32 = arith.constant 0 : i32
    %c0_i32_0 = arith.constant 0 : i32
    %c0_i32_1 = arith.constant 0 : i32
    %c0_i32_2 = arith.constant 0 : i32
    return %c0_i32, %c0_i32_0, %c0_i32_1 : i32, i32, i32
  }
  func.func @transform_15(%arg0: i32) -> (i32, i32, i32) {
    %c0_i32 = arith.constant 0 : i32
    %c0_i32_0 = arith.constant 0 : i32
    %c0_i32_1 = arith.constant 0 : i32
    %c0_i32_2 = arith.constant 0 : i32
    return %c0_i32, %c0_i32_0, %c0_i32_1 : i32, i32, i32
  }
  func.func @transform_16(%arg0: i32) -> (i32, i32, i32) {
    %c0_i32 = arith.constant 0 : i32
    %c0_i32_0 = arith.constant 0 : i32
    %c0_i32_1 = arith.constant 0 : i32
    %c0_i32_2 = arith.constant 0 : i32
    return %c0_i32, %c0_i32_0, %c0_i32_1 : i32, i32, i32
  }
  func.func @transform_17(%arg0: i32) -> (i32, i32) {
    %c0_i32 = arith.constant 0 : i32
    %c0_i32_0 = arith.constant 0 : i32
    %c0_i32_1 = arith.constant 0 : i32
    return %c0_i32, %c0_i32_0 : i32, i32
  }
  func.func @transform_18(%arg0: i32) -> (i32, i32) {
    %c0_i32 = arith.constant 0 : i32
    %c0_i32_0 = arith.constant 0 : i32
    %c0_i32_1 = arith.constant 0 : i32
    return %c0_i32, %c0_i32_0 : i32, i32
  }
  func.func @transform_19(%arg0: i32) -> (i32, i32) {
    %c0_i32 = arith.constant 0 : i32
    %c0_i32_0 = arith.constant 0 : i32
    return %arg0, %c0_i32 : i32, i32
  }
}

</mosaic_0001>

<bundles_post_ra>
// kernel: tpu_custom_call.1
= control target key start
LH: loop header
LB: loop body
LE: loop exit
PB: predicated region body
PF: predicated region fallthrough
CT: control target
= control target key end

     0   :  { %s8625_s0 = inlined_call_operand.hbm [shape: bf16[8,32], index: 0, kind: input, shape index: {}]   ;;  %s8626_s1 = inlined_call_operand.vmem [shape: f32[8,1], index: 1, kind: input, shape index: {}]   ;;  %s8627_s2 = inlined_call_operand.hbm [shape: bf16[32,128], index: 2, kind: input, shape index: {}]   ;;  %s8628_s3 = inlined_call_operand.hbm [shape: f32[1,128], index: 3, kind: input, shape index: {}]   ;;  %s8629_s4 = inlined_call_operand.hbm [shape: f32[1,128], index: 4, kind: input, shape index: {}]   ;;  %s8630_s5 = inlined_call_operand.hbm [shape: f32[1,128], index: 5, kind: input, shape index: {}]   ;;  %s8631_s6 = inlined_call_operand.vmem [shape: bf16[128,128], index: 6, kind: input, shape index: {}]   ;;  %s8632_s7 = inlined_call_operand.hbm [shape: bf16[6,128,128], index: 7, kind: input, shape index: {}]   ;;  %s8633_s8 = inlined_call_operand.vmem [shape: f32[6,1,128], index: 8, kind: input, shape index: {}]   ;;  %s8634_s9 = inlined_call_operand.vmem [shape: f32[6,1,128], index: 9, kind: input, shape index: {}]   ;;  %s8635_s10 = inlined_call_operand.vmem [shape: f32[6,1,128], index: 10, kind: input, shape index: {}]   ;;  %s8636_s11 = inlined_call_operand.hbm [shape: bf16[6,128,512], index: 11, kind: input, shape index: {}]   ;;  %s8637_s12 = inlined_call_operand.hbm [shape: f32[6,1,512], index: 12, kind: input, shape index: {}]   ;;  %s8638_s13 = inlined_call_operand.hbm [shape: bf16[6,512,128], index: 13, kind: input, shape index: {}]   ;;  %s8639_s14 = inlined_call_operand.hbm [shape: f32[6,1,128], index: 14, kind: input, shape index: {}]   ;;  %s8640_s15 = inlined_call_operand.hbm [shape: f32[6,1,128], index: 15, kind: input, shape index: {}]   ;;  %s8641_s16 = inlined_call_operand.vmem [shape: f32[6,1,128], index: 16, kind: input, shape index: {}]   ;;  %s8642_s17 = inlined_call_operand.vmem [shape: bf16[128,16], index: 17, kind: input, shape index: {}]   ;;  %s8643_s18 = inlined_call_operand.vmem [shape: f32[1,16], index: 18, kind: input, shape index: {}]   ;;  %s8644_s19 = inlined_call_operand.hbm [shape: f32[8,16], index: 19, kind: output, shape index: {}]  }
   0x1   :  { %8646 = sst [smem:[#allocation28_spill]] %s8625_s0 }
   0x2   :  { %8647 = sst [smem:[#allocation29_spill]] %s8626_s1 }
   0x3   :  { %8648 = sst [smem:[#allocation30_spill]] %s8627_s2 }
   0x4   :  { %8649 = sst [smem:[#allocation31_spill]] %s8628_s3 }
   0x5   :  { %24 = vsyncpa [#allocation3], 0 }
   0x6   :  { %25 = vsyncpa [#allocation6], 0 }
   0x7   :  { %26 = vsyncpa [#allocation9], 0 }
   0x8   :  { %27 = vsyncpa [#allocation12], 0 }
   0x9   :  { %28 = vsyncpa [#allocation15], 0 }
   0xa   :  { %29 = vsyncpa [#allocation18], 0  ;;  %s8650_s20 = sld [smem:[#allocation30_spill]] }
  0x10   :  { %s48_s21 = sshll.u32 %s8650_s20, 4  ;;  %s49_s21 = int_to_ptr.hbm [resolvable:$true] %s48_s21 }
  0x11   :  { %30 = vsyncpa [#allocation4], 0  ;;  %s8071_s1 = smov [#allocation5]   ;;  %s73_s24 = sshll.u32 %s8629_s4, 4  ;;  %s74_s24 = int_to_ptr.hbm [resolvable:$true] %s73_s24 }
  0x12   :  { %s50_s22 = sshll.u32 %s8071_s1, 4  ;;  %s8072_s25 = smov 64   ;;  %s51_s22 = int_to_ptr.vmem [resolvable:$true] %s50_s22 }
  0x13   :  { %s8073_s3 = smov 4   ;;  %s8074_s26 = smov [#allocation8]  }
  0x14   :  { %56 = dma.hbm_to_vmem [thread:$0]  %s49_s21, 256, %s51_s22, [#allocation6], %s8072_s25, %s8072_s25, %s8073_s3  }
  0x15   :  { %s75_s27 = sshll.u32 %s8074_s26, 4  ;;  %s96_s0 = sshll.u32 %s8632_s7, 4  ;;  %s76_s27 = int_to_ptr.vmem [resolvable:$true] %s75_s27  ;;  %s97_s0 = int_to_ptr.hbm [resolvable:$true] %s96_s0 }
  0x16   :  { %78 = dma.hbm_to_vmem [thread:$0]  %s74_s24, 16, %s76_s27, [#allocation9]  }
  0x17   :  { %s128_s4 = sshll.u32 %s8637_s12, 4  ;;  %s8075_s1 = smov [#allocation11]   ;;  %s129_s4 = int_to_ptr.hbm [resolvable:$true] %s128_s4 }
  0x18   :  { %s98_s2 = sshll.u32 %s8075_s1, 4  ;;  %s8076_s21 = smov [#allocation14]   ;;  %s99_s2 = int_to_ptr.vmem [resolvable:$true] %s98_s2 }
  0x19   :  { %104 = dma.hbm_to_vmem [thread:$0]  %s97_s0, 6144, %s99_s2, [#allocation12], %s8072_s25, %s8072_s25, %s8073_s3  }
  0x1a   :  { %s130_s22 = sshll.u32 %s8076_s21, 4  ;;  %s154_s26 = sshll.u32 %s8639_s14, 4  ;;  %s131_s22 = int_to_ptr.vmem [resolvable:$true] %s130_s22  ;;  %s155_s26 = int_to_ptr.hbm [resolvable:$true] %s154_s26 }
  0x1b   :  { %136 = dma.hbm_to_vmem [thread:$0]  %s129_s4, 384, %s131_s22, [#allocation15], %s8072_s25, %s8072_s25, %s8073_s3  }
  0x1c   :  { %s8077_s12 = smov [#allocation17]   ;;  %s8651_s29 = sld [smem:[#allocation28_spill]] }
  0x1d   :  { %s156_s24 = sshll.u32 %s8077_s12, 4  ;;  %s8078_s0 = smov 16   ;;  %s157_s24 = int_to_ptr.vmem [resolvable:$true] %s156_s24 }
  0x1e   :  { %s8645_s20 = smov 1   ;;  %s8080_s14 = smov [#allocation2]  }
  0x1f   :  { %162 = dma.hbm_to_vmem [thread:$0]  %s155_s26, 96, %s157_s24, [#allocation18], %s8078_s0, %s8078_s0, %s8645_s20  }
  0x20   :  { %s38_s1 = sshll.u32 %s8080_s14, 4  ;;  %s8652_s4 = sld [smem:[#allocation31_spill]]  ;;  %s39_s1 = int_to_ptr.vmem [resolvable:$true] %s38_s1 }
  0x21   :  { %s84_s12 = sshll.u32 %s8630_s5, 4  ;;  %s8081_s27 = smov [#allocation7]   ;;  %s85_s12 = int_to_ptr.hbm [resolvable:$true] %s84_s12 }
  0x22   :  { %s36_s30 = sshll.u32 %s8651_s29, 4  ;;  %s64_s28 = sshll.u32 %s8081_s27, 4  ;;  %s37_s30 = int_to_ptr.hbm [resolvable:$true] %s36_s30  ;;  %s65_s28 = int_to_ptr.vmem [resolvable:$true] %s64_s28 }
  0x23   :  { %41 = dma.hbm_to_vmem [thread:$0]  %s37_s30, 64, %s39_s1, [#allocation3]  }
  0x24   :  { %s8082_s26 = smov [#allocation10]   ;;  %s115_s20 = sshll.u32 %s8636_s11, 4  ;;  %s116_s20 = int_to_ptr.hbm [resolvable:$true] %s115_s20 }
  0x25   :  { %s86_s24 = sshll.u32 %s8082_s26, 4  ;;  %s8083_s2 = smov [#allocation13]   ;;  %s87_s24 = int_to_ptr.vmem [resolvable:$true] %s86_s24 }
  0x26   :  { %s62_s22 = sshll.u32 %s8652_s4, 4  ;;  %s117_s30 = sshll.u32 %s8083_s2, 4  ;;  %s63_s22 = int_to_ptr.hbm [resolvable:$true] %s62_s22  ;;  %s118_s30 = int_to_ptr.vmem [resolvable:$true] %s117_s30 }
  0x27   :  { %67 = dma.hbm_to_vmem [thread:$0]  %s63_s22, 16, %s65_s28, [#allocation6]  }
  0x28   :  { %89 = dma.hbm_to_vmem [thread:$0]  %s85_s12, 16, %s87_s24, [#allocation9]  }
  0x29   :  { %s141_s5 = sshll.u32 %s8638_s13, 4  ;;  %s8084_s4 = smov 256   ;;  %s142_s5 = int_to_ptr.hbm [resolvable:$true] %s141_s5 }
  0x2a   :  { %123 = dma.hbm_to_vmem [thread:$0]  %s116_s20, 24576, %s118_s30, [#allocation12], %s8084_s4, %s8084_s4, %s8078_s0  }
  0x2b   :  { %s167_s7 = sshll.u32 %s8640_s15, 4  ;;  %s8085_s27 = smov [#allocation16]   ;;  %s168_s7 = int_to_ptr.hbm [resolvable:$true] %s167_s7 }
  0x2c   :  { %s143_s11 = sshll.u32 %s8085_s27, 4  ;;  %s8086_s12 = smov [#allocation19]   ;;  %s144_s11 = int_to_ptr.vmem [resolvable:$true] %s143_s11 }
  0x2d   :  { %149 = dma.hbm_to_vmem [thread:$0]  %s142_s5, 24576, %s144_s11, [#allocation15], %s8072_s25, %s8072_s25, %s8073_s3  }
  0x2e   :  { %s169_s28 = sshll.u32 %s8086_s12, 4  ;;  %s8653_s13 = smov 1   ;;  %s170_s28 = int_to_ptr.vmem [resolvable:$true] %s169_s28 }
  0x2f   :  { %175 = dma.hbm_to_vmem [thread:$0]  %s168_s7, 96, %s170_s28, [#allocation18], %s8078_s0, %s8078_s0, %s8653_s13  }
  0x30   :  { %8057 = dma.done.wait [#allocation3], 64  }
  0x31   :  { %8058 = vsyncadd [#allocation3], 4294967232 }
  0x32   :  { %8059 = dma.done.wait [#allocation6], 272  }
  0x33   :  { %8060 = vsyncadd [#allocation6], 4294967024 }
  0x34   :  { %8061 = dma.done.wait [#allocation9], 32  }
  0x35   :  { %8062 = vsyncadd [#allocation9], 4294967264 }
  0x36   :  { %8063 = dma.done.wait [#allocation12], 30720  }
  0x37   :  { %8064 = vsyncadd [#allocation12], 4294936576 }
  0x38   :  { %8065 = dma.done.wait [#allocation15], 24960  }
  0x39   :  { %8066 = vsyncadd [#allocation15], 4294942336 }
  0x3a   :  { %8067 = dma.done.wait [#allocation18], 192  }
  0x3b   :  { %8068 = vsyncadd [#allocation18], 4294967104  ;;  %v8087_v0 = vmov 0   ;;  %s8654_s3 = sld [smem:[#allocation29_spill]]  ;;  %v7192_v2 = vld [vmem:[%s8631_s6 + $0x38] sm:$0xff]  ;;  %v7191_v3 = vld [vmem:[%s8631_s6 + $0x30] sm:$0xff] }
  0x3c   :  { %7652 = vset.pattern.permute.xlu0 %v8087_v0  ;;  %355 = vmatpush.bf16.msra.mxu1 %v7192_v2  ;;  %v7190_v4 = vld [vmem:[%s8631_s6 + $0x28] sm:$0xff]  ;;  %v7189_v5 = vld [vmem:[%s8631_s6 + $0x20] sm:$0xff]  ;;  %v7188_v8 = vld [vmem:[%s8631_s6 + $0x18] sm:$0xff]  ;;  %vm248_vm0 = vcmask 261120   ;;  %v8088_v49 = vmov 128.0   ;;  %s8089_s2 = smov [#allocation20]  }
  0x3d   :  { %v7184_v6 = vld [vmem:[#allocation5 + $0x8] sm:$0xff]  ;;  %v7183_v7 = vld [vmem:[#allocation5] sm:$0xff]  ;;  %v227_v9 = vld [vmem:[#allocation2] sm:$0xf]  ;;  %s5345_s30 = sshll.u32 %s8089_s2, 4  ;;  %s5346_s30 = int_to_ptr.vmem [resolvable:$true] %s5345_s30 }
  0x3e   :  { %258 = vmatpush.bf16.msra.mxu0 %v7184_v6  ;;  %v7187_v10 = vld [vmem:[%s8631_s6 + $0x10] sm:$0xff]  ;;  %v7186_v11 = vld [vmem:[%s8631_s6 + $0x8] sm:$0xff]  ;;  %v7185_v12 = vld [vmem:[%s8631_s6] sm:$0xff] }
  0x3f   :  { %v7200_v13 = vld [vmem:[#allocation11 + $0x38] sm:$0xff]  ;;  %v7199_v15 = vld [vmem:[#allocation11 + $0x30] sm:$0xff]  ;;  %v7198_v19 = vld [vmem:[#allocation11 + $0x28] sm:$0xff] }
  0x40   :  { %356 = vmatpush.bf16.msra.mxu1 %v7191_v3  ;;  %v7653_v14 = vld [vmem:[#allocation8] ss:$0 sm:$0xff]  ;;  %438 = vmatpush.bf16.msra.mxu2 %v7200_v13  ;;  %v7654_v16 = vld [vmem:[#allocation10] ss:$0 sm:$0xff]  ;;  %v7197_v22 = vld [vmem:[#allocation11 + $0x20] sm:$0xff] }
  0x41   :  { %v265_v1 = vld [vmem:[%s8654_s3] sm:$0xff]  ;;  %v7196_v32 = vld [vmem:[#allocation11 + $0x18] sm:$0xff]  ;;  %v7195_v33 = vld [vmem:[#allocation11 + $0x10] sm:$0xff] }
  0x42   :  { %269 = vperm.xlu0 %7652, %v265_v1   ;;  %259 = vmatpush.bf16.msra.mxu0 %v7183_v7  ;;  %v7194_v34 = vld [vmem:[#allocation11 + $0x8] sm:$0xff]  ;;  %v7193_v37 = vld [vmem:[#allocation11] sm:$0xff]  ;;  %v7655_v38 = vld [vmem:[#allocation7] ss:$0 sm:$0xff] }
  0x43   :  { %v7656_v44 = vld [vmem:[%s8633_s8] ss:$0 sm:$0xff]  ;;  %v5549_v50 = vld [vmem:[#allocation13 + $0xe0] sm:$0xf]  ;;  %v7231_v51 = vld [vmem:[#allocation13 + $0xec] sm:$0xf0] }
  0x44   :  { %357 = vmatpush.bf16.msra.mxu1 %v7190_v4  ;;  %439 = vmatpush.bf16.msra.mxu2 %v7199_v15  ;;  %v7229_v52 = vld [vmem:[#allocation13 + $0xe4] sm:$0xf]  ;;  %v5550_v53 = vor.u32 %v7231_v51, %v5549_v50  ;;  %v5551_v54 = vld [vmem:[#allocation13 + $0xf0] sm:$0xf0]  ;;  %v5557_v55 = vld [vmem:[#allocation13 + $0xe8] sm:$0xf] }
  0x45   :  { %5370 = vmatmul.msk.bf16.vlgmr.msra.gmra.mxu0 %vm248_vm0, %v227_v9  ;;  %v7232_v56 = vld [vmem:[#allocation13 + $0xf4] sm:$0xf0]  ;;  %v5554_v57 = vor.u32 %v7229_v52, %v5551_v54  ;;  %v7230_v59 = vld [vmem:[#allocation13 + $0xec] sm:$0xf]  ;;  %v5559_v60 = vld [vmem:[#allocation13 + $0xf8] sm:$0xf0] }
  0x46   :  { %v5558_v58 = vor.u32 %v7232_v56, %v5557_v55  ;;  %692 = vmatpush.bf16.msra.mxu3 %v5550_v53  ;;  %v5562_v61 = vor.u32 %v7230_v59, %v5559_v60  ;;  %v7227_v9 = vld [vmem:[#allocation13 + $0xcc] sm:$0xf0]  ;;  %v5541_v13 = vld [vmem:[#allocation13 + $0xc8] sm:$0xf]  ;;  %v7216_v50 = vld [vmem:[#allocation13 + $0x74] sm:$0xf0] }
  0x47   :  { %705 = vmatpush.bf16.msrb.mxu0 %v5554_v57  ;;  %v7214_v53 = vld [vmem:[#allocation13 + $0x6c] sm:$0xf]  ;;  %v5495_v54 = vld [vmem:[#allocation13 + $0x78] sm:$0xf0]  ;;  %v5469_v56 = vld [vmem:[#allocation13 + $0x40] sm:$0xf] }
  0x48   :  { %358 = vmatpush.bf16.msra.mxu1 %v7189_v5  ;;  %440 = vmatpush.bf16.msra.mxu2 %v7198_v19  ;;  %v5498_v55 = vor.u32 %v7214_v53, %v5495_v54  ;;  %v7211_v57 = vld [vmem:[#allocation13 + $0x4c] sm:$0xf0]  ;;  %v5471_v60 = vld [vmem:[#allocation13 + $0x50] sm:$0xf0] }
  0x49   :  { %v5470_v59 = vor.u32 %v7211_v57, %v5469_v56  ;;  %v7239_v56 = vld [vmem:[#allocation16 + $0x30] sm:$0xff] }
  0x4a   :  { %v7247_v57 = vld [vmem:[#allocation16 + $0x70] sm:$0xff] }
  0x4c   :  { %359 = vmatpush.bf16.msra.mxu1 %v7188_v8  ;;  %441 = vmatpush.bf16.msra.mxu2 %v7197_v22  ;;  %v5533_v8 = vld [vmem:[#allocation13 + $0xc0] sm:$0xf]  ;;  %v7221_v22 = vld [vmem:[#allocation13 + $0xa4] sm:$0xf] }
  0x50   :  { %360 = vmatpush.bf16.msra.mxu1 %v7187_v10  ;;  %442 = vmatpush.bf16.msra.mxu2 %v7196_v32  ;;  %v7225_v10 = vld [vmem:[#allocation13 + $0xc4] sm:$0xf]  ;;  %v5501_v32 = vld [vmem:[#allocation13 + $0x80] sm:$0xf] }
  0x54   :  { %361 = vmatpush.bf16.msra.mxu1 %v7186_v11  ;;  %443 = vmatpush.bf16.msra.mxu2 %v7195_v33  ;;  %v5534_v11 = vor.u32 %v7227_v9, %v5533_v8  ;;  %v7219_v33 = vld [vmem:[#allocation13 + $0x8c] sm:$0xf0]  ;;  %v7205_v8 = vld [vmem:[#allocation13 + $0x24] sm:$0xf] }
  0x56   :  { %693 = vmatpush.bf16.msra.mxu3 %v5534_v11  ;;  %v5461_v11 = vld [vmem:[#allocation13 + $0x28] sm:$0xf] }
  0x58   :  { %362 = vmatpush.bf16.msra.mxu1 %v7185_v12  ;;  %444 = vmatpush.bf16.msra.mxu2 %v7194_v34  ;;  %v5535_v12 = vld [vmem:[#allocation13 + $0xd0] sm:$0xf0]  ;;  %v7217_v34 = vld [vmem:[#allocation13 + $0x84] sm:$0xf] }
  0x59   :  { %v5538_v15 = vor.u32 %v7225_v10, %v5535_v12  ;;  %v5455_v10 = vld [vmem:[#allocation13 + $0x30] sm:$0xf0]  ;;  %v7208_v12 = vld [vmem:[#allocation13 + $0x34] sm:$0xf0] }
  0x5b   :  { %706 = vmatpush.bf16.msrb.mxu0 %v5538_v15  ;;  %v7206_v15 = vld [vmem:[#allocation13 + $0x2c] sm:$0xf] }
  0x5c   :  { %445 = vmatpush.bf16.msra.mxu2 %v7193_v37  ;;  %718 = vmatpush.bf16.msrb.mxu1 %v5558_v58  ;;  %v5509_v37 = vld [vmem:[#allocation13 + $0x88] sm:$0xf]  ;;  %v7209_v58 = vld [vmem:[#allocation13 + $0x44] sm:$0xf] }
  0x60   :  { %731 = vmatpush.bf16.msrb.mxu2 %v5562_v61  ;;  %v5477_v61 = vld [vmem:[#allocation13 + $0x48] sm:$0xf] }
  0xb4   :  { %v270_v17 = vpop.permute.xlu0 %269 }
  0xb5   :  { %v275_v18 = vmul.f32 %v7653_v14, %v270_v17  ;;  %v7228_v14 = vld [vmem:[#allocation13 + $0xd4] sm:$0xf0]  ;;  %v7226_v17 = vld [vmem:[#allocation13 + $0xcc] sm:$0xf] }
  0xb7   :  { %v280_v20 = vadd.f32 %v7654_v16, %v275_v18  ;;  %v5542_v16 = vor.u32 %v7228_v14, %v5541_v13  ;;  %v5543_v18 = vld [vmem:[#allocation13 + $0xd8] sm:$0xf0]  ;;  %v5458_v13 = vor.u32 %v7205_v8, %v5455_v10  ;;  %v5462_v14 = vor.u32 %v7208_v12, %v5461_v11  ;;  %v7246_v8 = vld [vmem:[#allocation16 + $0x68] sm:$0xff] }
  0xb8   :  { %v5546_v19 = vor.u32 %v7226_v17, %v5543_v18  ;;  %v5437_v17 = vld [vmem:[#allocation13] sm:$0xf] }
  0xb9   :  { %v281_v21 = vmul.f32 %v280_v20, %v280_v20  ;;  %v286_v28 = vmul.f32 0.5, %v280_v20  ;;  %719 = vmatpush.bf16.msrb.mxu1 %v5542_v16  ;;  %v5463_v16 = vld [vmem:[#allocation13 + $0x38] sm:$0xf0]  ;;  %v7262_v11 = vld [vmem:[#allocation16 + $0xe8] sm:$0xff] }
  0xba   :  { %732 = vmatpush.bf16.msrb.mxu2 %v5546_v19  ;;  %v5466_v18 = vor.u32 %v7206_v15, %v5463_v16  ;;  %v7203_v19 = vld [vmem:[#allocation13 + $0xc] sm:$0xf0] }
  0xbb   :  { %v282_v23 = vmul.f32 %v281_v21, %v280_v20  ;;  %v7223_v21 = vld [vmem:[#allocation13 + $0xac] sm:$0xf0] }
  0xbd   :  { %v283_v24 = vmul.f32 0.044715, %v282_v23 }
  0xbf   :  { %v284_v25 = vadd.f32 %v283_v24, %v280_v20  ;;  %v5517_v20 = vld [vmem:[#allocation13 + $0xa0] sm:$0xf]  ;;  %v5519_v24 = vld [vmem:[#allocation13 + $0xb0] sm:$0xf0] }
  0xc0   :  { %v5518_v23 = vor.u32 %v7223_v21, %v5517_v20  ;;  %v7201_v20 = vld [vmem:[#allocation13 + $0x4] sm:$0xf]  ;;  %v5439_v21 = vld [vmem:[#allocation13 + $0x10] sm:$0xf0] }
  0xc1   :  { %v285_v26 = vmul.f32 0.7978846, %v284_v25  ;;  %v5525_v25 = vld [vmem:[#allocation13 + $0xa8] sm:$0xf] }
  0xc2   :  { %v261_v35 = vpop.f32.mrf.mxu0  ;;  %694 = vmatpush.bf16.msra.mxu3 %v5518_v23  ;;  %v5442_v23 = vor.u32 %v7201_v20, %v5439_v21  ;;  %v7253_v20 = vld [vmem:[#allocation16 + $0xa0] sm:$0xff] }
  0xc3   :  { %7693 = vtanh.f32 %v285_v26  ;;  %v262_v39 = vadd.f32 %v7655_v38, %v261_v35  ;;  %v7224_v26 = vld [vmem:[#allocation13 + $0xb4] sm:$0xf0]  ;;  %v5502_v35 = vor.u32 %v7219_v33, %v5501_v32 }
  0xc4   :  { %7695 = vrcp.f32 %v8088_v49  ;;  %v7220_v38 = vld [vmem:[#allocation13 + $0x94] sm:$0xf0]  ;;  %v5493_v49 = vld [vmem:[#allocation13 + $0x68] sm:$0xf] }
  0xc5   :  { %v5494_v52 = vor.u32 %v7216_v50, %v5493_v49  ;;  %v7240_v49 = vld [vmem:[#allocation16 + $0x38] sm:$0xff] }
  0xc6   :  { %695 = vmatpush.bf16.msra.mxu3 %v5502_v35  ;;  %v7248_v50 = vld [vmem:[#allocation16 + $0x78] sm:$0xff] }
  0xc9   :  { %v7694_v27 = vpop.eup %7693 }
  0xca   :  { %v288_v29 = vadd.f32 1.0, %v7694_v27  ;;  %v263_v36 = vpop.f32.mrf.mxu0  ;;  %v7696_v62 = vpop.eup %7695  ;;  %v5522_v27 = vor.u32 %v7221_v22, %v5519_v24  ;;  %v5438_v22 = vor.u32 %v7203_v19, %v5437_v17  ;;  %v5445_v24 = vld [vmem:[#allocation13 + $0x8] sm:$0xf]  ;;  %v7245_v19 = vld [vmem:[#allocation16 + $0x60] sm:$0xff] }
  0xcb   :  { %v457_v63 = vmul.f32 128.0, %v7696_v62  ;;  %vm461_vm1 = vweird.f32 %v7696_v62  ;;  %v5503_v36 = vld [vmem:[#allocation13 + $0x90] sm:$0xf0] }
  0xcc   :  { %v289_v30 = vmul.f32 %v288_v29, %v286_v28  ;;  %v5526_v28 = vor.u32 %v7224_v26, %v5525_v25  ;;  %v7222_v29 = vld [vmem:[#allocation13 + $0xac] sm:$0xf]  ;;  %707 = vmatpush.bf16.msrb.mxu0 %v5522_v27  ;;  %v7204_v25 = vld [vmem:[#allocation13 + $0x14] sm:$0xf0] }
  0xcd   :  { %v458_v0 = vsub.f32 1.0, %v457_v63  ;;  %v5474_v63 = vor.u32 %v7209_v58, %v5471_v60  ;;  %v7202_v26 = vld [vmem:[#allocation13 + $0xc] sm:$0xf]  ;;  %v5446_v27 = vor.u32 %v7204_v25, %v5445_v24  ;;  %v7261_v24 = vld [vmem:[#allocation16 + $0xe0] sm:$0xff] }
  0xce   :  { %v290_v31 = vpack.c.bf16 %v289_v30, %v289_v30  ;;  %v5527_v30 = vld [vmem:[#allocation13 + $0xb8] sm:$0xf0]  ;;  %720 = vmatpush.bf16.msrb.mxu1 %v5526_v28  ;;  %v7255_v58 = vld [vmem:[#allocation16 + $0xb0] sm:$0xff] }
  0xcf   :  { %v459_v1 = vmul.f32 %v7696_v62, %v458_v0  ;;  %v5447_v28 = vld [vmem:[#allocation13 + $0x18] sm:$0xf0]  ;;  %v7263_v60 = vld [vmem:[#allocation16 + $0xf0] sm:$0xff] }
  0xd0   :  { %363 = vmatmul.bf16.vlgmr.msra.gmra.mxu1 %v290_v31  ;;  %v5530_v31 = vor.u32 %v7222_v29, %v5527_v30  ;;  %v5450_v29 = vor.u32 %v7202_v26, %v5447_v28  ;;  %v7244_v28 = vld [vmem:[#allocation16 + $0x58] sm:$0xff] }
  0xd1   :  { %v460_v2 = vadd.f32 %v7696_v62, %v459_v1  ;;  %v7210_v1 = vld [vmem:[#allocation13 + $0x4c] sm:$0xf] }
  0xd2   :  { %733 = vmatpush.bf16.msrb.mxu2 %v5530_v31 }
  0xd3   :  { %v8272_v3 = vsel %vm461_vm1, %v7696_v62, %v460_v2  ;;  %v7212_v62 = vld [vmem:[#allocation13 + $0x54] sm:$0xf0]  ;;  %v5479_v2 = vld [vmem:[#allocation13 + $0x58] sm:$0xf0] }
  0xd4   :  { %v5478_v0 = vor.u32 %v7212_v62, %v5477_v61 }
 0x14d   :  { %v364_v40 = vpop.f32.mrf.mxu1 }
 0x14e   :  { %v368_v41 = vadd.f32 %v364_v40, %v262_v39  ;;  %v5506_v39 = vor.u32 %v7217_v34, %v5503_v36  ;;  %v5510_v40 = vor.u32 %v7220_v38, %v5509_v37 }
 0x150   :  { %v369_v42 = vpack.c.bf16 %v368_v41, %v368_v41  ;;  %708 = vmatpush.bf16.msrb.mxu0 %v5506_v39  ;;  %721 = vmatpush.bf16.msrb.mxu1 %v5510_v40  ;;  %v7657_v39 = vld [vmem:[%s8634_s9] ss:$0 sm:$0xff] }
 0x152   :  { %446 = vmatmul.bf16.vlgmr.msra.gmra.mxu2 %v369_v42  ;;  %v5511_v42 = vld [vmem:[#allocation13 + $0x98] sm:$0xf0] }
 0x154   :  { %722 = vmatpush.bf16.msrb.mxu1 %v5494_v52 }
 0x155   :  { %v366_v43 = vpop.f32.mrf.mxu1 }
 0x158   :  { %723 = vmatpush.bf16.msrb.mxu1 %v5478_v0 }
 0x15c   :  { %724 = vmatpush.bf16.msrb.mxu1 %v5462_v14 }
 0x160   :  { %725 = vmatpush.bf16.msrb.mxu1 %v5446_v27  ;;  %v7236_v27 = vld [vmem:[#allocation16 + $0x18] sm:$0xff] }
 0x1d5   :  { %v447_v45 = vpop.f32.mrf.mxu2 }
 0x1d6   :  { %v448_v46 = vadd.f32 %v7656_v44, %v447_v45  ;;  %v5485_v44 = vld [vmem:[#allocation13 + $0x60] sm:$0xf]  ;;  %v7215_v45 = vld [vmem:[#allocation13 + $0x6c] sm:$0xf0] }
 0x1d8   :  { %v451_v47 = vadd.f32 %v448_v46, %v368_v41  ;;  %v7218_v41 = vld [vmem:[#allocation13 + $0x8c] sm:$0xf]  ;;  %v7213_v46 = vld [vmem:[#allocation13 + $0x64] sm:$0xf] }
 0x1d9   :  { %v5514_v43 = vor.u32 %v7218_v41, %v5511_v42  ;;  %v7658_v42 = vld [vmem:[%s8635_s10] ss:$0 sm:$0xff] }
 0x1da   :  { %454 = vadd.xlane.f32.xlu0 %v451_v47 }
 0x1db   :  { %734 = vmatpush.bf16.msrb.mxu2 %v5514_v43 }
 0x1dd   :  { %v449_v48 = vpop.f32.mrf.mxu2 }
 0x1de   :  { %v5487_v48 = vld [vmem:[#allocation13 + $0x70] sm:$0xf0] }
 0x1df   :  { %v5490_v51 = vor.u32 %v7213_v46, %v5487_v48  ;;  %735 = vmatpush.bf16.msrb.mxu2 %v5498_v55  ;;  %v522_v46 = vld [vmem:[#allocation14] sm:$0xf] }
 0x1e0   :  { %v525_v52 = vperm.slane %v522_v46, 1  ;;  %v524_v53 = vperm.slane %v522_v46, 0  ;;  %v526_v54 = vperm.slane %v522_v46, 2  ;;  %v527_v55 = vperm.slane %v522_v46, 3 }
 0x1e1   :  { %709 = vmatpush.bf16.msrb.mxu0 %v5490_v51  ;;  %v7264_v51 = vld [vmem:[#allocation16 + $0xf8] sm:$0xff] }
 0x1e5   :  { %710 = vmatpush.bf16.msrb.mxu0 %v5474_v63 }
 0x1e9   :  { %711 = vmatpush.bf16.msrb.mxu0 %v5458_v13 }
 0x1ed   :  { %712 = vmatpush.bf16.msrb.mxu0 %v5442_v23 }
 0x1f1   :  { %1111 = vmatpush.bf16.msra.mxu0 %v7248_v50  ;;  %v7242_v50 = vld [vmem:[#allocation16 + $0x48] sm:$0xff] }
 0x1f5   :  { %1112 = vmatpush.bf16.msra.mxu0 %v7247_v57 }
 0x1f9   :  { %1113 = vmatpush.bf16.msra.mxu0 %v7246_v8 }
 0x1fd   :  { %1114 = vmatpush.bf16.msra.mxu0 %v7245_v19 }
 0x201   :  { %1115 = vmatpush.bf16.msra.mxu0 %v7244_v28 }
 0x24d   :  { %v455_v4 = vpop.xlane.xlu0 %454 }
 0x24e   :  { %v463_v5 = vmul.f32 %v8272_v3, %v455_v4  ;;  %v5482_v4 = vor.u32 %v7210_v1, %v5479_v2 }
 0x250   :  { %v8275_v6 = vsub.f32 %v451_v47, %v463_v5  ;;  %v5486_v47 = vor.u32 %v7215_v45, %v5485_v44  ;;  %v5453_v5 = vld [vmem:[#allocation13 + $0x20] sm:$0xf]  ;;  %736 = vmatpush.bf16.msrb.mxu2 %v5482_v4 }
 0x252   :  { %v465_v7 = vmul.f32 %v8275_v6, %v8275_v6  ;;  %696 = vmatpush.bf16.msra.mxu3 %v5486_v47 }
 0x254   :  { %466 = vadd.xlane.f32.xlu1 %v465_v7  ;;  %v7207_v7 = vld [vmem:[#allocation13 + $0x2c] sm:$0xf0]  ;;  %737 = vmatpush.bf16.msrb.mxu2 %v5466_v18  ;;  %v7237_v18 = vld [vmem:[#allocation16 + $0x20] sm:$0xff] }
 0x255   :  { %v5454_v9 = vor.u32 %v7207_v7, %v5453_v5  ;;  %v7238_v7 = vld [vmem:[#allocation16 + $0x28] sm:$0xff] }
 0x256   :  { %697 = vmatpush.bf16.msra.mxu3 %v5470_v59 }
 0x258   :  { %738 = vmatpush.bf16.msrb.mxu2 %v5450_v29 }
 0x25a   :  { %698 = vmatpush.bf16.msra.mxu3 %v5454_v9  ;;  %v7254_v9 = vld [vmem:[#allocation16 + $0xa8] sm:$0xff] }
 0x25c   :  { %1137 = vmatpush.bf16.msra.mxu2 %v7264_v51 }
 0x25e   :  { %699 = vmatpush.bf16.msra.mxu3 %v5438_v22 }
 0x260   :  { %1138 = vmatpush.bf16.msra.mxu2 %v7263_v60  ;;  %v7241_v60 = vld [vmem:[#allocation16 + $0x40] sm:$0xff] }
 0x262   :  { %1098 = vmatpush.bf16.msrb.mxu3 %v7240_v49  ;;  %v7234_v49 = vld [vmem:[#allocation16 + $0x8] sm:$0xff] }
 0x264   :  { %1139 = vmatpush.bf16.msra.mxu2 %v7262_v11 }
 0x266   :  { %1099 = vmatpush.bf16.msrb.mxu3 %v7239_v56 }
 0x268   :  { %1140 = vmatpush.bf16.msra.mxu2 %v7261_v24 }
 0x26a   :  { %1100 = vmatpush.bf16.msrb.mxu3 %v7238_v7 }
 0x26e   :  { %1101 = vmatpush.bf16.msrb.mxu3 %v7237_v18 }
 0x272   :  { %1102 = vmatpush.bf16.msrb.mxu3 %v7236_v27 }
 0x2c7   :  { %v467_v30 = vpop.xlane.xlu1 %466 }
 0x2c8   :  { %v468_v31 = vmul.f32 %v467_v30, %v8272_v3  ;;  %v7252_v30 = vld [vmem:[#allocation16 + $0x98] sm:$0xff] }
 0x2ca   :  { %v469_v32 = vadd.f32 1e-05, %v468_v31  ;;  %v7260_v31 = vld [vmem:[#allocation16 + $0xd8] sm:$0xff] }
 0x2cb   :  { %1141 = vmatpush.bf16.msra.mxu2 %v7260_v31 }
 0x2cc   :  { %7697 = vrsqrt.f32 %v469_v32  ;;  %vm476_vm3 = vweird.f32 %v469_v32 }
 0x2d2   :  { %v7698_v33 = vpop.eup %7697 }
 0x2d3   :  { %v471_v34 = vmul.f32 %v7698_v33, %v469_v32  ;;  %vm477_vm2 = vweird.f32 %v7698_v33 }
 0x2d4   :  { %vm478_vm4 = vmor %vm476_vm3, %vm477_vm2 }
 0x2d5   :  { %v472_v35 = vmul.f32 %v7698_v33, %v471_v34 }
 0x2d7   :  { %v473_v36 = vmul.f32 0.5, %v472_v35 }
 0x2d9   :  { %v474_v37 = vsub.f32 1.5, %v473_v36 }
 0x2db   :  { %v475_v38 = vmul.f32 %v7698_v33, %v474_v37 }
 0x2dd   :  { %v479_v40 = vsel %vm478_vm4, %v7698_v33, %v475_v38  ;;  %v7235_v38 = vld [vmem:[#allocation16 + $0x10] sm:$0xff] }
 0x2de   :  { %v480_v41 = vmul.f32 %v479_v40, %v8275_v6  ;;  %v7256_v6 = vld [vmem:[#allocation16 + $0xb8] sm:$0xff]  ;;  %1103 = vmatpush.bf16.msrb.mxu3 %v7235_v38 }
 0x2df   :  { %1124 = vmatpush.bf16.msra.mxu1 %v7256_v6 }
 0x2e0   :  { %v484_v43 = vmul.f32 %v7657_v39, %v480_v41  ;;  %v7243_v39 = vld [vmem:[#allocation16 + $0x50] sm:$0xff] }
 0x2e1   :  { %1116 = vmatpush.bf16.msra.mxu0 %v7243_v39 }
 0x2e2   :  { %v8287_v44 = vadd.f32 %v7658_v42, %v484_v43  ;;  %v7251_v42 = vld [vmem:[#allocation16 + $0x90] sm:$0xff]  ;;  %1104 = vmatpush.bf16.msrb.mxu3 %v7234_v49 }
 0x2e3   :  { %1125 = vmatpush.bf16.msra.mxu1 %v7255_v58  ;;  %v7259_v43 = vld [vmem:[#allocation16 + $0xd0] sm:$0xff] }
 0x2e4   :  { %v489_v45 = vpack.c.bf16 %v8287_v44, %v8287_v44  ;;  %1142 = vmatpush.bf16.msra.mxu2 %v7259_v43 }
 0x2e5   :  { %1117 = vmatpush.bf16.msra.mxu0 %v7242_v50 }
 0x2e6   :  { %700 = vmatmul.bf16.vlgmr.msra.gmra.mxu3 %v489_v45  ;;  %713 = vmatmul.bf16.vlgmr.msrb.gmra.mxu0 %v489_v45 }
 0x2e7   :  { %726 = vmatmul.bf16.vlgmr.msrb.gmra.mxu1 %v489_v45  ;;  %739 = vmatmul.bf16.vlgmr.msrb.gmra.mxu2 %v489_v45 }
 0x2e8   :  { %1126 = vmatpush.bf16.msra.mxu1 %v7254_v9 }
 0x2e9   :  { %1118 = vmatpush.bf16.msra.mxu0 %v7241_v60 }
 0x2ec   :  { %1127 = vmatpush.bf16.msra.mxu1 %v7253_v20 }
 0x2f0   :  { %1128 = vmatpush.bf16.msra.mxu1 %v7252_v30 }
 0x2f4   :  { %1129 = vmatpush.bf16.msra.mxu1 %v7251_v42 }
 0x363   :  { %v714_v47 = vpop.f32.mrf.mxu0 }
 0x364   :  { %v727_v48 = vpop.f32.mrf.mxu1  ;;  %v715_v61 = vadd.f32 %v714_v47, %v525_v52  ;;  %v7250_v52 = vld [vmem:[#allocation16 + $0x88] sm:$0xff] }
 0x365   :  { %v728_v0 = vadd.f32 %v727_v48, %v526_v54  ;;  %1130 = vmatpush.bf16.msra.mxu1 %v7250_v52 }
 0x369   :  { %v701_v59 = vpop.f32.mrf.mxu3 }
 0x36a   :  { %v702_v62 = vadd.f32 %v701_v59, %v524_v53  ;;  %v740_v63 = vpop.f32.mrf.mxu2  ;;  %v7258_v53 = vld [vmem:[#allocation16 + $0xc8] sm:$0xff]  ;;  %v7233_v59 = vld [vmem:[#allocation16] sm:$0xff] }
 0x36b   :  { %v741_v1 = vadd.f32 %v740_v63, %v527_v55  ;;  %v716_v2 = vpop.f32.mrf.mxu0  ;;  %1143 = vmatpush.bf16.msra.mxu2 %v7258_v53  ;;  %v7257_v63 = vld [vmem:[#allocation16 + $0xc0] sm:$0xff]  ;;  %1105 = vmatpush.bf16.msrb.mxu3 %v7233_v59 }
 0x36c   :  { %v744_v4 = vpack.c.bf16 %v715_v61, %v702_v62  ;;  %v729_v5 = vpop.f32.mrf.mxu1  ;;  %v7249_v62 = vld [vmem:[#allocation16 + $0x80] sm:$0xff] }
 0x36d   :  { %v745_v10 = vpack.c.bf16 %v741_v1, %v728_v0  ;;  %1131 = vmatpush.bf16.msra.mxu1 %v7249_v62 }
 0x36e   :  { %v8291_v12 = vunpack.c.l.bf16 %v744_v4  ;;  %v8293_v13 = vunpack.c.h.bf16 %v744_v4 }
 0x36f   :  { %v8295_v14 = vunpack.c.l.bf16 %v745_v10  ;;  %v8297_v15 = vunpack.c.h.bf16 %v745_v10  ;;  %1144 = vmatpush.bf16.msra.mxu2 %v7257_v63 }
 0x370   :  { %v750_v16 = vmul.f32 %v8291_v12, %v8291_v12  ;;  %v751_v17 = vmul.f32 %v8293_v13, %v8293_v13  ;;  %v797_v38 = vmul.f32 0.5, %v8293_v13 }
 0x371   :  { %v752_v21 = vmul.f32 %v8295_v14, %v8295_v14  ;;  %v753_v22 = vmul.f32 %v8297_v15, %v8297_v15  ;;  %v703_v23 = vpop.f32.mrf.mxu3 }
 0x372   :  { %v754_v25 = vpack.c.bf16 %v751_v17, %v750_v16  ;;  %v742_v26 = vpop.f32.mrf.mxu2 }
 0x373   :  { %v755_v29 = vpack.c.bf16 %v753_v22, %v752_v21 }
 0x374   :  { %v756_v32 = vunpack.c.l.bf16 %v754_v25  ;;  %v757_v33 = vunpack.c.h.bf16 %v754_v25 }
 0x375   :  { %v758_v34 = vunpack.c.l.bf16 %v755_v29  ;;  %v759_v35 = vunpack.c.h.bf16 %v755_v29 }
 0x376   :  { %v760_v36 = vmul.f32 %v756_v32, %v8291_v12  ;;  %v761_v37 = vmul.f32 %v757_v33, %v8293_v13 }
 0x377   :  { %v762_v40 = vmul.f32 %v758_v34, %v8295_v14  ;;  %v763_v41 = vmul.f32 %v759_v35, %v8297_v15  ;;  %v798_v34 = vmul.f32 0.5, %v8295_v14  ;;  %v799_v35 = vmul.f32 0.5, %v8297_v15 }
 0x378   :  { %v764_v45 = vpack.c.bf16 %v761_v37, %v760_v36  ;;  %v796_v37 = vmul.f32 0.5, %v8291_v12 }
 0x379   :  { %v765_v46 = vpack.c.bf16 %v763_v41, %v762_v40 }
 0x37a   :  { %v766_v47 = vunpack.c.l.bf16 %v764_v45  ;;  %v767_v48 = vunpack.c.h.bf16 %v764_v45  ;;  %v801_v45 = vpack.c.bf16 %v799_v35, %v798_v34 }
 0x37b   :  { %v768_v6 = vunpack.c.l.bf16 %v765_v46  ;;  %v769_v51 = vunpack.c.h.bf16 %v765_v46 }
 0x37c   :  { %v770_v54 = vmul.f32 0.044677734, %v766_v47  ;;  %v771_v55 = vmul.f32 0.044677734, %v767_v48  ;;  %v800_v48 = vpack.c.bf16 %v797_v38, %v796_v37  ;;  %v825_v52 = vunpack.c.h.bf16 %v801_v45 }
 0x37d   :  { %v772_v56 = vmul.f32 0.044677734, %v768_v6  ;;  %v773_v57 = vmul.f32 0.044677734, %v769_v51  ;;  %v824_v51 = vunpack.c.l.bf16 %v801_v45 }
 0x37e   :  { %v774_v58 = vpack.c.bf16 %v771_v55, %v770_v54 }
 0x37f   :  { %v775_v61 = vpack.c.bf16 %v773_v57, %v772_v56 }
 0x380   :  { %v776_v0 = vunpack.c.l.bf16 %v774_v58  ;;  %v777_v1 = vunpack.c.h.bf16 %v774_v58 }
 0x381   :  { %v778_v2 = vunpack.c.l.bf16 %v775_v61  ;;  %v779_v4 = vunpack.c.h.bf16 %v775_v61 }
 0x382   :  { %v780_v5 = vadd.f32 %v776_v0, %v8291_v12  ;;  %v781_v7 = vadd.f32 %v777_v1, %v8293_v13  ;;  %v822_v12 = vunpack.c.l.bf16 %v800_v48  ;;  %v823_v13 = vunpack.c.h.bf16 %v800_v48  ;;  %v7662_v48 = vld [vmem:[%s8633_s8 + $0x1] ss:$0 sm:$0xff] }
 0x383   :  { %v782_v8 = vadd.f32 %v778_v2, %v8295_v14  ;;  %v783_v9 = vadd.f32 %v779_v4, %v8297_v15  ;;  %v7659_v2 = vld [vmem:[#allocation17] ss:$0 sm:$0xff] }
 0x384   :  { %v784_v10 = vpack.c.bf16 %v781_v7, %v780_v5 }
 0x385   :  { %v785_v11 = vpack.c.bf16 %v783_v9, %v782_v8 }
 0x386   :  { %v786_v16 = vunpack.c.l.bf16 %v784_v10  ;;  %v787_v17 = vunpack.c.h.bf16 %v784_v10 }
 0x387   :  { %v788_v18 = vunpack.c.l.bf16 %v785_v11  ;;  %v789_v19 = vunpack.c.h.bf16 %v785_v11 }
 0x388   :  { %v790_v20 = vmul.f32 0.796875, %v786_v16  ;;  %v791_v21 = vmul.f32 0.796875, %v787_v17 }
 0x389   :  { %v792_v22 = vmul.f32 0.796875, %v788_v18  ;;  %v793_v23 = vmul.f32 0.796875, %v789_v19 }
 0x38a   :  { %v794_v24 = vpack.c.bf16 %v791_v21, %v790_v20  ;;  %v7272_v20 = vld [vmem:[#allocation11 + $0x78] sm:$0xff] }
 0x38b   :  { %v795_v25 = vpack.c.bf16 %v793_v23, %v792_v22  ;;  %1252 = vmatpush.bf16.msra.mxu3 %v7272_v20  ;;  %v7293_v20 = vld [vmem:[#allocation13 + $0x1a4] sm:$0xf] }
 0x38c   :  { %v802_v26 = vunpack.c.l.bf16 %v794_v24  ;;  %v803_v29 = vunpack.c.h.bf16 %v794_v24 }
 0x38d   :  { %v804_v27 = vunpack.c.l.bf16 %v795_v25  ;;  %v805_v28 = vunpack.c.h.bf16 %v795_v25  ;;  %v7271_v25 = vld [vmem:[#allocation11 + $0x70] sm:$0xff] }
 0x38e   :  { %7699 = vtanh.f32 %v802_v26  ;;  %v7270_v26 = vld [vmem:[#allocation11 + $0x68] sm:$0xff] }
 0x38f   :  { %7701 = vtanh.f32 %v804_v27  ;;  %1253 = vmatpush.bf16.msra.mxu3 %v7271_v25  ;;  %v7269_v27 = vld [vmem:[#allocation11 + $0x60] sm:$0xff] }
 0x390   :  { %7703 = vtanh.f32 %v805_v28  ;;  %v7268_v28 = vld [vmem:[#allocation11 + $0x58] sm:$0xff] }
 0x391   :  { %7705 = vtanh.f32 %v803_v29  ;;  %v7267_v29 = vld [vmem:[#allocation11 + $0x50] sm:$0xff] }
 0x393   :  { %1254 = vmatpush.bf16.msra.mxu3 %v7270_v26 }
 0x394   :  { %v7700_v30 = vpop.eup %7699 }
 0x395   :  { %v7702_v31 = vpop.eup %7701 }
 0x396   :  { %v7704_v32 = vpop.eup %7703 }
 0x397   :  { %v7706_v33 = vpop.eup %7705  ;;  %v811_v36 = vpack.c.bf16 %v7704_v32, %v7702_v31  ;;  %1255 = vmatpush.bf16.msra.mxu3 %v7269_v27  ;;  %v7294_v27 = vld [vmem:[#allocation13 + $0x1ac] sm:$0xf] }
 0x398   :  { %v810_v39 = vpack.c.bf16 %v7706_v33, %v7700_v30  ;;  %v7265_v30 = vld [vmem:[#allocation11 + $0x40] sm:$0xff] }
 0x399   :  { %v814_v40 = vunpack.c.l.bf16 %v811_v36  ;;  %v815_v41 = vunpack.c.h.bf16 %v811_v36 }
 0x39a   :  { %v812_v42 = vunpack.c.l.bf16 %v810_v39  ;;  %v813_v43 = vunpack.c.h.bf16 %v810_v39 }
 0x39b   :  { %v818_v46 = vadd.f32 1.0, %v814_v40  ;;  %v819_v47 = vadd.f32 1.0, %v815_v41  ;;  %1256 = vmatpush.bf16.msra.mxu3 %v7268_v28  ;;  %v7660_v40 = vld [vmem:[#allocation19] ss:$0 sm:$0xff] }
 0x39c   :  { %v816_v49 = vadd.f32 1.0, %v812_v42  ;;  %v817_v50 = vadd.f32 1.0, %v813_v43  ;;  %v7661_v43 = vld [vmem:[%s8641_s16] ss:$0 sm:$0xff]  ;;  %v5818_v28 = vld [vmem:[#allocation13 + $0x1b8] sm:$0xf0] }
 0x39d   :  { %v821_v6 = vpack.c.bf16 %v819_v47, %v818_v46 }
 0x39e   :  { %v820_v14 = vpack.c.bf16 %v817_v50, %v816_v49 }
 0x39f   :  { %v828_v15 = vunpack.c.l.bf16 %v821_v6  ;;  %v829_v53 = vunpack.c.h.bf16 %v821_v6  ;;  %1257 = vmatpush.bf16.msra.mxu3 %v7267_v29  ;;  %v5821_v29 = vor.u32 %v7294_v27, %v5818_v28 }
 0x3a0   :  { %v826_v54 = vunpack.c.l.bf16 %v820_v14  ;;  %v827_v55 = vunpack.c.h.bf16 %v820_v14 }
 0x3a1   :  { %v832_v56 = vmul.f32 %v828_v15, %v824_v51  ;;  %v833_v57 = vmul.f32 %v829_v53, %v825_v52  ;;  %v5840_v51 = vld [vmem:[#allocation13 + $0x1e0] sm:$0xf]  ;;  %v7303_v15 = vld [vmem:[#allocation13 + $0x1ec] sm:$0xf0]  ;;  %v7301_v52 = vld [vmem:[#allocation13 + $0x1e4] sm:$0xf] }
 0x3a2   :  { %v830_v58 = vmul.f32 %v826_v54, %v822_v12  ;;  %v831_v59 = vmul.f32 %v827_v55, %v823_v13  ;;  %v5841_v53 = vor.u32 %v7303_v15, %v5840_v51  ;;  %v5842_v12 = vld [vmem:[#allocation13 + $0x1f0] sm:$0xf0]  ;;  %v5848_v54 = vld [vmem:[#allocation13 + $0x1e8] sm:$0xf]  ;;  %v7304_v13 = vld [vmem:[#allocation13 + $0x1f4] sm:$0xf0] }
 0x3a3   :  { %v836_v60 = vpack.c.bf16 %v832_v56, %v832_v56  ;;  %v837_v61 = vpack.c.bf16 %v833_v57, %v833_v57  ;;  %v5845_v55 = vor.u32 %v7301_v52, %v5842_v12  ;;  %v5849_v56 = vor.u32 %v7304_v13, %v5848_v54  ;;  %v7302_v57 = vld [vmem:[#allocation13 + $0x1ec] sm:$0xf]  ;;  %v5760_v15 = vld [vmem:[#allocation13 + $0x140] sm:$0xf]  ;;  %v7283_v52 = vld [vmem:[#allocation13 + $0x14c] sm:$0xf0] }
 0x3a4   :  { %v834_v62 = vpack.c.bf16 %v830_v58, %v830_v58  ;;  %v835_v63 = vpack.c.bf16 %v831_v59, %v831_v59  ;;  %v5850_v58 = vld [vmem:[#allocation13 + $0x1f8] sm:$0xf0]  ;;  %1503 = vmatpush.bf16.msrb.mxu0 %v5841_v53  ;;  %v7281_v53 = vld [vmem:[#allocation13 + $0x144] sm:$0xf]  ;;  %v5761_v12 = vor.u32 %v7283_v52, %v5760_v15  ;;  %v5762_v54 = vld [vmem:[#allocation13 + $0x150] sm:$0xf0] }
 0x3a5   :  { %1132 = vmatmul.bf16.vlgmr.msra.gmra.mxu1 %v836_v60  ;;  %1145 = vmatmul.bf16.vlgmr.msra.gmra.mxu2 %v837_v61  ;;  %v5853_v59 = vor.u32 %v7302_v57, %v5850_v58  ;;  %v5768_v13 = vld [vmem:[#allocation13 + $0x148] sm:$0xf]  ;;  %v7282_v58 = vld [vmem:[#allocation13 + $0x14c] sm:$0xf]  ;;  %v7328_v15 = vld [vmem:[#allocation16 + $0x1b8] sm:$0xff] }
 0x3a6   :  { %1106 = vmatmul.bf16.vlgmr.msrb.gmra.mxu3 %v834_v62  ;;  %1119 = vmatmul.bf16.vlgmr.msra.gmra.mxu0 %v835_v63  ;;  %v7336_v52 = vld [vmem:[#allocation16 + $0x1f8] sm:$0xff] }
 0x3a7   :  { %1516 = vmatpush.bf16.msrb.mxu1 %v5845_v55  ;;  %1529 = vmatpush.bf16.msrb.mxu2 %v5849_v56  ;;  %v7284_v55 = vld [vmem:[#allocation13 + $0x154] sm:$0xf0]  ;;  %v5765_v56 = vor.u32 %v7281_v53, %v5762_v54  ;;  %v7318_v54 = vld [vmem:[#allocation16 + $0x168] sm:$0xff] }
 0x3a8   :  { %v5769_v57 = vor.u32 %v7284_v55, %v5768_v13 }
 0x422   :  { %v1133_v0 = vpop.f32.mrf.mxu1 }
 0x423   :  { %v1120_v1 = vpop.f32.mrf.mxu0 }
 0x428   :  { %v1146_v4 = vpop.f32.mrf.mxu2 }
 0x429   :  { %v1107_v5 = vpop.f32.mrf.mxu3 }
 0x42a   :  { %v1108_v7 = vadd.f32 %v7659_v2, %v1107_v5  ;;  %v1135_v8 = vpop.f32.mrf.mxu1  ;;  %v7297_v2 = vld [vmem:[#allocation13 + $0x1c4] sm:$0xf]  ;;  %v5826_v5 = vld [vmem:[#allocation13 + $0x1d0] sm:$0xf0] }
 0x42b   :  { %v1122_v9 = vpop.f32.mrf.mxu0  ;;  %v7300_v8 = vld [vmem:[#allocation13 + $0x1d4] sm:$0xf0] }
 0x42c   :  { %v1121_v10 = vadd.f32 %v1120_v1, %v1108_v7  ;;  %v7299_v1 = vld [vmem:[#allocation13 + $0x1cc] sm:$0xf0]  ;;  %v5832_v7 = vld [vmem:[#allocation13 + $0x1c8] sm:$0xf]  ;;  %v5829_v9 = vor.u32 %v7297_v2, %v5826_v5  ;;  %v5746_v2 = vld [vmem:[#allocation13 + $0x130] sm:$0xf0] }
 0x42d   :  { %v7280_v5 = vld [vmem:[#allocation13 + $0x134] sm:$0xf0] }
 0x42e   :  { %v1134_v11 = vadd.f32 %v1133_v0, %v1121_v10  ;;  %v5824_v0 = vld [vmem:[#allocation13 + $0x1c0] sm:$0xf]  ;;  %v5833_v10 = vor.u32 %v7300_v8, %v5832_v7  ;;  %1517 = vmatpush.bf16.msrb.mxu1 %v5829_v9  ;;  %v7278_v9 = vld [vmem:[#allocation13 + $0x12c] sm:$0xf] }
 0x430   :  { %v1147_v16 = vadd.f32 %v1146_v4, %v1134_v11  ;;  %v1148_v17 = vpop.f32.mrf.mxu2  ;;  %v5825_v4 = vor.u32 %v7299_v1, %v5824_v0  ;;  %v7298_v11 = vld [vmem:[#allocation13 + $0x1cc] sm:$0xf]  ;;  %1530 = vmatpush.bf16.msrb.mxu2 %v5833_v10  ;;  %v7277_v0 = vld [vmem:[#allocation13 + $0x124] sm:$0xf]  ;;  %v5754_v10 = vld [vmem:[#allocation13 + $0x138] sm:$0xf0] }
 0x431   :  { %v1109_v18 = vpop.f32.mrf.mxu3  ;;  %v5749_v7 = vor.u32 %v7277_v0, %v5746_v2  ;;  %v7317_v2 = vld [vmem:[#allocation16 + $0x160] sm:$0xff] }
 0x432   :  { %v1150_v19 = vadd.f32 %v1147_v16, %v8287_v44  ;;  %v7266_v44 = vld [vmem:[#allocation11 + $0x48] sm:$0xff]  ;;  %v5834_v16 = vld [vmem:[#allocation13 + $0x1d8] sm:$0xf0]  ;;  %1504 = vmatpush.bf16.msrb.mxu0 %v5825_v4  ;;  %v5808_v18 = vld [vmem:[#allocation13 + $0x1a0] sm:$0xf] }
 0x433   :  { %1258 = vmatpush.bf16.msra.mxu3 %v7266_v44  ;;  %v5837_v17 = vor.u32 %v7298_v11, %v5834_v16  ;;  %v5792_v44 = vld [vmem:[#allocation13 + $0x180] sm:$0xf]  ;;  %v5752_v4 = vld [vmem:[#allocation13 + $0x128] sm:$0xf]  ;;  %v5757_v16 = vor.u32 %v7278_v9, %v5754_v10 }
 0x434   :  { %1153 = vadd.xlane.f32.xlu1 %v1150_v19  ;;  %v5753_v8 = vor.u32 %v7280_v5, %v5752_v4  ;;  %v5728_v11 = vld [vmem:[#allocation13 + $0x100] sm:$0xf] }
 0x435   :  { %v7326_v10 = vld [vmem:[#allocation16 + $0x1a8] sm:$0xff] }
 0x437   :  { %1259 = vmatpush.bf16.msra.mxu3 %v7265_v30  ;;  %v7291_v30 = vld [vmem:[#allocation13 + $0x18c] sm:$0xf0] }
 0x43b   :  { %1542 = vmatpush.bf16.msrb.mxu3 %v5853_v59  ;;  %v5770_v59 = vld [vmem:[#allocation13 + $0x158] sm:$0xf0] }
 0x43f   :  { %1543 = vmatpush.bf16.msrb.mxu3 %v5837_v17  ;;  %v7275_v17 = vld [vmem:[#allocation13 + $0x10c] sm:$0xf0] }
 0x443   :  { %1544 = vmatpush.bf16.msrb.mxu3 %v5821_v29 }
 0x4a7   :  { %v1154_v21 = vpop.xlane.xlu1 %1153 }
 0x4a8   :  { %v1155_v22 = vmul.f32 %v1154_v21, %v8272_v3 }
 0x4aa   :  { %v1156_v23 = vsub.f32 %v1150_v19, %v1155_v22  ;;  %v7295_v19 = vld [vmem:[#allocation13 + $0x1ac] sm:$0xf0]  ;;  %v5810_v22 = vld [vmem:[#allocation13 + $0x1b0] sm:$0xf0] }
 0x4ab   :  { %v5809_v21 = vor.u32 %v7295_v19, %v5808_v18  ;;  %v5813_v25 = vor.u32 %v7293_v20, %v5810_v22  ;;  %v7273_v18 = vld [vmem:[#allocation13 + $0x104] sm:$0xf]  ;;  %v5730_v19 = vld [vmem:[#allocation13 + $0x110] sm:$0xf0]  ;;  %v5729_v20 = vor.u32 %v7275_v17, %v5728_v11  ;;  %v5736_v22 = vld [vmem:[#allocation13 + $0x108] sm:$0xf] }
 0x4ac   :  { %v1157_v24 = vmul.f32 %v1156_v23, %v1156_v23  ;;  %v7334_v11 = vld [vmem:[#allocation16 + $0x1e8] sm:$0xff] }
 0x4ad   :  { %1505 = vmatpush.bf16.msrb.mxu0 %v5809_v21  ;;  %1518 = vmatpush.bf16.msrb.mxu1 %v5813_v25  ;;  %v5733_v21 = vor.u32 %v7273_v18, %v5730_v19  ;;  %v7308_v19 = vld [vmem:[#allocation16 + $0x118] sm:$0xff] }
 0x4ae   :  { %1158 = vadd.xlane.f32.xlu2 %v1157_v24  ;;  %v7296_v24 = vld [vmem:[#allocation13 + $0x1b4] sm:$0xf0] }
 0x521   :  { %v1159_v31 = vpop.xlane.xlu2 %1158 }
 0x522   :  { %v1160_v32 = vmul.f32 %v1159_v31, %v8272_v3  ;;  %v7289_v31 = vld [vmem:[#allocation13 + $0x184] sm:$0xf] }
 0x524   :  { %v1161_v33 = vadd.f32 1e-05, %v1160_v32  ;;  %v5793_v32 = vor.u32 %v7291_v30, %v5792_v44 }
 0x526   :  { %7707 = vrsqrt.f32 %v1161_v33  ;;  %vm1168_vm6 = vweird.f32 %v1161_v33  ;;  %1506 = vmatpush.bf16.msrb.mxu0 %v5793_v32 }
 0x52c   :  { %v7708_v34 = vpop.eup %7707 }
 0x52d   :  { %v1163_v35 = vmul.f32 %v7708_v34, %v1161_v33  ;;  %vm1169_vm5 = vweird.f32 %v7708_v34  ;;  %v5794_v33 = vld [vmem:[#allocation13 + $0x190] sm:$0xf0] }
 0x52e   :  { %vm1170_vm7 = vmor %vm1168_vm6, %vm1169_vm5 }
 0x52f   :  { %v1164_v36 = vmul.f32 %v7708_v34, %v1163_v35  ;;  %v7292_v35 = vld [vmem:[#allocation13 + $0x194] sm:$0xf0] }
 0x531   :  { %v1165_v37 = vmul.f32 0.5, %v1164_v36  ;;  %v5797_v36 = vor.u32 %v7289_v31, %v5794_v33 }
 0x533   :  { %v1166_v38 = vsub.f32 1.5, %v1165_v37  ;;  %1519 = vmatpush.bf16.msrb.mxu1 %v5797_v36  ;;  %v7663_v36 = vld [vmem:[%s8634_s9 + $0x1] ss:$0 sm:$0xff] }
 0x535   :  { %v1167_v39 = vmul.f32 %v7708_v34, %v1166_v38  ;;  %v7290_v38 = vld [vmem:[#allocation13 + $0x18c] sm:$0xf] }
 0x537   :  { %v1171_v41 = vsel %vm1170_vm7, %v7708_v34, %v1167_v39  ;;  %v5800_v34 = vld [vmem:[#allocation13 + $0x188] sm:$0xf]  ;;  %v5802_v39 = vld [vmem:[#allocation13 + $0x198] sm:$0xf0] }
 0x538   :  { %v1172_v42 = vmul.f32 %v1171_v41, %v1156_v23  ;;  %v5816_v23 = vld [vmem:[#allocation13 + $0x1a8] sm:$0xf]  ;;  %v5801_v37 = vor.u32 %v7292_v35, %v5800_v34  ;;  %v5776_v41 = vld [vmem:[#allocation13 + $0x160] sm:$0xf] }
 0x539   :  { %v5817_v26 = vor.u32 %v7296_v24, %v5816_v23  ;;  %v7276_v23 = vld [vmem:[#allocation13 + $0x114] sm:$0xf0]  ;;  %v7274_v24 = vld [vmem:[#allocation13 + $0x10c] sm:$0xf] }
 0x53a   :  { %v1176_v45 = vmul.f32 %v7660_v40, %v1172_v42  ;;  %v5805_v40 = vor.u32 %v7290_v38, %v5802_v39  ;;  %v7287_v42 = vld [vmem:[#allocation13 + $0x16c] sm:$0xf0]  ;;  %v5737_v25 = vor.u32 %v7276_v23, %v5736_v22  ;;  %v7664_v39 = vld [vmem:[%s8635_s10 + $0x1] ss:$0 sm:$0xff] }
 0x53b   :  { %1531 = vmatpush.bf16.msrb.mxu2 %v5817_v26  ;;  %v5738_v26 = vld [vmem:[#allocation13 + $0x118] sm:$0xf0] }
 0x53c   :  { %v1180_v46 = vadd.f32 %v7661_v43, %v1176_v45  ;;  %v7285_v43 = vld [vmem:[#allocation13 + $0x164] sm:$0xf]  ;;  %1545 = vmatpush.bf16.msrb.mxu3 %v5805_v40  ;;  %v5777_v45 = vor.u32 %v7287_v42, %v5776_v41  ;;  %v5741_v27 = vor.u32 %v7274_v24, %v5738_v26  ;;  %v7333_v26 = vld [vmem:[#allocation16 + $0x1e0] sm:$0xff] }
 0x53e   :  { %v1181_v47 = vpack.c.bf16 %v1180_v46, %v1180_v46  ;;  %1507 = vmatpush.bf16.msrb.mxu0 %v5777_v45  ;;  %v7312_v45 = vld [vmem:[#allocation16 + $0x138] sm:$0xff] }
 0x53f   :  { %1532 = vmatpush.bf16.msrb.mxu2 %v5801_v37 }
 0x540   :  { %1260 = vmatmul.bf16.vlgmr.msra.gmra.mxu3 %v1181_v47  ;;  %v5784_v47 = vld [vmem:[#allocation13 + $0x168] sm:$0xf] }
 0x542   :  { %1508 = vmatpush.bf16.msrb.mxu0 %v5761_v12  ;;  %v7310_v12 = vld [vmem:[#allocation16 + $0x128] sm:$0xff] }
 0x5c3   :  { %v1261_v49 = vpop.f32.mrf.mxu3 }
 0x5c4   :  { %v1262_v50 = vadd.f32 %v7662_v48, %v1261_v49  ;;  %v7288_v48 = vld [vmem:[#allocation13 + $0x174] sm:$0xf0] }
 0x5c6   :  { %v1265_v6 = vadd.f32 %v1262_v50, %v1180_v46  ;;  %v5778_v46 = vld [vmem:[#allocation13 + $0x170] sm:$0xf0]  ;;  %v5785_v50 = vor.u32 %v7288_v48, %v5784_v47 }
 0x5c7   :  { %v5781_v49 = vor.u32 %v7285_v43, %v5778_v46  ;;  %v1333_v43 = vld [vmem:[#allocation14 + $0x4] sm:$0xf]  ;;  %v7320_v46 = vld [vmem:[#allocation16 + $0x178] sm:$0xff] }
 0x5c8   :  { %1270 = vadd.xlane.f32.xlu2 %v1265_v6  ;;  %1533 = vmatpush.bf16.msrb.mxu2 %v5785_v50  ;;  %v1335_v47 = vperm.slane %v1333_v43, 0  ;;  %v1336_v48 = vperm.slane %v1333_v43, 1  ;;  %v1337_v13 = vperm.slane %v1333_v43, 2  ;;  %v1338_v55 = vperm.slane %v1333_v43, 3 }
 0x5c9   :  { %1520 = vmatpush.bf16.msrb.mxu1 %v5781_v49  ;;  %v7319_v49 = vld [vmem:[#allocation16 + $0x170] sm:$0xff] }
 0x5cb   :  { %v1263_v14 = vpop.f32.mrf.mxu3 }
 0x5cc   :  { %v5786_v14 = vld [vmem:[#allocation13 + $0x178] sm:$0xf0]  ;;  %1534 = vmatpush.bf16.msrb.mxu2 %v5769_v57 }
 0x5cd   :  { %1521 = vmatpush.bf16.msrb.mxu1 %v5765_v56 }
 0x5d0   :  { %1535 = vmatpush.bf16.msrb.mxu2 %v5753_v8 }
 0x5d1   :  { %1522 = vmatpush.bf16.msrb.mxu1 %v5749_v7 }
 0x5d4   :  { %1536 = vmatpush.bf16.msrb.mxu2 %v5737_v25  ;;  %v7325_v25 = vld [vmem:[#allocation16 + $0x1a0] sm:$0xff] }
 0x5d5   :  { %1523 = vmatpush.bf16.msrb.mxu1 %v5733_v21 }
 0x5d8   :  { %1937 = vmatpush.bf16.msra.mxu2 %v7328_v15 }
 0x5d9   :  { %1924 = vmatpush.bf16.msra.mxu1 %v7320_v46  ;;  %v7323_v46 = vld [vmem:[#allocation16 + $0x190] sm:$0xff] }
 0x5dd   :  { %1925 = vmatpush.bf16.msra.mxu1 %v7319_v49 }
 0x5e1   :  { %1926 = vmatpush.bf16.msra.mxu1 %v7318_v54 }
 0x5e5   :  { %1927 = vmatpush.bf16.msra.mxu1 %v7317_v2 }
 0x63b   :  { %v1271_v60 = vpop.xlane.xlu2 %1270 }
 0x63c   :  { %v1272_v61 = vmul.f32 %v1271_v60, %v8272_v3  ;;  %v5773_v60 = vor.u32 %v7282_v58, %v5770_v59  ;;  %v7327_v58 = vld [vmem:[#allocation16 + $0x1b0] sm:$0xff] }
 0x63d   :  { %v7335_v59 = vld [vmem:[#allocation16 + $0x1f0] sm:$0xff]  ;;  %1938 = vmatpush.bf16.msra.mxu2 %v7327_v58 }
 0x63e   :  { %v8329_v62 = vsub.f32 %v1265_v6, %v1272_v61  ;;  %v7286_v6 = vld [vmem:[#allocation13 + $0x16c] sm:$0xf]  ;;  %v5744_v61 = vld [vmem:[#allocation13 + $0x120] sm:$0xf] }
 0x63f   :  { %v5789_v51 = vor.u32 %v7286_v6, %v5786_v14 }
 0x640   :  { %v1274_v63 = vmul.f32 %v8329_v62, %v8329_v62 }
 0x641   :  { %1546 = vmatpush.bf16.msrb.mxu3 %v5789_v51  ;;  %1939 = vmatpush.bf16.msra.mxu2 %v7326_v10 }
 0x642   :  { %1275 = vadd.xlane.f32.xlu1 %v1274_v63  ;;  %v7279_v63 = vld [vmem:[#allocation13 + $0x12c] sm:$0xf0] }
 0x643   :  { %v5745_v1 = vor.u32 %v7279_v63, %v5744_v61 }
 0x645   :  { %1547 = vmatpush.bf16.msrb.mxu3 %v5773_v60  ;;  %1509 = vmatpush.bf16.msrb.mxu0 %v5745_v1  ;;  %v7309_v1 = vld [vmem:[#allocation16 + $0x120] sm:$0xff] }
 0x646   :  { %1940 = vmatpush.bf16.msra.mxu2 %v7325_v25 }
 0x649   :  { %1548 = vmatpush.bf16.msrb.mxu3 %v5757_v16  ;;  %1510 = vmatpush.bf16.msrb.mxu0 %v5729_v20  ;;  %v7316_v20 = vld [vmem:[#allocation16 + $0x158] sm:$0xff] }
 0x64a   :  { %1928 = vmatpush.bf16.msra.mxu1 %v7316_v20 }
 0x64d   :  { %1549 = vmatpush.bf16.msrb.mxu3 %v5741_v27  ;;  %1911 = vmatpush.bf16.msra.mxu0 %v7312_v45  ;;  %v7307_v27 = vld [vmem:[#allocation16 + $0x110] sm:$0xff] }
 0x651   :  { %1950 = vmatpush.bf16.msra.mxu3 %v7336_v52  ;;  %v7322_v52 = vld [vmem:[#allocation16 + $0x188] sm:$0xff] }
 0x655   :  { %1951 = vmatpush.bf16.msra.mxu3 %v7335_v59 }
 0x659   :  { %1952 = vmatpush.bf16.msra.mxu3 %v7334_v11 }
 0x65d   :  { %1953 = vmatpush.bf16.msra.mxu3 %v7333_v26 }
 0x6b5   :  { %v1276_v28 = vpop.xlane.xlu1 %1275 }
 0x6b6   :  { %v1277_v29 = vmul.f32 %v1276_v28, %v8272_v3 }
 0x6b8   :  { %v1278_v44 = vadd.f32 1e-05, %v1277_v29 }
 0x6ba   :  { %7709 = vrsqrt.f32 %v1278_v44  ;;  %vm1285_vm9 = vweird.f32 %v1278_v44 }
 0x6c0   :  { %v7710_v30 = vpop.eup %7709 }
 0x6c1   :  { %v1280_v31 = vmul.f32 %v7710_v30, %v1278_v44  ;;  %vm1286_vm8 = vweird.f32 %v7710_v30  ;;  %v7315_v44 = vld [vmem:[#allocation16 + $0x150] sm:$0xff] }
 0x6c2   :  { %vm1287_vm10 = vmor %vm1285_vm9, %vm1286_vm8  ;;  %1929 = vmatpush.bf16.msra.mxu1 %v7315_v44 }
 0x6c3   :  { %v1281_v32 = vmul.f32 %v7710_v30, %v1280_v31 }
 0x6c5   :  { %v1282_v33 = vmul.f32 0.5, %v1281_v32 }
 0x6c7   :  { %v1283_v34 = vsub.f32 1.5, %v1282_v33  ;;  %v7324_v33 = vld [vmem:[#allocation16 + $0x198] sm:$0xff] }
 0x6c8   :  { %1941 = vmatpush.bf16.msra.mxu2 %v7324_v33 }
 0x6c9   :  { %v1284_v35 = vmul.f32 %v7710_v30, %v1283_v34  ;;  %v7332_v34 = vld [vmem:[#allocation16 + $0x1d8] sm:$0xff] }
 0x6ca   :  { %1954 = vmatpush.bf16.msra.mxu3 %v7332_v34 }
 0x6cb   :  { %v1288_v37 = vsel %vm1287_vm10, %v7710_v30, %v1284_v35 }
 0x6cc   :  { %v1289_v38 = vmul.f32 %v1288_v37, %v8329_v62  ;;  %v7311_v62 = vld [vmem:[#allocation16 + $0x130] sm:$0xff]  ;;  %1942 = vmatpush.bf16.msra.mxu2 %v7323_v46 }
 0x6cd   :  { %1912 = vmatpush.bf16.msra.mxu0 %v7311_v62 }
 0x6ce   :  { %v1293_v40 = vmul.f32 %v7663_v36, %v1289_v38  ;;  %v7306_v38 = vld [vmem:[#allocation16 + $0x108] sm:$0xff] }
 0x6d0   :  { %v8341_v41 = vadd.f32 %v7664_v39, %v1293_v40  ;;  %v7314_v39 = vld [vmem:[#allocation16 + $0x148] sm:$0xff]  ;;  %1943 = vmatpush.bf16.msra.mxu2 %v7322_v52 }
 0x6d1   :  { %1913 = vmatpush.bf16.msra.mxu0 %v7310_v12  ;;  %1930 = vmatpush.bf16.msra.mxu1 %v7314_v39 }
 0x6d2   :  { %v1298_v42 = vpack.c.bf16 %v8341_v41, %v8341_v41 }
 0x6d4   :  { %1511 = vmatmul.bf16.vlgmr.msrb.gmra.mxu0 %v1298_v42  ;;  %1524 = vmatmul.bf16.vlgmr.msrb.gmra.mxu1 %v1298_v42 }
 0x6d5   :  { %1537 = vmatmul.bf16.vlgmr.msrb.gmra.mxu2 %v1298_v42  ;;  %1550 = vmatmul.bf16.vlgmr.msrb.gmra.mxu3 %v1298_v42 }
 0x6d6   :  { %1914 = vmatpush.bf16.msra.mxu0 %v7309_v1 }
 0x6da   :  { %1915 = vmatpush.bf16.msra.mxu0 %v7308_v19 }
 0x6de   :  { %1916 = vmatpush.bf16.msra.mxu0 %v7307_v27 }
 0x6e2   :  { %1917 = vmatpush.bf16.msra.mxu0 %v7306_v38 }
 0x751   :  { %v1512_v50 = vpop.f32.mrf.mxu0  ;;  %v1525_v6 = vpop.f32.mrf.mxu1 }
 0x752   :  { %v1513_v14 = vadd.f32 %v1512_v50, %v1335_v47  ;;  %v1526_v51 = vadd.f32 %v1525_v6, %v1336_v48  ;;  %v7331_v47 = vld [vmem:[#allocation16 + $0x1d0] sm:$0xff]  ;;  %v7305_v50 = vld [vmem:[#allocation16 + $0x100] sm:$0xff] }
 0x753   :  { %v7313_v6 = vld [vmem:[#allocation16 + $0x140] sm:$0xff]  ;;  %1955 = vmatpush.bf16.msra.mxu3 %v7331_v47  ;;  %1918 = vmatpush.bf16.msra.mxu0 %v7305_v50 }
 0x754   :  { %v1555_v53 = vpack.c.bf16 %v1526_v51, %v1513_v14  ;;  %1931 = vmatpush.bf16.msra.mxu1 %v7313_v6 }
 0x756   :  { %v8345_v56 = vunpack.c.l.bf16 %v1555_v53  ;;  %v8347_v57 = vunpack.c.h.bf16 %v1555_v53  ;;  %v7330_v53 = vld [vmem:[#allocation16 + $0x1c8] sm:$0xff] }
 0x757   :  { %1956 = vmatpush.bf16.msra.mxu3 %v7330_v53 }
 0x758   :  { %v1561_v60 = vmul.f32 %v8345_v56, %v8345_v56  ;;  %v1562_v61 = vmul.f32 %v8347_v57, %v8347_v57  ;;  %v1538_v63 = vpop.f32.mrf.mxu2  ;;  %v1551_v0 = vpop.f32.mrf.mxu3  ;;  %v1607_v44 = vmul.f32 0.5, %v8345_v56 }
 0x759   :  { %v1539_v4 = vadd.f32 %v1538_v63, %v1337_v13  ;;  %v1552_v5 = vadd.f32 %v1551_v0, %v1338_v55  ;;  %v1514_v7 = vpop.f32.mrf.mxu0  ;;  %v1527_v8 = vpop.f32.mrf.mxu1  ;;  %v7329_v63 = vld [vmem:[#allocation16 + $0x1c0] sm:$0xff] }
 0x75a   :  { %v1565_v9 = vpack.c.bf16 %v1562_v61, %v1561_v60  ;;  %v7321_v61 = vld [vmem:[#allocation16 + $0x180] sm:$0xff] }
 0x75b   :  { %v1556_v16 = vpack.c.bf16 %v1552_v5, %v1539_v4  ;;  %1944 = vmatpush.bf16.msra.mxu2 %v7321_v61  ;;  %1957 = vmatpush.bf16.msra.mxu3 %v7329_v63  ;;  %v7665_v61 = vld [vmem:[#allocation17 + $0x1] ss:$0 sm:$0xff] }
 0x75c   :  { %v1567_v17 = vunpack.c.l.bf16 %v1565_v9  ;;  %v1568_v18 = vunpack.c.h.bf16 %v1565_v9 }
 0x75d   :  { %v8353_v21 = vunpack.c.l.bf16 %v1556_v16  ;;  %v8355_v22 = vunpack.c.h.bf16 %v1556_v16 }
 0x75e   :  { %v1571_v23 = vmul.f32 %v1567_v17, %v8345_v56  ;;  %v1572_v24 = vmul.f32 %v1568_v18, %v8347_v57 }
 0x75f   :  { %v1563_v28 = vmul.f32 %v8353_v21, %v8353_v21  ;;  %v1564_v29 = vmul.f32 %v8355_v22, %v8355_v22 }
 0x760   :  { %v1575_v30 = vpack.c.bf16 %v1572_v24, %v1571_v23  ;;  %v1540_v31 = vpop.f32.mrf.mxu2  ;;  %v1553_v32 = vpop.f32.mrf.mxu3 }
 0x761   :  { %v1566_v35 = vpack.c.bf16 %v1564_v29, %v1563_v28 }
 0x762   :  { %v1577_v36 = vunpack.c.l.bf16 %v1575_v30  ;;  %v1578_v37 = vunpack.c.h.bf16 %v1575_v30  ;;  %v1608_v30 = vmul.f32 0.5, %v8347_v57 }
 0x763   :  { %v1569_v40 = vunpack.c.l.bf16 %v1566_v35  ;;  %v1570_v42 = vunpack.c.h.bf16 %v1566_v35 }
 0x764   :  { %v1581_v43 = vmul.f32 0.044677734, %v1577_v36  ;;  %v1582_v45 = vmul.f32 0.044677734, %v1578_v37  ;;  %v1611_v34 = vpack.c.bf16 %v1608_v30, %v1607_v44 }
 0x765   :  { %v1573_v48 = vmul.f32 %v1569_v40, %v8353_v21  ;;  %v1574_v62 = vmul.f32 %v1570_v42, %v8355_v22  ;;  %v1609_v40 = vmul.f32 0.5, %v8353_v21  ;;  %v1610_v42 = vmul.f32 0.5, %v8355_v22 }
 0x766   :  { %v1585_v49 = vpack.c.bf16 %v1582_v45, %v1581_v43  ;;  %v1633_v45 = vunpack.c.l.bf16 %v1611_v34 }
 0x767   :  { %v1576_v14 = vpack.c.bf16 %v1574_v62, %v1573_v48  ;;  %v1612_v50 = vpack.c.bf16 %v1610_v42, %v1609_v40  ;;  %v7667_v40 = vld [vmem:[%s8641_s16 + $0x1] ss:$0 sm:$0xff] }
 0x768   :  { %v1587_v51 = vunpack.c.l.bf16 %v1585_v49  ;;  %v1588_v15 = vunpack.c.h.bf16 %v1585_v49 }
 0x769   :  { %v1579_v12 = vunpack.c.l.bf16 %v1576_v14  ;;  %v1580_v54 = vunpack.c.h.bf16 %v1576_v14 }
 0x76a   :  { %v1591_v13 = vadd.f32 %v1587_v51, %v8345_v56  ;;  %v1592_v55 = vadd.f32 %v1588_v15, %v8347_v57  ;;  %v1634_v56 = vunpack.c.h.bf16 %v1611_v34 }
 0x76b   :  { %v1583_v58 = vmul.f32 0.044677734, %v1579_v12  ;;  %v1584_v59 = vmul.f32 0.044677734, %v1580_v54 }
 0x76c   :  { %v1595_v60 = vpack.c.bf16 %v1592_v55, %v1591_v13 }
 0x76d   :  { %v1586_v0 = vpack.c.bf16 %v1584_v59, %v1583_v58 }
 0x76e   :  { %v1597_v1 = vunpack.c.l.bf16 %v1595_v60  ;;  %v1598_v2 = vunpack.c.h.bf16 %v1595_v60 }
 0x76f   :  { %v1589_v4 = vunpack.c.l.bf16 %v1586_v0  ;;  %v1590_v5 = vunpack.c.h.bf16 %v1586_v0 }
 0x770   :  { %v1601_v7 = vmul.f32 0.796875, %v1597_v1  ;;  %v1602_v8 = vmul.f32 0.796875, %v1598_v2 }
 0x771   :  { %v1593_v9 = vadd.f32 %v1589_v4, %v8353_v21  ;;  %v1594_v10 = vadd.f32 %v1590_v5, %v8355_v22  ;;  %v1635_v21 = vunpack.c.l.bf16 %v1612_v50  ;;  %v1636_v22 = vunpack.c.h.bf16 %v1612_v50  ;;  %v7373_v50 = vld [vmem:[#allocation13 + $0x2e4] sm:$0xf] }
 0x772   :  { %v1605_v11 = vpack.c.bf16 %v1602_v8, %v1601_v7 }
 0x773   :  { %v1596_v16 = vpack.c.bf16 %v1594_v10, %v1593_v9 }
 0x774   :  { %v1613_v17 = vunpack.c.l.bf16 %v1605_v11  ;;  %v1614_v18 = vunpack.c.h.bf16 %v1605_v11 }
 0x775   :  { %v1599_v19 = vunpack.c.l.bf16 %v1596_v16  ;;  %v1600_v20 = vunpack.c.h.bf16 %v1596_v16  ;;  %v7344_v16 = vld [vmem:[#allocation11 + $0xb8] sm:$0xff] }
 0x776   :  { %7711 = vtanh.f32 %v1613_v17  ;;  %2067 = vmatpush.bf16.msrb.mxu0 %v7344_v16  ;;  %v7365_v16 = vld [vmem:[#allocation13 + $0x2a4] sm:$0xf] }
 0x777   :  { %7713 = vtanh.f32 %v1614_v18  ;;  %v1603_v23 = vmul.f32 0.796875, %v1599_v19  ;;  %v1604_v24 = vmul.f32 0.796875, %v1600_v20 }
 0x779   :  { %v1606_v25 = vpack.c.bf16 %v1604_v24, %v1603_v23  ;;  %v7343_v23 = vld [vmem:[#allocation11 + $0xb0] sm:$0xff]  ;;  %v7342_v24 = vld [vmem:[#allocation11 + $0xa8] sm:$0xff] }
 0x77a   :  { %2068 = vmatpush.bf16.msrb.mxu0 %v7343_v23 }
 0x77b   :  { %v1615_v26 = vunpack.c.l.bf16 %v1606_v25  ;;  %v1616_v27 = vunpack.c.h.bf16 %v1606_v25  ;;  %v7341_v25 = vld [vmem:[#allocation11 + $0xa0] sm:$0xff] }
 0x77c   :  { %v7712_v28 = vpop.eup %7711 }
 0x77d   :  { %v7714_v29 = vpop.eup %7713  ;;  %7715 = vtanh.f32 %v1615_v26  ;;  %v7340_v26 = vld [vmem:[#allocation11 + $0x98] sm:$0xff] }
 0x77e   :  { %7717 = vtanh.f32 %v1616_v27  ;;  %v1621_v31 = vpack.c.bf16 %v7714_v29, %v7712_v28  ;;  %2069 = vmatpush.bf16.msrb.mxu0 %v7342_v24  ;;  %v7338_v27 = vld [vmem:[#allocation11 + $0x88] sm:$0xff]  ;;  %v7337_v28 = vld [vmem:[#allocation11 + $0x80] sm:$0xff] }
 0x780   :  { %v1623_v32 = vunpack.c.l.bf16 %v1621_v31  ;;  %v1624_v33 = vunpack.c.h.bf16 %v1621_v31 }
 0x782   :  { %v1627_v35 = vadd.f32 1.0, %v1623_v32  ;;  %v1628_v36 = vadd.f32 1.0, %v1624_v33  ;;  %2070 = vmatpush.bf16.msrb.mxu0 %v7341_v25  ;;  %v7366_v25 = vld [vmem:[#allocation13 + $0x2ac] sm:$0xf] }
 0x783   :  { %v7716_v37 = vpop.eup %7715 }
 0x784   :  { %v7718_v38 = vpop.eup %7717  ;;  %v1631_v39 = vpack.c.bf16 %v1628_v36, %v1627_v35 }
 0x785   :  { %v1622_v43 = vpack.c.bf16 %v7718_v38, %v7716_v37  ;;  %v7666_v37 = vld [vmem:[#allocation19 + $0x1] ss:$0 sm:$0xff] }
 0x786   :  { %v1637_v46 = vunpack.c.l.bf16 %v1631_v39  ;;  %v1638_v47 = vunpack.c.h.bf16 %v1631_v39  ;;  %2071 = vmatpush.bf16.msrb.mxu0 %v7340_v26  ;;  %v6110_v26 = vld [vmem:[#allocation13 + $0x2b8] sm:$0xf0] }
 0x787   :  { %v1625_v57 = vunpack.c.l.bf16 %v1622_v43  ;;  %v1626_v48 = vunpack.c.h.bf16 %v1622_v43 }
 0x788   :  { %v1641_v62 = vmul.f32 %v1637_v46, %v1633_v45  ;;  %v1642_v49 = vmul.f32 %v1638_v47, %v1634_v56  ;;  %v7668_v46 = vld [vmem:[%s8633_s8 + $0x2] ss:$0 sm:$0xff] }
 0x789   :  { %v1629_v6 = vadd.f32 1.0, %v1625_v57  ;;  %v1630_v14 = vadd.f32 1.0, %v1626_v48 }
 0x78a   :  { %v1645_v51 = vpack.c.bf16 %v1641_v62, %v1641_v62  ;;  %v1646_v15 = vpack.c.bf16 %v1642_v49, %v1642_v49  ;;  %v6132_v62 = vld [vmem:[#allocation13 + $0x2e0] sm:$0xf]  ;;  %v7375_v49 = vld [vmem:[#allocation13 + $0x2ec] sm:$0xf0] }
 0x78b   :  { %v1632_v52 = vpack.c.bf16 %v1630_v14, %v1629_v6  ;;  %v6133_v6 = vor.u32 %v7375_v49, %v6132_v62  ;;  %v6134_v14 = vld [vmem:[#allocation13 + $0x2f0] sm:$0xf0]  ;;  %v6052_v49 = vld [vmem:[#allocation13 + $0x240] sm:$0xf] }
 0x78c   :  { %1919 = vmatmul.bf16.vlgmr.msra.gmra.mxu0 %v1645_v51  ;;  %1932 = vmatmul.bf16.vlgmr.msra.gmra.mxu1 %v1646_v15  ;;  %v6140_v51 = vld [vmem:[#allocation13 + $0x2e8] sm:$0xf]  ;;  %v7376_v15 = vld [vmem:[#allocation13 + $0x2f4] sm:$0xf0] }
 0x78d   :  { %v1639_v53 = vunpack.c.l.bf16 %v1632_v52  ;;  %v1640_v12 = vunpack.c.h.bf16 %v1632_v52  ;;  %v6137_v52 = vor.u32 %v7373_v50, %v6134_v14  ;;  %2318 = vmatpush.bf16.msrb.mxu1 %v6133_v6  ;;  %v7355_v50 = vld [vmem:[#allocation13 + $0x24c] sm:$0xf0]  ;;  %v7353_v6 = vld [vmem:[#allocation13 + $0x244] sm:$0xf] }
 0x78e   :  { %v6053_v14 = vor.u32 %v7355_v50, %v6052_v49  ;;  %v7383_v50 = vld [vmem:[#allocation16 + $0x230] sm:$0xff] }
 0x78f   :  { %v1643_v54 = vmul.f32 %v1639_v53, %v1635_v21  ;;  %v1644_v13 = vmul.f32 %v1640_v12, %v1636_v22  ;;  %v6141_v21 = vor.u32 %v7376_v15, %v6140_v51  ;;  %v7374_v53 = vld [vmem:[#allocation13 + $0x2ec] sm:$0xf]  ;;  %v6142_v22 = vld [vmem:[#allocation13 + $0x2f8] sm:$0xf0]  ;;  %2331 = vmatpush.bf16.msrb.mxu2 %v6137_v52  ;;  %v6054_v51 = vld [vmem:[#allocation13 + $0x250] sm:$0xf0] }
 0x790   :  { %v6145_v12 = vor.u32 %v7374_v53, %v6142_v22  ;;  %v6060_v15 = vld [vmem:[#allocation13 + $0x248] sm:$0xf]  ;;  %v7356_v52 = vld [vmem:[#allocation13 + $0x254] sm:$0xf0]  ;;  %v7354_v22 = vld [vmem:[#allocation13 + $0x24c] sm:$0xf] }
 0x791   :  { %v1647_v55 = vpack.c.bf16 %v1643_v54, %v1643_v54  ;;  %v1648_v58 = vpack.c.bf16 %v1644_v13, %v1644_v13  ;;  %2344 = vmatpush.bf16.msrb.mxu3 %v6141_v21  ;;  %v6057_v21 = vor.u32 %v7353_v6, %v6054_v51  ;;  %v6061_v53 = vor.u32 %v7356_v52, %v6060_v15  ;;  %v7391_v6 = vld [vmem:[#allocation16 + $0x270] sm:$0xff] }
 0x793   :  { %1945 = vmatmul.bf16.vlgmr.msra.gmra.mxu2 %v1647_v55  ;;  %1958 = vmatmul.bf16.vlgmr.msra.gmra.mxu3 %v1648_v58 }
 0x809   :  { %v1920_v59 = vpop.f32.mrf.mxu0  ;;  %v1933_v60 = vpop.f32.mrf.mxu1 }
 0x80a   :  { %v1921_v63 = vadd.f32 %v7665_v61, %v1920_v59  ;;  %v6116_v59 = vld [vmem:[#allocation13 + $0x2c0] sm:$0xf]  ;;  %v7369_v61 = vld [vmem:[#allocation13 + $0x2c4] sm:$0xf] }
 0x80c   :  { %v1934_v2 = vadd.f32 %v1933_v60, %v1921_v63  ;;  %v7371_v60 = vld [vmem:[#allocation13 + $0x2cc] sm:$0xf0] }
 0x80d   :  { %v6117_v63 = vor.u32 %v7371_v60, %v6116_v59  ;;  %v7349_v59 = vld [vmem:[#allocation13 + $0x224] sm:$0xf] }
 0x80f   :  { %2319 = vmatpush.bf16.msrb.mxu1 %v6117_v63  ;;  %v6044_v63 = vld [vmem:[#allocation13 + $0x228] sm:$0xf] }
 0x811   :  { %v1922_v0 = vpop.f32.mrf.mxu0  ;;  %v1935_v1 = vpop.f32.mrf.mxu1 }
 0x812   :  { %v6118_v0 = vld [vmem:[#allocation13 + $0x2d0] sm:$0xf0]  ;;  %v6124_v1 = vld [vmem:[#allocation13 + $0x2c8] sm:$0xf] }
 0x816   :  { %v1946_v4 = vpop.f32.mrf.mxu2  ;;  %v1959_v5 = vpop.f32.mrf.mxu3 }
 0x817   :  { %v1947_v7 = vadd.f32 %v1946_v4, %v1934_v2  ;;  %v7372_v2 = vld [vmem:[#allocation13 + $0x2d4] sm:$0xf0]  ;;  %v6121_v4 = vor.u32 %v7369_v61, %v6118_v0  ;;  %v6038_v61 = vld [vmem:[#allocation13 + $0x230] sm:$0xf0] }
 0x818   :  { %v7352_v0 = vld [vmem:[#allocation13 + $0x234] sm:$0xf0] }
 0x819   :  { %v1960_v8 = vadd.f32 %v1959_v5, %v1947_v7  ;;  %v6125_v5 = vor.u32 %v7372_v2, %v6124_v1  ;;  %v7370_v7 = vld [vmem:[#allocation13 + $0x2cc] sm:$0xf]  ;;  %2332 = vmatpush.bf16.msrb.mxu2 %v6121_v4  ;;  %v6041_v1 = vor.u32 %v7349_v59, %v6038_v61  ;;  %v6045_v2 = vor.u32 %v7352_v0, %v6044_v63  ;;  %v7382_v59 = vld [vmem:[#allocation16 + $0x228] sm:$0xff] }
 0x81a   :  { %v7350_v4 = vld [vmem:[#allocation13 + $0x22c] sm:$0xf]  ;;  %v7398_v61 = vld [vmem:[#allocation16 + $0x2a8] sm:$0xff] }
 0x81b   :  { %v1963_v9 = vadd.f32 %v1960_v8, %v8341_v41  ;;  %v7339_v41 = vld [vmem:[#allocation11 + $0x90] sm:$0xff]  ;;  %v6126_v8 = vld [vmem:[#allocation13 + $0x2d8] sm:$0xf0]  ;;  %2345 = vmatpush.bf16.msrb.mxu3 %v6125_v5 }
 0x81c   :  { %2072 = vmatpush.bf16.msrb.mxu0 %v7339_v41  ;;  %v6113_v41 = vor.u32 %v7366_v25, %v6110_v26  ;;  %v6046_v5 = vld [vmem:[#allocation13 + $0x238] sm:$0xf0] }
 0x81d   :  { %1968 = vadd.xlane.f32.xlu2 %v1963_v9 }
 0x81e   :  { %v1948_v10 = vpop.f32.mrf.mxu2  ;;  %v1961_v11 = vpop.f32.mrf.mxu3 }
 0x81f   :  { %v6100_v10 = vld [vmem:[#allocation13 + $0x2a0] sm:$0xf]  ;;  %v7367_v11 = vld [vmem:[#allocation13 + $0x2ac] sm:$0xf0] }
 0x820   :  { %2073 = vmatpush.bf16.msrb.mxu0 %v7338_v27  ;;  %v6084_v27 = vld [vmem:[#allocation13 + $0x280] sm:$0xf] }
 0x824   :  { %2074 = vmatpush.bf16.msrb.mxu0 %v7337_v28  ;;  %v7363_v28 = vld [vmem:[#allocation13 + $0x28c] sm:$0xf0] }
 0x828   :  { %2357 = vmatpush.bf16.msra.mxu0 %v6145_v12  ;;  %v6062_v12 = vld [vmem:[#allocation13 + $0x258] sm:$0xf0] }
 0x890   :  { %v1969_v17 = vpop.xlane.xlu2 %1968 }
 0x891   :  { %v1970_v18 = vmul.f32 %v1969_v17, %v8272_v3  ;;  %v6101_v17 = vor.u32 %v7367_v11, %v6100_v10  ;;  %v7345_v10 = vld [vmem:[#allocation13 + $0x204] sm:$0xf]  ;;  %v6022_v11 = vld [vmem:[#allocation13 + $0x210] sm:$0xf0] }
 0x893   :  { %v1971_v19 = vsub.f32 %v1963_v9, %v1970_v18  ;;  %v6129_v9 = vor.u32 %v7370_v7, %v6126_v8  ;;  %v6102_v18 = vld [vmem:[#allocation13 + $0x2b0] sm:$0xf0]  ;;  %2320 = vmatpush.bf16.msrb.mxu1 %v6101_v17  ;;  %v6020_v7 = vld [vmem:[#allocation13 + $0x200] sm:$0xf]  ;;  %v6049_v8 = vor.u32 %v7350_v4, %v6046_v5  ;;  %v6025_v17 = vor.u32 %v7345_v10, %v6022_v11  ;;  %v7381_v11 = vld [vmem:[#allocation16 + $0x220] sm:$0xff] }
 0x894   :  { %v6105_v23 = vor.u32 %v7365_v16, %v6102_v18  ;;  %v6028_v18 = vld [vmem:[#allocation13 + $0x208] sm:$0xf] }
 0x895   :  { %v1972_v20 = vmul.f32 %v1971_v19, %v1971_v19  ;;  %2358 = vmatpush.bf16.msra.mxu0 %v6129_v9  ;;  %v7347_v9 = vld [vmem:[#allocation13 + $0x20c] sm:$0xf0] }
 0x896   :  { %2333 = vmatpush.bf16.msrb.mxu2 %v6105_v23  ;;  %v6021_v16 = vor.u32 %v7347_v9, %v6020_v7 }
 0x897   :  { %1973 = vadd.xlane.f32.xlu1 %v1972_v20  ;;  %v7368_v20 = vld [vmem:[#allocation13 + $0x2b4] sm:$0xf0] }
 0x899   :  { %2359 = vmatpush.bf16.msra.mxu0 %v6113_v41 }
 0x90a   :  { %v1974_v29 = vpop.xlane.xlu1 %1973 }
 0x90b   :  { %v1975_v44 = vmul.f32 %v1974_v29, %v8272_v3  ;;  %v7361_v29 = vld [vmem:[#allocation13 + $0x284] sm:$0xf] }
 0x90d   :  { %v1976_v30 = vadd.f32 1e-05, %v1975_v44  ;;  %v6085_v44 = vor.u32 %v7363_v28, %v6084_v27 }
 0x90f   :  { %7719 = vrsqrt.f32 %v1976_v30  ;;  %vm1983_vm12 = vweird.f32 %v1976_v30  ;;  %2321 = vmatpush.bf16.msrb.mxu1 %v6085_v44 }
 0x915   :  { %v7720_v31 = vpop.eup %7719 }
 0x916   :  { %v1978_v32 = vmul.f32 %v7720_v31, %v1976_v30  ;;  %vm1984_vm11 = vweird.f32 %v7720_v31  ;;  %v6086_v30 = vld [vmem:[#allocation13 + $0x290] sm:$0xf0] }
 0x917   :  { %vm1985_vm13 = vmor %vm1983_vm12, %vm1984_vm11 }
 0x918   :  { %v1979_v33 = vmul.f32 %v7720_v31, %v1978_v32  ;;  %v7364_v32 = vld [vmem:[#allocation13 + $0x294] sm:$0xf0] }
 0x91a   :  { %v1980_v34 = vmul.f32 0.5, %v1979_v33  ;;  %v6089_v33 = vor.u32 %v7361_v29, %v6086_v30 }
 0x91c   :  { %v1981_v35 = vsub.f32 1.5, %v1980_v34  ;;  %2334 = vmatpush.bf16.msrb.mxu2 %v6089_v33  ;;  %v7669_v33 = vld [vmem:[%s8634_s9 + $0x2] ss:$0 sm:$0xff] }
 0x91e   :  { %v1982_v36 = vmul.f32 %v7720_v31, %v1981_v35  ;;  %v7362_v35 = vld [vmem:[#allocation13 + $0x28c] sm:$0xf] }
 0x920   :  { %v1986_v38 = vsel %vm1985_vm13, %v7720_v31, %v1982_v36  ;;  %v6092_v31 = vld [vmem:[#allocation13 + $0x288] sm:$0xf]  ;;  %v6094_v36 = vld [vmem:[#allocation13 + $0x298] sm:$0xf0] }
 0x921   :  { %v1987_v39 = vmul.f32 %v1986_v38, %v1971_v19  ;;  %v6108_v19 = vld [vmem:[#allocation13 + $0x2a8] sm:$0xf]  ;;  %v6093_v34 = vor.u32 %v7364_v32, %v6092_v31  ;;  %v6068_v38 = vld [vmem:[#allocation13 + $0x260] sm:$0xf] }
 0x922   :  { %v6109_v24 = vor.u32 %v7368_v20, %v6108_v19  ;;  %v7348_v19 = vld [vmem:[#allocation13 + $0x214] sm:$0xf0]  ;;  %v7346_v20 = vld [vmem:[#allocation13 + $0x20c] sm:$0xf] }
 0x923   :  { %v1991_v42 = vmul.f32 %v7666_v37, %v1987_v39  ;;  %v6097_v37 = vor.u32 %v7362_v35, %v6094_v36  ;;  %v7359_v39 = vld [vmem:[#allocation13 + $0x26c] sm:$0xf0]  ;;  %v6029_v23 = vor.u32 %v7348_v19, %v6028_v18  ;;  %v7670_v36 = vld [vmem:[%s8635_s10 + $0x2] ss:$0 sm:$0xff] }
 0x924   :  { %2346 = vmatpush.bf16.msrb.mxu3 %v6109_v24  ;;  %v6030_v24 = vld [vmem:[#allocation13 + $0x218] sm:$0xf0] }
 0x925   :  { %v1995_v43 = vadd.f32 %v7667_v40, %v1991_v42  ;;  %v7357_v40 = vld [vmem:[#allocation13 + $0x264] sm:$0xf]  ;;  %2360 = vmatpush.bf16.msra.mxu0 %v6097_v37  ;;  %v6069_v42 = vor.u32 %v7359_v39, %v6068_v38  ;;  %v6033_v25 = vor.u32 %v7346_v20, %v6030_v24  ;;  %v7405_v20 = vld [vmem:[#allocation16 + $0x2e0] sm:$0xff]  ;;  %v7380_v24 = vld [vmem:[#allocation16 + $0x218] sm:$0xff] }
 0x927   :  { %v1996_v45 = vpack.c.bf16 %v1995_v43, %v1995_v43  ;;  %2322 = vmatpush.bf16.msrb.mxu1 %v6069_v42 }
 0x928   :  { %2347 = vmatpush.bf16.msrb.mxu3 %v6093_v34 }
 0x929   :  { %2075 = vmatmul.bf16.vlgmr.msrb.gmra.mxu0 %v1996_v45  ;;  %v6076_v45 = vld [vmem:[#allocation13 + $0x268] sm:$0xf] }
 0x92b   :  { %2323 = vmatpush.bf16.msrb.mxu1 %v6053_v14  ;;  %v7399_v14 = vld [vmem:[#allocation16 + $0x2b0] sm:$0xff] }
 0x9a6   :  { %v2076_v56 = vpop.f32.mrf.mxu0 }
 0x9a7   :  { %v2077_v47 = vadd.f32 %v7668_v46, %v2076_v56  ;;  %v7360_v46 = vld [vmem:[#allocation13 + $0x274] sm:$0xf0] }
 0x9a9   :  { %v2080_v57 = vadd.f32 %v2077_v47, %v1995_v43  ;;  %v6070_v43 = vld [vmem:[#allocation13 + $0x270] sm:$0xf0]  ;;  %v6077_v47 = vor.u32 %v7360_v46, %v6076_v45 }
 0x9aa   :  { %v6073_v56 = vor.u32 %v7357_v40, %v6070_v43  ;;  %v2148_v40 = vld [vmem:[#allocation14 + $0x8] sm:$0xf]  ;;  %v7384_v45 = vld [vmem:[#allocation16 + $0x238] sm:$0xff] }
 0x9ab   :  { %2085 = vadd.xlane.f32.xlu2 %v2080_v57  ;;  %2348 = vmatpush.bf16.msrb.mxu3 %v6077_v47  ;;  %v7392_v46 = vld [vmem:[#allocation16 + $0x278] sm:$0xff]  ;;  %v2151_v47 = vperm.slane %v2148_v40, 1 }
 0x9ac   :  { %2335 = vmatpush.bf16.msrb.mxu2 %v6073_v56  ;;  %v2150_v56 = vperm.slane %v2148_v40, 0 }
 0x9ae   :  { %v2078_v48 = vpop.f32.mrf.mxu0 }
 0x9af   :  { %v6078_v48 = vld [vmem:[#allocation13 + $0x278] sm:$0xf0]  ;;  %2349 = vmatpush.bf16.msrb.mxu3 %v6061_v53 }
 0x9b0   :  { %2336 = vmatpush.bf16.msrb.mxu2 %v6057_v21  ;;  %v7407_v21 = vld [vmem:[#allocation16 + $0x2f0] sm:$0xff] }
 0x9b3   :  { %2350 = vmatpush.bf16.msrb.mxu3 %v6045_v2 }
 0x9b4   :  { %2337 = vmatpush.bf16.msrb.mxu2 %v6041_v1  ;;  %v7406_v1 = vld [vmem:[#allocation16 + $0x2e8] sm:$0xff] }
 0x9b7   :  { %2351 = vmatpush.bf16.msrb.mxu3 %v6029_v23 }
 0x9b8   :  { %2338 = vmatpush.bf16.msrb.mxu2 %v6025_v17  ;;  %v7397_v17 = vld [vmem:[#allocation16 + $0x2a0] sm:$0xff] }
 0x9bc   :  { %2739 = vmatpush.bf16.msra.mxu2 %v7392_v46 }
 0x9c0   :  { %2740 = vmatpush.bf16.msra.mxu2 %v7391_v6 }
 0xa1e   :  { %v2086_v54 = vpop.xlane.xlu2 %2085 }
 0xa1f   :  { %v2087_v13 = vmul.f32 %v2086_v54, %v8272_v3  ;;  %v6065_v54 = vor.u32 %v7354_v22, %v6062_v12 }
 0xa21   :  { %v8383_v55 = vsub.f32 %v2080_v57, %v2087_v13  ;;  %v7358_v57 = vld [vmem:[#allocation13 + $0x26c] sm:$0xf]  ;;  %v6036_v13 = vld [vmem:[#allocation13 + $0x220] sm:$0xf] }
 0xa22   :  { %v6081_v62 = vor.u32 %v7358_v57, %v6078_v48  ;;  %v7408_v57 = vld [vmem:[#allocation16 + $0x2f8] sm:$0xff]  ;;  %v2153_v48 = vperm.slane %v2148_v40, 3 }
 0xa23   :  { %v2089_v58 = vmul.f32 %v8383_v55, %v8383_v55 }
 0xa24   :  { %2361 = vmatpush.bf16.msra.mxu0 %v6081_v62  ;;  %v2152_v62 = vperm.slane %v2148_v40, 2 }
 0xa25   :  { %2090 = vadd.xlane.f32.xlu1 %v2089_v58  ;;  %v7351_v58 = vld [vmem:[#allocation13 + $0x22c] sm:$0xf0] }
 0xa26   :  { %v6037_v60 = vor.u32 %v7351_v58, %v6036_v13 }
 0xa28   :  { %2362 = vmatpush.bf16.msra.mxu0 %v6065_v54  ;;  %2324 = vmatpush.bf16.msrb.mxu1 %v6037_v60  ;;  %v7390_v60 = vld [vmem:[#allocation16 + $0x268] sm:$0xff] }
 0xa29   :  { %2741 = vmatpush.bf16.msra.mxu2 %v7390_v60 }
 0xa2c   :  { %2363 = vmatpush.bf16.msra.mxu0 %v6049_v8  ;;  %2325 = vmatpush.bf16.msrb.mxu1 %v6021_v16  ;;  %v7389_v16 = vld [vmem:[#allocation16 + $0x260] sm:$0xff] }
 0xa2d   :  { %2742 = vmatpush.bf16.msra.mxu2 %v7389_v16 }
 0xa30   :  { %2364 = vmatpush.bf16.msra.mxu0 %v6033_v25  ;;  %2726 = vmatpush.bf16.msra.mxu1 %v7384_v45  ;;  %v7388_v25 = vld [vmem:[#allocation16 + $0x258] sm:$0xff] }
 0xa31   :  { %2743 = vmatpush.bf16.msra.mxu2 %v7388_v25 }
 0xa34   :  { %2765 = vmatpush.bf16.msrb.mxu0 %v7408_v57  ;;  %2727 = vmatpush.bf16.msra.mxu1 %v7383_v50 }
 0xa38   :  { %2766 = vmatpush.bf16.msrb.mxu0 %v7407_v21  ;;  %2728 = vmatpush.bf16.msra.mxu1 %v7382_v59 }
 0xa3c   :  { %2767 = vmatpush.bf16.msrb.mxu0 %v7406_v1  ;;  %2729 = vmatpush.bf16.msra.mxu1 %v7381_v11 }
 0xa40   :  { %2768 = vmatpush.bf16.msrb.mxu0 %v7405_v20  ;;  %2730 = vmatpush.bf16.msra.mxu1 %v7380_v24 }
 0xa98   :  { %v2091_v26 = vpop.xlane.xlu1 %2090 }
 0xa99   :  { %v2092_v41 = vmul.f32 %v2091_v26, %v8272_v3 }
 0xa9b   :  { %v2093_v27 = vadd.f32 1e-05, %v2092_v41 }
 0xa9d   :  { %7721 = vrsqrt.f32 %v2093_v27  ;;  %vm2100_vm15 = vweird.f32 %v2093_v27 }
 0xaa3   :  { %v7722_v28 = vpop.eup %7721 }
 0xaa4   :  { %v2095_v29 = vmul.f32 %v7722_v28, %v2093_v27  ;;  %vm2101_vm14 = vweird.f32 %v7722_v28  ;;  %v7396_v27 = vld [vmem:[#allocation16 + $0x298] sm:$0xff] }
 0xaa5   :  { %vm2102_vm0 = vmor %vm2100_vm15, %vm2101_vm14 }
 0xaa6   :  { %v2096_v44 = vmul.f32 %v7722_v28, %v2095_v29 }
 0xaa8   :  { %v2097_v30 = vmul.f32 0.5, %v2096_v44 }
 0xaaa   :  { %v2098_v31 = vsub.f32 1.5, %v2097_v30 }
 0xaac   :  { %v2099_v32 = vmul.f32 %v7722_v28, %v2098_v31 }
 0xaae   :  { %v2103_v34 = vsel %vm2102_vm0, %v7722_v28, %v2099_v32  ;;  %v7404_v28 = vld [vmem:[#allocation16 + $0x2d8] sm:$0xff] }
 0xaaf   :  { %v2104_v35 = vmul.f32 %v2103_v34, %v8383_v55  ;;  %v7400_v55 = vld [vmem:[#allocation16 + $0x2b8] sm:$0xff]  ;;  %v7379_v34 = vld [vmem:[#allocation16 + $0x210] sm:$0xff]  ;;  %2769 = vmatpush.bf16.msrb.mxu0 %v7404_v28 }
 0xab0   :  { %2752 = vmatpush.bf16.msra.mxu3 %v7400_v55  ;;  %2731 = vmatpush.bf16.msra.mxu1 %v7379_v34  ;;  %v7378_v55 = vld [vmem:[#allocation16 + $0x208] sm:$0xff] }
 0xab1   :  { %v2108_v37 = vmul.f32 %v7669_v33, %v2104_v35  ;;  %v7387_v35 = vld [vmem:[#allocation16 + $0x250] sm:$0xff] }
 0xab2   :  { %2744 = vmatpush.bf16.msra.mxu2 %v7387_v35 }
 0xab3   :  { %v8395_v38 = vadd.f32 %v7670_v36, %v2108_v37  ;;  %v7395_v37 = vld [vmem:[#allocation16 + $0x290] sm:$0xff] }
 0xab4   :  { %2753 = vmatpush.bf16.msra.mxu3 %v7399_v14  ;;  %2732 = vmatpush.bf16.msra.mxu1 %v7378_v55 }
 0xab5   :  { %v2113_v39 = vpack.c.bf16 %v8395_v38, %v8395_v38 }
 0xab7   :  { %2326 = vmatmul.bf16.vlgmr.msrb.gmra.mxu1 %v2113_v39  ;;  %2339 = vmatmul.bf16.vlgmr.msrb.gmra.mxu2 %v2113_v39 }
 0xab8   :  { %2352 = vmatmul.bf16.vlgmr.msrb.gmra.mxu3 %v2113_v39  ;;  %2365 = vmatmul.bf16.vlgmr.msra.gmra.mxu0 %v2113_v39  ;;  %v7403_v39 = vld [vmem:[#allocation16 + $0x2d0] sm:$0xff] }
 0xab9   :  { %2754 = vmatpush.bf16.msra.mxu3 %v7398_v61  ;;  %2770 = vmatpush.bf16.msrb.mxu0 %v7403_v39 }
 0xabd   :  { %2755 = vmatpush.bf16.msra.mxu3 %v7397_v17 }
 0xac1   :  { %2756 = vmatpush.bf16.msra.mxu3 %v7396_v27 }
 0xac5   :  { %2757 = vmatpush.bf16.msra.mxu3 %v7395_v37 }
 0xb34   :  { %v2327_v42 = vpop.f32.mrf.mxu1 }
 0xb35   :  { %v2366_v43 = vpop.f32.mrf.mxu0  ;;  %v2328_v51 = vadd.f32 %v2327_v42, %v2150_v56  ;;  %v7386_v56 = vld [vmem:[#allocation16 + $0x248] sm:$0xff] }
 0xb36   :  { %v2367_v53 = vadd.f32 %v2366_v43, %v2153_v48  ;;  %v7394_v48 = vld [vmem:[#allocation16 + $0x288] sm:$0xff]  ;;  %2745 = vmatpush.bf16.msra.mxu2 %v7386_v56 }
 0xb37   :  { %2758 = vmatpush.bf16.msra.mxu3 %v7394_v48 }
 0xb3a   :  { %v2340_v49 = vpop.f32.mrf.mxu2 }
 0xb3b   :  { %v2341_v15 = vadd.f32 %v2340_v49, %v2151_v47  ;;  %v2353_v52 = vpop.f32.mrf.mxu3 }
 0xb3c   :  { %v2354_v22 = vadd.f32 %v2353_v52, %v2152_v62  ;;  %v2329_v12 = vpop.f32.mrf.mxu1  ;;  %v7402_v62 = vld [vmem:[#allocation16 + $0x2c8] sm:$0xff] }
 0xb3d   :  { %v2370_v54 = vpack.c.bf16 %v2341_v15, %v2328_v51  ;;  %v2368_v13 = vpop.f32.mrf.mxu0  ;;  %v7377_v51 = vld [vmem:[#allocation16 + $0x200] sm:$0xff]  ;;  %2771 = vmatpush.bf16.msrb.mxu0 %v7402_v62 }
 0xb3e   :  { %v2371_v58 = vpack.c.bf16 %v2367_v53, %v2354_v22  ;;  %v7385_v15 = vld [vmem:[#allocation16 + $0x240] sm:$0xff]  ;;  %2733 = vmatpush.bf16.msra.mxu1 %v7377_v51 }
 0xb3f   :  { %v8399_v63 = vunpack.c.l.bf16 %v2370_v54  ;;  %v8401_v0 = vunpack.c.h.bf16 %v2370_v54  ;;  %v7393_v53 = vld [vmem:[#allocation16 + $0x280] sm:$0xff]  ;;  %2746 = vmatpush.bf16.msra.mxu2 %v7385_v15 }
 0xb40   :  { %v8403_v2 = vunpack.c.l.bf16 %v2371_v58  ;;  %v8405_v4 = vunpack.c.h.bf16 %v2371_v58  ;;  %v7401_v22 = vld [vmem:[#allocation16 + $0x2c0] sm:$0xff]  ;;  %2759 = vmatpush.bf16.msra.mxu3 %v7393_v53 }
 0xb41   :  { %v2376_v5 = vmul.f32 %v8399_v63, %v8399_v63  ;;  %v2377_v7 = vmul.f32 %v8401_v0, %v8401_v0  ;;  %2772 = vmatpush.bf16.msrb.mxu0 %v7401_v22  ;;  %v2422_v27 = vmul.f32 0.5, %v8399_v63  ;;  %v2423_v28 = vmul.f32 0.5, %v8401_v0  ;;  %v7671_v22 = vld [vmem:[#allocation17 + $0x2] ss:$0 sm:$0xff] }
 0xb42   :  { %v2378_v8 = vmul.f32 %v8403_v2, %v8403_v2  ;;  %v2379_v9 = vmul.f32 %v8405_v4, %v8405_v4  ;;  %v2342_v10 = vpop.f32.mrf.mxu2 }
 0xb43   :  { %v2380_v18 = vpack.c.bf16 %v2377_v7, %v2376_v5  ;;  %v2355_v19 = vpop.f32.mrf.mxu3 }
 0xb44   :  { %v2381_v23 = vpack.c.bf16 %v2379_v9, %v2378_v8 }
 0xb45   :  { %v2382_v26 = vunpack.c.l.bf16 %v2380_v18  ;;  %v2383_v41 = vunpack.c.h.bf16 %v2380_v18 }
 0xb46   :  { %v2384_v29 = vunpack.c.l.bf16 %v2381_v23  ;;  %v2385_v44 = vunpack.c.h.bf16 %v2381_v23 }
 0xb47   :  { %v2386_v30 = vmul.f32 %v2382_v26, %v8399_v63  ;;  %v2387_v31 = vmul.f32 %v2383_v41, %v8401_v0 }
 0xb48   :  { %v2388_v32 = vmul.f32 %v2384_v29, %v8403_v2  ;;  %v2389_v33 = vmul.f32 %v2385_v44, %v8405_v4 }
 0xb49   :  { %v2390_v36 = vpack.c.bf16 %v2387_v31, %v2386_v30  ;;  %v2424_v31 = vmul.f32 0.5, %v8403_v2 }
 0xb4a   :  { %v2391_v40 = vpack.c.bf16 %v2389_v33, %v2388_v32  ;;  %v2425_v32 = vmul.f32 0.5, %v8405_v4 }
 0xb4b   :  { %v2392_v42 = vunpack.c.l.bf16 %v2390_v36  ;;  %v2393_v43 = vunpack.c.h.bf16 %v2390_v36  ;;  %v2426_v36 = vpack.c.bf16 %v2423_v28, %v2422_v27 }
 0xb4c   :  { %v2394_v45 = vunpack.c.l.bf16 %v2391_v40  ;;  %v2395_v46 = vunpack.c.h.bf16 %v2391_v40 }
 0xb4d   :  { %v2396_v47 = vmul.f32 0.044677734, %v2392_v42  ;;  %v2397_v57 = vmul.f32 0.044677734, %v2393_v43  ;;  %v2427_v43 = vpack.c.bf16 %v2425_v32, %v2424_v31  ;;  %v2449_v56 = vunpack.c.h.bf16 %v2426_v36 }
 0xb4e   :  { %v2398_v49 = vmul.f32 0.044677734, %v2394_v45  ;;  %v2399_v50 = vmul.f32 0.044677734, %v2395_v46 }
 0xb4f   :  { %v2400_v6 = vpack.c.bf16 %v2397_v57, %v2396_v47  ;;  %v2451_v48 = vunpack.c.h.bf16 %v2427_v43 }
 0xb50   :  { %v2401_v14 = vpack.c.bf16 %v2399_v50, %v2398_v49 }
 0xb51   :  { %v2402_v52 = vunpack.c.l.bf16 %v2400_v6  ;;  %v2403_v21 = vunpack.c.h.bf16 %v2400_v6 }
 0xb52   :  { %v2404_v12 = vunpack.c.l.bf16 %v2401_v14  ;;  %v2405_v54 = vunpack.c.h.bf16 %v2401_v14 }
 0xb53   :  { %v2406_v13 = vadd.f32 %v2402_v52, %v8399_v63  ;;  %v2407_v58 = vadd.f32 %v2403_v21, %v8401_v0  ;;  %v2448_v0 = vunpack.c.l.bf16 %v2426_v36 }
 0xb54   :  { %v2408_v59 = vadd.f32 %v2404_v12, %v8403_v2  ;;  %v2409_v60 = vadd.f32 %v2405_v54, %v8405_v4  ;;  %v2450_v2 = vunpack.c.l.bf16 %v2427_v43  ;;  %v7674_v43 = vld [vmem:[%s8633_s8 + $0x3] ss:$0 sm:$0xff] }
 0xb55   :  { %v2410_v61 = vpack.c.bf16 %v2407_v58, %v2406_v13 }
 0xb56   :  { %v2411_v1 = vpack.c.bf16 %v2409_v60, %v2408_v59 }
 0xb57   :  { %v2412_v5 = vunpack.c.l.bf16 %v2410_v61  ;;  %v2413_v7 = vunpack.c.h.bf16 %v2410_v61 }
 0xb58   :  { %v2414_v8 = vunpack.c.l.bf16 %v2411_v1  ;;  %v2415_v9 = vunpack.c.h.bf16 %v2411_v1 }
 0xb59   :  { %v2416_v10 = vmul.f32 0.796875, %v2412_v5  ;;  %v2417_v11 = vmul.f32 0.796875, %v2413_v7 }
 0xb5a   :  { %v2418_v16 = vmul.f32 0.796875, %v2414_v8  ;;  %v2419_v17 = vmul.f32 0.796875, %v2415_v9 }
 0xb5b   :  { %v2420_v18 = vpack.c.bf16 %v2417_v11, %v2416_v10  ;;  %v7416_v10 = vld [vmem:[#allocation11 + $0xf8] sm:$0xff] }
 0xb5c   :  { %v2421_v19 = vpack.c.bf16 %v2419_v17, %v2418_v16  ;;  %2882 = vmatpush.bf16.msrb.mxu1 %v7416_v10  ;;  %v7437_v10 = vld [vmem:[#allocation13 + $0x3a4] sm:$0xf] }
 0xb5d   :  { %v2428_v20 = vunpack.c.l.bf16 %v2420_v18  ;;  %v2429_v23 = vunpack.c.h.bf16 %v2420_v18 }
 0xb5e   :  { %v2430_v24 = vunpack.c.l.bf16 %v2421_v19  ;;  %v2431_v25 = vunpack.c.h.bf16 %v2421_v19  ;;  %v7415_v19 = vld [vmem:[#allocation11 + $0xf0] sm:$0xff] }
 0xb5f   :  { %7723 = vtanh.f32 %v2428_v20  ;;  %v7414_v20 = vld [vmem:[#allocation11 + $0xe8] sm:$0xff] }
 0xb60   :  { %7725 = vtanh.f32 %v2429_v23  ;;  %2883 = vmatpush.bf16.msrb.mxu1 %v7415_v19  ;;  %v7413_v23 = vld [vmem:[#allocation11 + $0xe0] sm:$0xff] }
 0xb61   :  { %7727 = vtanh.f32 %v2430_v24  ;;  %v7412_v24 = vld [vmem:[#allocation11 + $0xd8] sm:$0xff] }
 0xb62   :  { %7729 = vtanh.f32 %v2431_v25  ;;  %v7410_v25 = vld [vmem:[#allocation11 + $0xc8] sm:$0xff] }
 0xb64   :  { %2884 = vmatpush.bf16.msrb.mxu1 %v7414_v20 }
 0xb65   :  { %v7724_v26 = vpop.eup %7723 }
 0xb66   :  { %v7726_v41 = vpop.eup %7725 }
 0xb67   :  { %v7728_v29 = vpop.eup %7727  ;;  %v2436_v44 = vpack.c.bf16 %v7726_v41, %v7724_v26  ;;  %v7409_v26 = vld [vmem:[#allocation11 + $0xc0] sm:$0xff] }
 0xb68   :  { %v7730_v30 = vpop.eup %7729  ;;  %2885 = vmatpush.bf16.msrb.mxu1 %v7413_v23  ;;  %v7438_v23 = vld [vmem:[#allocation13 + $0x3ac] sm:$0xf] }
 0xb69   :  { %v2438_v33 = vunpack.c.l.bf16 %v2436_v44  ;;  %v2439_v34 = vunpack.c.h.bf16 %v2436_v44  ;;  %v2437_v35 = vpack.c.bf16 %v7730_v30, %v7728_v29 }
 0xb6b   :  { %v2442_v37 = vadd.f32 1.0, %v2438_v33  ;;  %v2443_v39 = vadd.f32 1.0, %v2439_v34  ;;  %v2440_v40 = vunpack.c.l.bf16 %v2437_v35  ;;  %v2441_v42 = vunpack.c.h.bf16 %v2437_v35  ;;  %v7672_v34 = vld [vmem:[#allocation19 + $0x2] ss:$0 sm:$0xff] }
 0xb6c   :  { %2886 = vmatpush.bf16.msrb.mxu1 %v7412_v24  ;;  %v6402_v24 = vld [vmem:[#allocation13 + $0x3b8] sm:$0xf0] }
 0xb6d   :  { %v2446_v45 = vpack.c.bf16 %v2443_v39, %v2442_v37  ;;  %v2444_v63 = vadd.f32 1.0, %v2440_v40  ;;  %v2445_v46 = vadd.f32 1.0, %v2441_v42  ;;  %v7673_v37 = vld [vmem:[%s8641_s16 + $0x2] ss:$0 sm:$0xff] }
 0xb6f   :  { %v2452_v55 = vunpack.c.l.bf16 %v2446_v45  ;;  %v2453_v47 = vunpack.c.h.bf16 %v2446_v45  ;;  %v2447_v57 = vpack.c.bf16 %v2445_v46, %v2444_v63 }
 0xb71   :  { %v2456_v4 = vmul.f32 %v2452_v55, %v2448_v0  ;;  %v2457_v62 = vmul.f32 %v2453_v47, %v2449_v56  ;;  %v2454_v49 = vunpack.c.l.bf16 %v2447_v57  ;;  %v2455_v50 = vunpack.c.h.bf16 %v2447_v57  ;;  %v6424_v55 = vld [vmem:[#allocation13 + $0x3e0] sm:$0xf]  ;;  %v7447_v56 = vld [vmem:[#allocation13 + $0x3ec] sm:$0xf0]  ;;  %v7445_v47 = vld [vmem:[#allocation13 + $0x3e4] sm:$0xf] }
 0xb72   :  { %v6425_v57 = vor.u32 %v7447_v56, %v6424_v55  ;;  %v6344_v56 = vld [vmem:[#allocation13 + $0x340] sm:$0xf] }
 0xb73   :  { %v2460_v6 = vpack.c.bf16 %v2456_v4, %v2456_v4  ;;  %v2461_v14 = vpack.c.bf16 %v2457_v62, %v2457_v62  ;;  %v2458_v51 = vmul.f32 %v2454_v49, %v2450_v2  ;;  %v2459_v15 = vmul.f32 %v2455_v50, %v2451_v48  ;;  %v6426_v2 = vld [vmem:[#allocation13 + $0x3f0] sm:$0xf0]  ;;  %v6432_v48 = vld [vmem:[#allocation13 + $0x3e8] sm:$0xf]  ;;  %v7448_v4 = vld [vmem:[#allocation13 + $0x3f4] sm:$0xf0] }
 0xb74   :  { %v6429_v62 = vor.u32 %v7445_v47, %v6426_v2  ;;  %v6433_v49 = vor.u32 %v7448_v4, %v6432_v48  ;;  %v7446_v50 = vld [vmem:[#allocation13 + $0x3ec] sm:$0xf]  ;;  %3133 = vmatpush.bf16.msrb.mxu2 %v6425_v57  ;;  %v7427_v47 = vld [vmem:[#allocation13 + $0x34c] sm:$0xf0]  ;;  %v7425_v57 = vld [vmem:[#allocation13 + $0x344] sm:$0xf] }
 0xb75   :  { %2734 = vmatmul.bf16.vlgmr.msra.gmra.mxu1 %v2460_v6  ;;  %2747 = vmatmul.bf16.vlgmr.msra.gmra.mxu2 %v2461_v14  ;;  %v2462_v52 = vpack.c.bf16 %v2458_v51, %v2458_v51  ;;  %v2463_v21 = vpack.c.bf16 %v2459_v15, %v2459_v15  ;;  %v6434_v6 = vld [vmem:[#allocation13 + $0x3f8] sm:$0xf0]  ;;  %v6345_v2 = vor.u32 %v7427_v47, %v6344_v56  ;;  %v6346_v48 = vld [vmem:[#allocation13 + $0x350] sm:$0xf0]  ;;  %v6352_v4 = vld [vmem:[#allocation13 + $0x348] sm:$0xf] }
 0xb76   :  { %v6437_v14 = vor.u32 %v7446_v50, %v6434_v6  ;;  %3146 = vmatpush.bf16.msrb.mxu3 %v6429_v62  ;;  %3159 = vmatpush.bf16.msra.mxu0 %v6433_v49  ;;  %v7428_v62 = vld [vmem:[#allocation13 + $0x354] sm:$0xf0]  ;;  %v6349_v49 = vor.u32 %v7425_v57, %v6346_v48  ;;  %v7426_v6 = vld [vmem:[#allocation13 + $0x34c] sm:$0xf]  ;;  %v7470_v48 = vld [vmem:[#allocation16 + $0x3a8] sm:$0xff] }
 0xb77   :  { %2760 = vmatmul.bf16.vlgmr.msra.gmra.mxu3 %v2462_v52  ;;  %2773 = vmatmul.bf16.vlgmr.msrb.gmra.mxu0 %v2463_v21  ;;  %v6353_v50 = vor.u32 %v7428_v62, %v6352_v4  ;;  %v7478_v4 = vld [vmem:[#allocation16 + $0x3e8] sm:$0xff] }
 0xbf2   :  { %v2735_v53 = vpop.f32.mrf.mxu1 }
 0xbf3   :  { %v2736_v54 = vadd.f32 %v7671_v22, %v2735_v53  ;;  %v6408_v53 = vld [vmem:[#allocation13 + $0x3c0] sm:$0xf]  ;;  %v7443_v22 = vld [vmem:[#allocation13 + $0x3cc] sm:$0xf0] }
 0xbf4   :  { %v2774_v12 = vpop.f32.mrf.mxu0 }
 0xbf8   :  { %v2748_v13 = vpop.f32.mrf.mxu2 }
 0xbf9   :  { %v2749_v58 = vadd.f32 %v2748_v13, %v2736_v54  ;;  %v6409_v54 = vor.u32 %v7443_v22, %v6408_v53  ;;  %v6410_v13 = vld [vmem:[#allocation13 + $0x3d0] sm:$0xf0]  ;;  %v7421_v53 = vld [vmem:[#allocation13 + $0x324] sm:$0xf] }
 0xbfa   :  { %v2761_v59 = vpop.f32.mrf.mxu3  ;;  %v2737_v60 = vpop.f32.mrf.mxu1 }
 0xbfb   :  { %v2762_v61 = vadd.f32 %v2761_v59, %v2749_v58  ;;  %v6416_v58 = vld [vmem:[#allocation13 + $0x3c8] sm:$0xf]  ;;  %v7444_v59 = vld [vmem:[#allocation13 + $0x3d4] sm:$0xf0]  ;;  %3134 = vmatpush.bf16.msrb.mxu2 %v6409_v54 }
 0xbfc   :  { %v2776_v1 = vpop.f32.mrf.mxu0  ;;  %v6336_v54 = vld [vmem:[#allocation13 + $0x328] sm:$0xf] }
 0xbfd   :  { %v2775_v5 = vadd.f32 %v2774_v12, %v2762_v61  ;;  %v7441_v12 = vld [vmem:[#allocation13 + $0x3c4] sm:$0xf]  ;;  %v6417_v61 = vor.u32 %v7444_v59, %v6416_v58  ;;  %v7442_v1 = vld [vmem:[#allocation13 + $0x3cc] sm:$0xf] }
 0xbfe   :  { %v6413_v60 = vor.u32 %v7441_v12, %v6410_v13  ;;  %v6330_v12 = vld [vmem:[#allocation13 + $0x330] sm:$0xf0]  ;;  %v7424_v13 = vld [vmem:[#allocation13 + $0x334] sm:$0xf0] }
 0xbff   :  { %v2778_v7 = vadd.f32 %v2775_v5, %v8395_v38  ;;  %v7411_v38 = vld [vmem:[#allocation11 + $0xd0] sm:$0xff]  ;;  %v6418_v5 = vld [vmem:[#allocation13 + $0x3d8] sm:$0xf0]  ;;  %3160 = vmatpush.bf16.msra.mxu0 %v6417_v61  ;;  %v6333_v58 = vor.u32 %v7421_v53, %v6330_v12  ;;  %v6337_v59 = vor.u32 %v7424_v13, %v6336_v54 }
 0xc00   :  { %v2750_v8 = vpop.f32.mrf.mxu2  ;;  %2887 = vmatpush.bf16.msrb.mxu1 %v7411_v38  ;;  %3147 = vmatpush.bf16.msrb.mxu3 %v6413_v60  ;;  %v6405_v38 = vor.u32 %v7438_v23, %v6402_v24  ;;  %v7422_v60 = vld [vmem:[#allocation13 + $0x32c] sm:$0xf]  ;;  %v6338_v61 = vld [vmem:[#allocation13 + $0x338] sm:$0xf0] }
 0xc01   :  { %2783 = vadd.xlane.f32.xlu2 %v2778_v7  ;;  %v6392_v8 = vld [vmem:[#allocation13 + $0x3a0] sm:$0xf]  ;;  %v7477_v12 = vld [vmem:[#allocation16 + $0x3e0] sm:$0xff] }
 0xc02   :  { %v2763_v9 = vpop.f32.mrf.mxu3 }
 0xc03   :  { %v7439_v9 = vld [vmem:[#allocation13 + $0x3ac] sm:$0xf0] }
 0xc04   :  { %2888 = vmatpush.bf16.msrb.mxu1 %v7410_v25  ;;  %v6376_v25 = vld [vmem:[#allocation13 + $0x380] sm:$0xf] }
 0xc08   :  { %2889 = vmatpush.bf16.msrb.mxu1 %v7409_v26  ;;  %v7435_v26 = vld [vmem:[#allocation13 + $0x38c] sm:$0xf0] }
 0xc0c   :  { %3172 = vmatpush.bf16.msra.mxu1 %v6437_v14  ;;  %v6354_v14 = vld [vmem:[#allocation13 + $0x358] sm:$0xf0] }
 0xc74   :  { %v2784_v11 = vpop.xlane.xlu2 %2783 }
 0xc75   :  { %v2785_v16 = vmul.f32 %v2784_v11, %v8272_v3  ;;  %v6393_v11 = vor.u32 %v7439_v9, %v6392_v8  ;;  %v7417_v8 = vld [vmem:[#allocation13 + $0x304] sm:$0xf]  ;;  %v6314_v9 = vld [vmem:[#allocation13 + $0x310] sm:$0xf0] }
 0xc77   :  { %v2786_v17 = vsub.f32 %v2778_v7, %v2785_v16  ;;  %v6421_v7 = vor.u32 %v7442_v1, %v6418_v5  ;;  %v6394_v16 = vld [vmem:[#allocation13 + $0x3b0] sm:$0xf0]  ;;  %3135 = vmatpush.bf16.msrb.mxu2 %v6393_v11  ;;  %v6312_v1 = vld [vmem:[#allocation13 + $0x300] sm:$0xf]  ;;  %v6341_v5 = vor.u32 %v7422_v60, %v6338_v61  ;;  %v6317_v11 = vor.u32 %v7417_v8, %v6314_v9 }
 0xc78   :  { %v6397_v19 = vor.u32 %v7437_v10, %v6394_v16  ;;  %v6320_v16 = vld [vmem:[#allocation13 + $0x308] sm:$0xf]  ;;  %v7454_v61 = vld [vmem:[#allocation16 + $0x328] sm:$0xff]  ;;  %v7468_v9 = vld [vmem:[#allocation16 + $0x398] sm:$0xff] }
 0xc79   :  { %v2787_v18 = vmul.f32 %v2786_v17, %v2786_v17  ;;  %3173 = vmatpush.bf16.msra.mxu1 %v6421_v7  ;;  %v7419_v7 = vld [vmem:[#allocation13 + $0x30c] sm:$0xf0] }
 0xc7a   :  { %3148 = vmatpush.bf16.msrb.mxu3 %v6397_v19  ;;  %v6313_v10 = vor.u32 %v7419_v7, %v6312_v1  ;;  %v7462_v1 = vld [vmem:[#allocation16 + $0x368] sm:$0xff] }
 0xc7b   :  { %2788 = vadd.xlane.f32.xlu1 %v2787_v18  ;;  %v7440_v18 = vld [vmem:[#allocation13 + $0x3b4] sm:$0xf0] }
 0xc7d   :  { %3174 = vmatpush.bf16.msra.mxu1 %v6405_v38 }
 0xcee   :  { %v2789_v41 = vpop.xlane.xlu1 %2788 }
 0xcef   :  { %v2790_v27 = vmul.f32 %v2789_v41, %v8272_v3  ;;  %v7433_v41 = vld [vmem:[#allocation13 + $0x384] sm:$0xf] }
 0xcf1   :  { %v2791_v28 = vadd.f32 1e-05, %v2790_v27  ;;  %v6377_v27 = vor.u32 %v7435_v26, %v6376_v25 }
 0xcf3   :  { %7731 = vrsqrt.f32 %v2791_v28  ;;  %vm2798_vm2 = vweird.f32 %v2791_v28  ;;  %3136 = vmatpush.bf16.msrb.mxu2 %v6377_v27 }
 0xcf9   :  { %v7732_v29 = vpop.eup %7731 }
 0xcfa   :  { %v2793_v44 = vmul.f32 %v7732_v29, %v2791_v28  ;;  %vm2799_vm1 = vweird.f32 %v7732_v29  ;;  %v6378_v28 = vld [vmem:[#allocation13 + $0x390] sm:$0xf0] }
 0xcfb   :  { %vm2800_vm3 = vmor %vm2798_vm2, %vm2799_vm1 }
 0xcfc   :  { %v2794_v30 = vmul.f32 %v7732_v29, %v2793_v44  ;;  %v7436_v44 = vld [vmem:[#allocation13 + $0x394] sm:$0xf0] }
 0xcfe   :  { %v2795_v31 = vmul.f32 0.5, %v2794_v30  ;;  %v6381_v30 = vor.u32 %v7433_v41, %v6378_v28 }
 0xd00   :  { %v2796_v32 = vsub.f32 1.5, %v2795_v31  ;;  %3149 = vmatpush.bf16.msrb.mxu3 %v6381_v30  ;;  %v7675_v30 = vld [vmem:[%s8634_s9 + $0x3] ss:$0 sm:$0xff] }
 0xd02   :  { %v2797_v33 = vmul.f32 %v7732_v29, %v2796_v32  ;;  %v7434_v32 = vld [vmem:[#allocation13 + $0x38c] sm:$0xf] }
 0xd04   :  { %v2801_v35 = vsel %vm2800_vm3, %v7732_v29, %v2797_v33  ;;  %v6384_v29 = vld [vmem:[#allocation13 + $0x388] sm:$0xf]  ;;  %v6386_v33 = vld [vmem:[#allocation13 + $0x398] sm:$0xf0] }
 0xd05   :  { %v2802_v36 = vmul.f32 %v2801_v35, %v2786_v17  ;;  %v6400_v17 = vld [vmem:[#allocation13 + $0x3a8] sm:$0xf]  ;;  %v6385_v31 = vor.u32 %v7436_v44, %v6384_v29  ;;  %v6360_v35 = vld [vmem:[#allocation13 + $0x360] sm:$0xf] }
 0xd06   :  { %v6401_v20 = vor.u32 %v7440_v18, %v6400_v17  ;;  %v7420_v17 = vld [vmem:[#allocation13 + $0x314] sm:$0xf0]  ;;  %v7418_v18 = vld [vmem:[#allocation13 + $0x30c] sm:$0xf] }
 0xd07   :  { %v2806_v39 = vmul.f32 %v7672_v34, %v2802_v36  ;;  %v6389_v34 = vor.u32 %v7434_v32, %v6386_v33  ;;  %v7431_v36 = vld [vmem:[#allocation13 + $0x36c] sm:$0xf0]  ;;  %v6321_v19 = vor.u32 %v7420_v17, %v6320_v16  ;;  %v7676_v33 = vld [vmem:[%s8635_s10 + $0x3] ss:$0 sm:$0xff]  ;;  %v7453_v17 = vld [vmem:[#allocation16 + $0x320] sm:$0xff] }
 0xd08   :  { %3161 = vmatpush.bf16.msra.mxu0 %v6401_v20  ;;  %v6322_v20 = vld [vmem:[#allocation13 + $0x318] sm:$0xf0] }
 0xd09   :  { %v2810_v40 = vadd.f32 %v7673_v37, %v2806_v39  ;;  %v7429_v37 = vld [vmem:[#allocation13 + $0x364] sm:$0xf]  ;;  %3175 = vmatpush.bf16.msra.mxu1 %v6389_v34  ;;  %v6361_v39 = vor.u32 %v7431_v36, %v6360_v35  ;;  %v6325_v23 = vor.u32 %v7418_v18, %v6322_v20  ;;  %v7461_v18 = vld [vmem:[#allocation16 + $0x360] sm:$0xff] }
 0xd0b   :  { %v2811_v42 = vpack.c.bf16 %v2810_v40, %v2810_v40  ;;  %3137 = vmatpush.bf16.msrb.mxu2 %v6361_v39  ;;  %v7472_v39 = vld [vmem:[#allocation16 + $0x3b8] sm:$0xff] }
 0xd0c   :  { %3162 = vmatpush.bf16.msra.mxu0 %v6385_v31 }
 0xd0d   :  { %2890 = vmatmul.bf16.vlgmr.msrb.gmra.mxu1 %v2811_v42  ;;  %v6368_v42 = vld [vmem:[#allocation13 + $0x368] sm:$0xf] }
 0xd0f   :  { %3138 = vmatpush.bf16.msrb.mxu2 %v6345_v2 }
 0xd8a   :  { %v2891_v45 = vpop.f32.mrf.mxu1 }
 0xd8b   :  { %v2892_v63 = vadd.f32 %v7674_v43, %v2891_v45  ;;  %v7432_v43 = vld [vmem:[#allocation13 + $0x374] sm:$0xf0] }
 0xd8d   :  { %v2895_v46 = vadd.f32 %v2892_v63, %v2810_v40  ;;  %v6362_v40 = vld [vmem:[#allocation13 + $0x370] sm:$0xf0]  ;;  %v6369_v63 = vor.u32 %v7432_v43, %v6368_v42  ;;  %v7471_v43 = vld [vmem:[#allocation16 + $0x3b0] sm:$0xff] }
 0xd8e   :  { %v6365_v45 = vor.u32 %v7429_v37, %v6362_v40  ;;  %v2963_v37 = vld [vmem:[#allocation14 + $0xc] sm:$0xf]  ;;  %v7480_v40 = vld [vmem:[#allocation16 + $0x3f8] sm:$0xff] }
 0xd8f   :  { %2900 = vadd.xlane.f32.xlu2 %v2895_v46  ;;  %3163 = vmatpush.bf16.msra.mxu0 %v6369_v63  ;;  %v2968_v42 = vperm.slane %v2963_v37, 3  ;;  %v2965_v57 = vperm.slane %v2963_v37, 0  ;;  %v2966_v2 = vperm.slane %v2963_v37, 1 }
 0xd90   :  { %3150 = vmatpush.bf16.msrb.mxu3 %v6365_v45  ;;  %v7479_v45 = vld [vmem:[#allocation16 + $0x3f0] sm:$0xff] }
 0xd92   :  { %v2893_v0 = vpop.f32.mrf.mxu1 }
 0xd93   :  { %v6370_v0 = vld [vmem:[#allocation13 + $0x378] sm:$0xf0]  ;;  %3164 = vmatpush.bf16.msra.mxu0 %v6353_v50  ;;  %v7463_v50 = vld [vmem:[#allocation16 + $0x370] sm:$0xff] }
 0xd94   :  { %3151 = vmatpush.bf16.msrb.mxu3 %v6349_v49  ;;  %v7455_v49 = vld [vmem:[#allocation16 + $0x330] sm:$0xff] }
 0xd97   :  { %3165 = vmatpush.bf16.msra.mxu0 %v6337_v59 }
 0xd98   :  { %3152 = vmatpush.bf16.msrb.mxu3 %v6333_v58 }
 0xd9b   :  { %3166 = vmatpush.bf16.msra.mxu0 %v6321_v19 }
 0xd9c   :  { %3153 = vmatpush.bf16.msrb.mxu3 %v6317_v11 }
 0xd9f   :  { %3567 = vmatpush.bf16.msrb.mxu0 %v7472_v39 }
 0xda3   :  { %3568 = vmatpush.bf16.msrb.mxu0 %v7471_v43 }
 0xda7   :  { %3569 = vmatpush.bf16.msrb.mxu0 %v7470_v48 }
 0xe02   :  { %v2901_v51 = vpop.xlane.xlu2 %2900 }
 0xe03   :  { %v2902_v15 = vmul.f32 %v2901_v51, %v8272_v3  ;;  %v6357_v51 = vor.u32 %v7426_v6, %v6354_v14 }
 0xe05   :  { %v8437_v52 = vsub.f32 %v2895_v46, %v2902_v15  ;;  %v7430_v46 = vld [vmem:[#allocation13 + $0x36c] sm:$0xf]  ;;  %v6328_v15 = vld [vmem:[#allocation13 + $0x320] sm:$0xf] }
 0xe06   :  { %v6373_v55 = vor.u32 %v7430_v46, %v6370_v0  ;;  %v7456_v0 = vld [vmem:[#allocation16 + $0x338] sm:$0xff] }
 0xe07   :  { %v2904_v21 = vmul.f32 %v8437_v52, %v8437_v52 }
 0xe08   :  { %3176 = vmatpush.bf16.msra.mxu1 %v6373_v55  ;;  %v7464_v55 = vld [vmem:[#allocation16 + $0x378] sm:$0xff] }
 0xe09   :  { %2905 = vadd.xlane.f32.xlu1 %v2904_v21  ;;  %v7423_v21 = vld [vmem:[#allocation13 + $0x32c] sm:$0xf0]  ;;  %3554 = vmatpush.bf16.msra.mxu3 %v7464_v55 }
 0xe0a   :  { %v6329_v22 = vor.u32 %v7423_v21, %v6328_v15 }
 0xe0c   :  { %3177 = vmatpush.bf16.msra.mxu1 %v6357_v51  ;;  %3139 = vmatpush.bf16.msrb.mxu2 %v6329_v22  ;;  %v7469_v22 = vld [vmem:[#allocation16 + $0x3a0] sm:$0xff] }
 0xe0d   :  { %3555 = vmatpush.bf16.msra.mxu3 %v7463_v50  ;;  %3570 = vmatpush.bf16.msrb.mxu0 %v7469_v22 }
 0xe10   :  { %3178 = vmatpush.bf16.msra.mxu1 %v6341_v5  ;;  %3140 = vmatpush.bf16.msrb.mxu2 %v6313_v10  ;;  %v7476_v10 = vld [vmem:[#allocation16 + $0x3d8] sm:$0xff] }
 0xe11   :  { %3556 = vmatpush.bf16.msra.mxu3 %v7462_v1  ;;  %3571 = vmatpush.bf16.msrb.mxu0 %v7468_v9 }
 0xe14   :  { %3179 = vmatpush.bf16.msra.mxu1 %v6325_v23  ;;  %3541 = vmatpush.bf16.msra.mxu2 %v7456_v0  ;;  %v7467_v23 = vld [vmem:[#allocation16 + $0x390] sm:$0xff] }
 0xe15   :  { %3557 = vmatpush.bf16.msra.mxu3 %v7461_v18  ;;  %3572 = vmatpush.bf16.msrb.mxu0 %v7467_v23 }
 0xe18   :  { %3580 = vmatpush.bf16.msrb.mxu1 %v7480_v40  ;;  %3542 = vmatpush.bf16.msra.mxu2 %v7455_v49  ;;  %v7451_v40 = vld [vmem:[#allocation16 + $0x310] sm:$0xff] }
 0xe1c   :  { %3581 = vmatpush.bf16.msrb.mxu1 %v7479_v45  ;;  %3543 = vmatpush.bf16.msra.mxu2 %v7454_v61 }
 0xe20   :  { %3582 = vmatpush.bf16.msrb.mxu1 %v7478_v4  ;;  %3544 = vmatpush.bf16.msra.mxu2 %v7453_v17 }
 0xe24   :  { %3583 = vmatpush.bf16.msrb.mxu1 %v7477_v12 }
 0xe28   :  { %3584 = vmatpush.bf16.msrb.mxu1 %v7476_v10 }
 0xe7c   :  { %v2906_v24 = vpop.xlane.xlu1 %2905 }
 0xe7d   :  { %v2907_v38 = vmul.f32 %v2906_v24, %v8272_v3  ;;  %v7475_v24 = vld [vmem:[#allocation16 + $0x3d0] sm:$0xff] }
 0xe7e   :  { %3585 = vmatpush.bf16.msrb.mxu1 %v7475_v24 }
 0xe7f   :  { %v2908_v25 = vadd.f32 1e-05, %v2907_v38 }
 0xe81   :  { %7733 = vrsqrt.f32 %v2908_v25  ;;  %vm2915_vm5 = vweird.f32 %v2908_v25 }
 0xe87   :  { %v7734_v26 = vpop.eup %7733 }
 0xe88   :  { %v2910_v41 = vmul.f32 %v7734_v26, %v2908_v25  ;;  %vm2916_vm4 = vweird.f32 %v7734_v26 }
 0xe89   :  { %vm2917_vm6 = vmor %vm2915_vm5, %vm2916_vm4 }
 0xe8a   :  { %v2911_v27 = vmul.f32 %v7734_v26, %v2910_v41 }
 0xe8c   :  { %v2912_v28 = vmul.f32 0.5, %v2911_v27 }
 0xe8e   :  { %v2913_v29 = vsub.f32 1.5, %v2912_v28  ;;  %v7452_v28 = vld [vmem:[#allocation16 + $0x318] sm:$0xff] }
 0xe8f   :  { %3545 = vmatpush.bf16.msra.mxu2 %v7452_v28 }
 0xe90   :  { %v2914_v44 = vmul.f32 %v7734_v26, %v2913_v29  ;;  %v7460_v29 = vld [vmem:[#allocation16 + $0x358] sm:$0xff] }
 0xe91   :  { %3558 = vmatpush.bf16.msra.mxu3 %v7460_v29 }
 0xe92   :  { %v2918_v31 = vsel %vm2917_vm6, %v7734_v26, %v2914_v44  ;;  %vm5338_vm6 = vcmask 130048  }
 0xe93   :  { %v2919_v32 = vmul.f32 %v2918_v31, %v8437_v52  ;;  %v2967_v52 = vperm.slane %v2963_v37, 2  ;;  %3546 = vmatpush.bf16.msra.mxu2 %v7451_v40 }
 0xe95   :  { %v2923_v34 = vmul.f32 %v7675_v30, %v2919_v32  ;;  %v7466_v32 = vld [vmem:[#allocation16 + $0x388] sm:$0xff] }
 0xe96   :  { %3573 = vmatpush.bf16.msrb.mxu0 %v7466_v32 }
 0xe97   :  { %v8449_v35 = vadd.f32 %v7676_v33, %v2923_v34  ;;  %v7474_v33 = vld [vmem:[#allocation16 + $0x3c8] sm:$0xff] }
 0xe98   :  { %3586 = vmatpush.bf16.msrb.mxu1 %v7474_v33 }
 0xe99   :  { %v2928_v36 = vpack.c.bf16 %v8449_v35, %v8449_v35 }
 0xe9b   :  { %3141 = vmatmul.bf16.vlgmr.msrb.gmra.mxu2 %v2928_v36  ;;  %3154 = vmatmul.bf16.vlgmr.msrb.gmra.mxu3 %v2928_v36 }
 0xe9c   :  { %3167 = vmatmul.bf16.vlgmr.msra.gmra.mxu0 %v2928_v36  ;;  %3180 = vmatmul.bf16.vlgmr.msra.gmra.mxu1 %v2928_v36 }
 0xf19   :  { %v3168_v63 = vpop.f32.mrf.mxu0  ;;  %v3181_v46 = vpop.f32.mrf.mxu1 }
 0xf1a   :  { %v3169_v56 = vadd.f32 %v3168_v63, %v2967_v52  ;;  %v3182_v47 = vadd.f32 %v3181_v46, %v2968_v42  ;;  %v7459_v52 = vld [vmem:[#allocation16 + $0x350] sm:$0xff]  ;;  %v7465_v63 = vld [vmem:[#allocation16 + $0x380] sm:$0xff] }
 0xf1b   :  { %v7473_v46 = vld [vmem:[#allocation16 + $0x3c0] sm:$0xff]  ;;  %3559 = vmatpush.bf16.msra.mxu3 %v7459_v52  ;;  %3574 = vmatpush.bf16.msrb.mxu0 %v7465_v63 }
 0xf1c   :  { %v3186_v62 = vpack.c.bf16 %v3182_v47, %v3169_v56  ;;  %v7450_v47 = vld [vmem:[#allocation16 + $0x308] sm:$0xff]  ;;  %3587 = vmatpush.bf16.msrb.mxu1 %v7473_v46 }
 0xf1d   :  { %3547 = vmatpush.bf16.msra.mxu2 %v7450_v47 }
 0xf1e   :  { %v8453_v6 = vunpack.c.l.bf16 %v3186_v62  ;;  %v8455_v14 = vunpack.c.h.bf16 %v3186_v62  ;;  %v3142_v51 = vpop.f32.mrf.mxu2  ;;  %v3155_v15 = vpop.f32.mrf.mxu3 }
 0xf1f   :  { %v3143_v21 = vadd.f32 %v3142_v51, %v2965_v57  ;;  %v3156_v53 = vadd.f32 %v3155_v15, %v2966_v2  ;;  %v7458_v57 = vld [vmem:[#allocation16 + $0x348] sm:$0xff] }
 0xf20   :  { %v3193_v54 = vmul.f32 %v8453_v6, %v8453_v6  ;;  %v3194_v13 = vmul.f32 %v8455_v14, %v8455_v14  ;;  %3560 = vmatpush.bf16.msra.mxu3 %v7458_v57 }
 0xf21   :  { %v3185_v58 = vpack.c.bf16 %v3156_v53, %v3143_v21  ;;  %v3170_v59 = vpop.f32.mrf.mxu0  ;;  %v3183_v60 = vpop.f32.mrf.mxu1  ;;  %v7449_v21 = vld [vmem:[#allocation16 + $0x300] sm:$0xff] }
 0xf22   :  { %v3196_v5 = vpack.c.bf16 %v3194_v13, %v3193_v54  ;;  %v7457_v53 = vld [vmem:[#allocation16 + $0x340] sm:$0xff]  ;;  %3548 = vmatpush.bf16.msra.mxu2 %v7449_v21 }
 0xf23   :  { %v8461_v7 = vunpack.c.l.bf16 %v3185_v58  ;;  %v8463_v8 = vunpack.c.h.bf16 %v3185_v58 }
 0xf24   :  { %v3199_v11 = vunpack.c.l.bf16 %v3196_v5  ;;  %v3200_v16 = vunpack.c.h.bf16 %v3196_v5  ;;  %3561 = vmatpush.bf16.msra.mxu3 %v7457_v53  ;;  %v7677_v53 = vld [vmem:[#allocation17 + $0x3] ss:$0 sm:$0xff] }
 0xf25   :  { %v3191_v19 = vmul.f32 %v8461_v7, %v8461_v7  ;;  %v3192_v20 = vmul.f32 %v8463_v8, %v8463_v8  ;;  %v3237_v33 = vmul.f32 0.5, %v8461_v7 }
 0xf26   :  { %v3203_v38 = vmul.f32 %v3199_v11, %v8453_v6  ;;  %v3204_v25 = vmul.f32 %v3200_v16, %v8455_v14  ;;  %v3144_v26 = vpop.f32.mrf.mxu2  ;;  %v3157_v41 = vpop.f32.mrf.mxu3 }
 0xf27   :  { %v3195_v27 = vpack.c.bf16 %v3192_v20, %v3191_v19  ;;  %v3240_v26 = vmul.f32 0.5, %v8455_v14 }
 0xf28   :  { %v3206_v44 = vpack.c.bf16 %v3204_v25, %v3203_v38  ;;  %v3239_v25 = vmul.f32 0.5, %v8453_v6 }
 0xf29   :  { %v3197_v30 = vunpack.c.l.bf16 %v3195_v27  ;;  %v3198_v31 = vunpack.c.h.bf16 %v3195_v27 }
 0xf2a   :  { %v3209_v34 = vunpack.c.l.bf16 %v3206_v44  ;;  %v3210_v36 = vunpack.c.h.bf16 %v3206_v44 }
 0xf2b   :  { %v3201_v37 = vmul.f32 %v3197_v30, %v8461_v7  ;;  %v3202_v39 = vmul.f32 %v3198_v31, %v8463_v8  ;;  %v3242_v30 = vpack.c.bf16 %v3240_v26, %v3239_v25 }
 0xf2c   :  { %v3213_v42 = vmul.f32 0.044677734, %v3209_v34  ;;  %v3214_v43 = vmul.f32 0.044677734, %v3210_v36  ;;  %v3238_v34 = vmul.f32 0.5, %v8463_v8 }
 0xf2d   :  { %v3205_v45 = vpack.c.bf16 %v3202_v39, %v3201_v37  ;;  %v3265_v52 = vunpack.c.l.bf16 %v3242_v30 }
 0xf2e   :  { %v3216_v0 = vpack.c.bf16 %v3214_v43, %v3213_v42  ;;  %v3266_v42 = vunpack.c.h.bf16 %v3242_v30  ;;  %v3241_v43 = vpack.c.bf16 %v3238_v34, %v3237_v33  ;;  %v7679_v34 = vld [vmem:[%s8641_s16 + $0x3] ss:$0 sm:$0xff] }
 0xf2f   :  { %v3207_v55 = vunpack.c.l.bf16 %v3205_v45  ;;  %v3208_v56 = vunpack.c.h.bf16 %v3205_v45 }
 0xf30   :  { %v3219_v2 = vunpack.c.l.bf16 %v3216_v0  ;;  %v3220_v48 = vunpack.c.h.bf16 %v3216_v0  ;;  %v3263_v57 = vunpack.c.l.bf16 %v3241_v43 }
 0xf31   :  { %v3211_v4 = vmul.f32 0.044677734, %v3207_v55  ;;  %v3212_v62 = vmul.f32 0.044677734, %v3208_v56 }
 0xf32   :  { %v3223_v49 = vadd.f32 %v3219_v2, %v8453_v6  ;;  %v3224_v50 = vadd.f32 %v3220_v48, %v8455_v14  ;;  %v3264_v2 = vunpack.c.h.bf16 %v3241_v43  ;;  %v6716_v43 = vld [vmem:[#allocation13 + $0x4e0] sm:$0xf] }
 0xf33   :  { %v3215_v51 = vpack.c.bf16 %v3212_v62, %v3211_v4 }
 0xf34   :  { %v3226_v15 = vpack.c.bf16 %v3224_v50, %v3223_v49 }
 0xf35   :  { %v3217_v22 = vunpack.c.l.bf16 %v3215_v51  ;;  %v3218_v12 = vunpack.c.h.bf16 %v3215_v51 }
 0xf36   :  { %v3229_v54 = vunpack.c.l.bf16 %v3226_v15  ;;  %v3230_v13 = vunpack.c.h.bf16 %v3226_v15 }
 0xf37   :  { %v3221_v58 = vadd.f32 %v3217_v22, %v8461_v7  ;;  %v3222_v59 = vadd.f32 %v3218_v12, %v8463_v8 }
 0xf38   :  { %v3233_v60 = vmul.f32 0.796875, %v3229_v54  ;;  %v3234_v61 = vmul.f32 0.796875, %v3230_v13 }
 0xf39   :  { %v3225_v1 = vpack.c.bf16 %v3222_v59, %v3221_v58 }
 0xf3a   :  { %v3236_v5 = vpack.c.bf16 %v3234_v61, %v3233_v60 }
 0xf3b   :  { %v3227_v9 = vunpack.c.l.bf16 %v3225_v1  ;;  %v3228_v10 = vunpack.c.h.bf16 %v3225_v1 }
 0xf3c   :  { %v3245_v11 = vunpack.c.l.bf16 %v3236_v5  ;;  %v3246_v16 = vunpack.c.h.bf16 %v3236_v5  ;;  %v7488_v5 = vld [vmem:[#allocation11 + $0x138] sm:$0xff] }
 0xf3d   :  { %v3231_v17 = vmul.f32 0.796875, %v3227_v9  ;;  %v3232_v18 = vmul.f32 0.796875, %v3228_v10  ;;  %3697 = vmatpush.bf16.msrb.mxu2 %v7488_v5  ;;  %v7509_v5 = vld [vmem:[#allocation13 + $0x4a4] sm:$0xf] }
 0xf3e   :  { %7735 = vtanh.f32 %v3245_v11 }
 0xf3f   :  { %7737 = vtanh.f32 %v3246_v16  ;;  %v3235_v19 = vpack.c.bf16 %v3232_v18, %v3231_v17  ;;  %v7487_v17 = vld [vmem:[#allocation11 + $0x130] sm:$0xff]  ;;  %v7486_v18 = vld [vmem:[#allocation11 + $0x128] sm:$0xff] }
 0xf41   :  { %v3243_v20 = vunpack.c.l.bf16 %v3235_v19  ;;  %v3244_v23 = vunpack.c.h.bf16 %v3235_v19  ;;  %3698 = vmatpush.bf16.msrb.mxu2 %v7487_v17  ;;  %v7485_v19 = vld [vmem:[#allocation11 + $0x120] sm:$0xff] }
 0xf43   :  { %7739 = vtanh.f32 %v3243_v20  ;;  %v7484_v20 = vld [vmem:[#allocation11 + $0x118] sm:$0xff] }
 0xf44   :  { %v7736_v24 = vpop.eup %7735  ;;  %7741 = vtanh.f32 %v3244_v23  ;;  %v7483_v23 = vld [vmem:[#allocation11 + $0x110] sm:$0xff] }
 0xf45   :  { %v7738_v38 = vpop.eup %7737  ;;  %3699 = vmatpush.bf16.msrb.mxu2 %v7486_v18 }
 0xf46   :  { %v3252_v41 = vpack.c.bf16 %v7738_v38, %v7736_v24  ;;  %v7481_v24 = vld [vmem:[#allocation11 + $0x100] sm:$0xff] }
 0xf48   :  { %v3255_v27 = vunpack.c.l.bf16 %v3252_v41  ;;  %v3256_v28 = vunpack.c.h.bf16 %v3252_v41 }
 0xf49   :  { %v7740_v29 = vpop.eup %7739  ;;  %3700 = vmatpush.bf16.msrb.mxu2 %v7485_v19  ;;  %v7510_v19 = vld [vmem:[#allocation13 + $0x4ac] sm:$0xf] }
 0xf4a   :  { %v7742_v44 = vpop.eup %7741  ;;  %v3259_v31 = vadd.f32 1.0, %v3255_v27  ;;  %v3260_v32 = vadd.f32 1.0, %v3256_v28 }
 0xf4b   :  { %v3251_v36 = vpack.c.bf16 %v7742_v44, %v7740_v29 }
 0xf4c   :  { %v3262_v37 = vpack.c.bf16 %v3260_v32, %v3259_v31  ;;  %v7678_v31 = vld [vmem:[#allocation19 + $0x3] ss:$0 sm:$0xff] }
 0xf4d   :  { %v3253_v39 = vunpack.c.l.bf16 %v3251_v36  ;;  %v3254_v40 = vunpack.c.h.bf16 %v3251_v36  ;;  %3701 = vmatpush.bf16.msrb.mxu2 %v7484_v20  ;;  %v6694_v20 = vld [vmem:[#allocation13 + $0x4b8] sm:$0xf0] }
 0xf4e   :  { %v3269_v6 = vunpack.c.l.bf16 %v3262_v37  ;;  %v3270_v14 = vunpack.c.h.bf16 %v3262_v37 }
 0xf4f   :  { %v3257_v45 = vadd.f32 1.0, %v3253_v39  ;;  %v3258_v63 = vadd.f32 1.0, %v3254_v40  ;;  %v7680_v40 = vld [vmem:[%s8633_s8 + $0x4] ss:$0 sm:$0xff] }
 0xf50   :  { %v3273_v46 = vmul.f32 %v3269_v6, %v3265_v52  ;;  %v3274_v0 = vmul.f32 %v3270_v14, %v3266_v42 }
 0xf51   :  { %v3261_v55 = vpack.c.bf16 %v3258_v63, %v3257_v45  ;;  %3702 = vmatpush.bf16.msrb.mxu2 %v7483_v23  ;;  %v7519_v45 = vld [vmem:[#allocation13 + $0x4ec] sm:$0xf0]  ;;  %v7517_v63 = vld [vmem:[#allocation13 + $0x4e4] sm:$0xf]  ;;  %v6697_v23 = vor.u32 %v7510_v19, %v6694_v20 }
 0xf52   :  { %v3277_v56 = vpack.c.bf16 %v3273_v46, %v3273_v46  ;;  %v3278_v47 = vpack.c.bf16 %v3274_v0, %v3274_v0  ;;  %v6717_v46 = vor.u32 %v7519_v45, %v6716_v43  ;;  %v6718_v0 = vld [vmem:[#allocation13 + $0x4f0] sm:$0xf0]  ;;  %v6636_v45 = vld [vmem:[#allocation13 + $0x440] sm:$0xf] }
 0xf53   :  { %v3267_v7 = vunpack.c.l.bf16 %v3261_v55  ;;  %v3268_v8 = vunpack.c.h.bf16 %v3261_v55  ;;  %v6724_v55 = vld [vmem:[#allocation13 + $0x4e8] sm:$0xf] }
 0xf54   :  { %3575 = vmatmul.bf16.vlgmr.msrb.gmra.mxu0 %v3277_v56  ;;  %3588 = vmatmul.bf16.vlgmr.msrb.gmra.mxu1 %v3278_v47  ;;  %v7520_v56 = vld [vmem:[#allocation13 + $0x4f4] sm:$0xf0]  ;;  %v6721_v47 = vor.u32 %v7517_v63, %v6718_v0  ;;  %v7499_v63 = vld [vmem:[#allocation13 + $0x44c] sm:$0xf0] }
 0xf55   :  { %v3271_v48 = vmul.f32 %v3267_v7, %v3263_v57  ;;  %v3272_v4 = vmul.f32 %v3268_v8, %v3264_v2  ;;  %v6725_v57 = vor.u32 %v7520_v56, %v6724_v55  ;;  %v7518_v7 = vld [vmem:[#allocation13 + $0x4ec] sm:$0xf]  ;;  %v6726_v2 = vld [vmem:[#allocation13 + $0x4f8] sm:$0xf0]  ;;  %3948 = vmatpush.bf16.msrb.mxu3 %v6717_v46  ;;  %v7497_v46 = vld [vmem:[#allocation13 + $0x444] sm:$0xf]  ;;  %v6637_v0 = vor.u32 %v7499_v63, %v6636_v45 }
 0xf56   :  { %v6729_v8 = vor.u32 %v7518_v7, %v6726_v2  ;;  %3961 = vmatpush.bf16.msra.mxu0 %v6721_v47  ;;  %v6638_v55 = vld [vmem:[#allocation13 + $0x450] sm:$0xf0]  ;;  %v6644_v56 = vld [vmem:[#allocation13 + $0x448] sm:$0xf]  ;;  %v7500_v47 = vld [vmem:[#allocation13 + $0x454] sm:$0xf0] }
 0xf57   :  { %v3275_v62 = vpack.c.bf16 %v3271_v48, %v3271_v48  ;;  %v3276_v49 = vpack.c.bf16 %v3272_v4, %v3272_v4  ;;  %3974 = vmatpush.bf16.msra.mxu1 %v6725_v57  ;;  %v6641_v57 = vor.u32 %v7497_v46, %v6638_v55  ;;  %v6645_v7 = vor.u32 %v7500_v47, %v6644_v56  ;;  %v7498_v2 = vld [vmem:[#allocation13 + $0x44c] sm:$0xf] }
 0xf58   :  { %v7527_v63 = vld [vmem:[#allocation16 + $0x430] sm:$0xff] }
 0xf59   :  { %3549 = vmatmul.bf16.vlgmr.msra.gmra.mxu2 %v3275_v62  ;;  %3562 = vmatmul.bf16.vlgmr.msra.gmra.mxu3 %v3276_v49  ;;  %v7535_v46 = vld [vmem:[#allocation16 + $0x470] sm:$0xff] }
 0xfd1   :  { %v3576_v50 = vpop.f32.mrf.mxu0  ;;  %v3589_v51 = vpop.f32.mrf.mxu1 }
 0xfd9   :  { %v3578_v15 = vpop.f32.mrf.mxu0  ;;  %v3591_v21 = vpop.f32.mrf.mxu1 }
 0xfda   :  { %v7513_v15 = vld [vmem:[#allocation13 + $0x4c4] sm:$0xf] }
 0xfdc   :  { %v3550_v22 = vpop.f32.mrf.mxu2  ;;  %v3563_v12 = vpop.f32.mrf.mxu3 }
 0xfdd   :  { %v3551_v54 = vadd.f32 %v7677_v53, %v3550_v22  ;;  %v6702_v53 = vld [vmem:[#allocation13 + $0x4d0] sm:$0xf0]  ;;  %v6708_v22 = vld [vmem:[#allocation13 + $0x4c8] sm:$0xf] }
 0xfdf   :  { %v3564_v13 = vadd.f32 %v3563_v12, %v3551_v54  ;;  %v7516_v12 = vld [vmem:[#allocation13 + $0x4d4] sm:$0xf0]  ;;  %v6705_v54 = vor.u32 %v7513_v15, %v6702_v53  ;;  %v6622_v15 = vld [vmem:[#allocation13 + $0x430] sm:$0xf0] }
 0xfe0   :  { %v7496_v53 = vld [vmem:[#allocation13 + $0x434] sm:$0xf0] }
 0xfe1   :  { %v3577_v58 = vadd.f32 %v3576_v50, %v3564_v13  ;;  %v6700_v50 = vld [vmem:[#allocation13 + $0x4c0] sm:$0xf]  ;;  %v6709_v13 = vor.u32 %v7516_v12, %v6708_v22  ;;  %3962 = vmatpush.bf16.msra.mxu0 %v6705_v54  ;;  %v7494_v54 = vld [vmem:[#allocation13 + $0x42c] sm:$0xf] }
 0xfe3   :  { %v3590_v59 = vadd.f32 %v3589_v51, %v3577_v58  ;;  %v7515_v51 = vld [vmem:[#allocation13 + $0x4cc] sm:$0xf0]  ;;  %v7514_v58 = vld [vmem:[#allocation13 + $0x4cc] sm:$0xf]  ;;  %3975 = vmatpush.bf16.msra.mxu1 %v6709_v13  ;;  %v6630_v13 = vld [vmem:[#allocation13 + $0x438] sm:$0xf0] }
 0xfe4   :  { %v3552_v60 = vpop.f32.mrf.mxu2  ;;  %v3565_v61 = vpop.f32.mrf.mxu3  ;;  %v6701_v21 = vor.u32 %v7515_v51, %v6700_v50  ;;  %v7493_v50 = vld [vmem:[#allocation13 + $0x424] sm:$0xf] }
 0xfe5   :  { %v3593_v1 = vadd.f32 %v3590_v59, %v8449_v35  ;;  %v7482_v35 = vld [vmem:[#allocation11 + $0x108] sm:$0xff]  ;;  %v6710_v59 = vld [vmem:[#allocation13 + $0x4d8] sm:$0xf0]  ;;  %v6684_v61 = vld [vmem:[#allocation13 + $0x4a0] sm:$0xf]  ;;  %v6625_v22 = vor.u32 %v7493_v50, %v6622_v15 }
 0xfe6   :  { %3703 = vmatpush.bf16.msrb.mxu2 %v7482_v35  ;;  %3949 = vmatpush.bf16.msrb.mxu3 %v6701_v21  ;;  %v6713_v60 = vor.u32 %v7514_v58, %v6710_v59  ;;  %v6668_v35 = vld [vmem:[#allocation13 + $0x480] sm:$0xf]  ;;  %v6628_v21 = vld [vmem:[#allocation13 + $0x428] sm:$0xf]  ;;  %v6633_v59 = vor.u32 %v7494_v54, %v6630_v13 }
 0xfe7   :  { %3598 = vadd.xlane.f32.xlu2 %v3593_v1  ;;  %v6629_v12 = vor.u32 %v7496_v53, %v6628_v21  ;;  %v6604_v58 = vld [vmem:[#allocation13 + $0x400] sm:$0xf] }
 0xfe8   :  { %v7526_v50 = vld [vmem:[#allocation16 + $0x428] sm:$0xff] }
 0xfe9   :  { %v7542_v15 = vld [vmem:[#allocation16 + $0x4a8] sm:$0xff] }
 0xfea   :  { %3704 = vmatpush.bf16.msrb.mxu2 %v7481_v24  ;;  %v7507_v24 = vld [vmem:[#allocation13 + $0x48c] sm:$0xf0] }
 0xfee   :  { %3987 = vmatpush.bf16.msra.mxu2 %v6729_v8  ;;  %v6646_v8 = vld [vmem:[#allocation13 + $0x458] sm:$0xf0] }
 0xff2   :  { %3988 = vmatpush.bf16.msra.mxu2 %v6713_v60  ;;  %v7491_v60 = vld [vmem:[#allocation13 + $0x40c] sm:$0xf0] }
 0xff6   :  { %3989 = vmatpush.bf16.msra.mxu2 %v6697_v23 }
0x105a   :  { %v3599_v9 = vpop.xlane.xlu2 %3598 }
0x105b   :  { %v3600_v10 = vmul.f32 %v3599_v9, %v8272_v3 }
0x105d   :  { %v3601_v11 = vsub.f32 %v3593_v1, %v3600_v10  ;;  %v7511_v1 = vld [vmem:[#allocation13 + $0x4ac] sm:$0xf0]  ;;  %v6686_v10 = vld [vmem:[#allocation13 + $0x4b0] sm:$0xf0] }
0x105e   :  { %v6685_v9 = vor.u32 %v7511_v1, %v6684_v61  ;;  %v6689_v17 = vor.u32 %v7509_v5, %v6686_v10  ;;  %v7489_v61 = vld [vmem:[#allocation13 + $0x404] sm:$0xf]  ;;  %v6606_v1 = vld [vmem:[#allocation13 + $0x410] sm:$0xf0]  ;;  %v6605_v5 = vor.u32 %v7491_v60, %v6604_v58  ;;  %v6612_v10 = vld [vmem:[#allocation13 + $0x408] sm:$0xf] }
0x105f   :  { %v3602_v16 = vmul.f32 %v3601_v11, %v3601_v11 }
0x1060   :  { %3950 = vmatpush.bf16.msrb.mxu3 %v6685_v9  ;;  %3963 = vmatpush.bf16.msra.mxu0 %v6689_v17  ;;  %v6609_v9 = vor.u32 %v7489_v61, %v6606_v1  ;;  %v7525_v1 = vld [vmem:[#allocation16 + $0x420] sm:$0xff] }
0x1061   :  { %3603 = vadd.xlane.f32.xlu0 %v3602_v16  ;;  %v7512_v16 = vld [vmem:[#allocation13 + $0x4b4] sm:$0xf0] }
0x10d4   :  { %v3604_v38 = vpop.xlane.xlu0 %3603 }
0x10d5   :  { %v3605_v25 = vmul.f32 %v3604_v38, %v8272_v3  ;;  %v7505_v38 = vld [vmem:[#allocation13 + $0x484] sm:$0xf] }
0x10d7   :  { %v3606_v26 = vadd.f32 1e-05, %v3605_v25  ;;  %v6669_v25 = vor.u32 %v7507_v24, %v6668_v35 }
0x10d9   :  { %7743 = vrsqrt.f32 %v3606_v26  ;;  %vm3613_vm8 = vweird.f32 %v3606_v26  ;;  %3951 = vmatpush.bf16.msrb.mxu3 %v6669_v25 }
0x10df   :  { %v7744_v41 = vpop.eup %7743 }
0x10e0   :  { %v3608_v27 = vmul.f32 %v7744_v41, %v3606_v26  ;;  %vm3614_vm7 = vweird.f32 %v7744_v41  ;;  %v6670_v26 = vld [vmem:[#allocation13 + $0x490] sm:$0xf0] }
0x10e1   :  { %vm3615_vm9 = vmor %vm3613_vm8, %vm3614_vm7 }
0x10e2   :  { %v3609_v28 = vmul.f32 %v7744_v41, %v3608_v27  ;;  %v7508_v27 = vld [vmem:[#allocation13 + $0x494] sm:$0xf0] }
0x10e4   :  { %v3610_v29 = vmul.f32 0.5, %v3609_v28  ;;  %v6673_v28 = vor.u32 %v7505_v38, %v6670_v26 }
0x10e6   :  { %v3611_v44 = vsub.f32 1.5, %v3610_v29  ;;  %3964 = vmatpush.bf16.msra.mxu0 %v6673_v28  ;;  %v7681_v28 = vld [vmem:[%s8634_s9 + $0x4] ss:$0 sm:$0xff] }
0x10e8   :  { %v3612_v30 = vmul.f32 %v7744_v41, %v3611_v44  ;;  %v7506_v44 = vld [vmem:[#allocation13 + $0x48c] sm:$0xf] }
0x10ea   :  { %v3616_v32 = vsel %vm3615_vm9, %v7744_v41, %v3612_v30  ;;  %v6676_v41 = vld [vmem:[#allocation13 + $0x488] sm:$0xf]  ;;  %v6678_v30 = vld [vmem:[#allocation13 + $0x498] sm:$0xf0] }
0x10eb   :  { %v3617_v33 = vmul.f32 %v3616_v32, %v3601_v11  ;;  %v6692_v11 = vld [vmem:[#allocation13 + $0x4a8] sm:$0xf]  ;;  %v6677_v29 = vor.u32 %v7508_v27, %v6676_v41  ;;  %v6652_v32 = vld [vmem:[#allocation13 + $0x460] sm:$0xf] }
0x10ec   :  { %v6693_v18 = vor.u32 %v7512_v16, %v6692_v11  ;;  %v7492_v11 = vld [vmem:[#allocation13 + $0x414] sm:$0xf0]  ;;  %v7490_v16 = vld [vmem:[#allocation13 + $0x40c] sm:$0xf] }
0x10ed   :  { %v3621_v36 = vmul.f32 %v7678_v31, %v3617_v33  ;;  %v6681_v31 = vor.u32 %v7506_v44, %v6678_v30  ;;  %v7503_v33 = vld [vmem:[#allocation13 + $0x46c] sm:$0xf0]  ;;  %v6613_v17 = vor.u32 %v7492_v11, %v6612_v10  ;;  %v7682_v30 = vld [vmem:[%s8635_s10 + $0x4] ss:$0 sm:$0xff] }
0x10ee   :  { %3976 = vmatpush.bf16.msra.mxu1 %v6693_v18  ;;  %v6614_v18 = vld [vmem:[#allocation13 + $0x418] sm:$0xf0] }
0x10ef   :  { %v3625_v37 = vadd.f32 %v7679_v34, %v3621_v36  ;;  %v7501_v34 = vld [vmem:[#allocation13 + $0x464] sm:$0xf]  ;;  %3990 = vmatpush.bf16.msra.mxu2 %v6681_v31  ;;  %v6653_v36 = vor.u32 %v7503_v33, %v6652_v32  ;;  %v6617_v19 = vor.u32 %v7490_v16, %v6614_v18  ;;  %v7549_v16 = vld [vmem:[#allocation16 + $0x4e0] sm:$0xff]  ;;  %v7524_v18 = vld [vmem:[#allocation16 + $0x418] sm:$0xff] }
0x10f1   :  { %v3626_v39 = vpack.c.bf16 %v3625_v37, %v3625_v37  ;;  %3952 = vmatpush.bf16.msrb.mxu3 %v6653_v36 }
0x10f2   :  { %3977 = vmatpush.bf16.msra.mxu1 %v6677_v29 }
0x10f3   :  { %3705 = vmatmul.bf16.vlgmr.msrb.gmra.mxu2 %v3626_v39  ;;  %v6660_v39 = vld [vmem:[#allocation13 + $0x468] sm:$0xf] }
0x10f5   :  { %3953 = vmatpush.bf16.msrb.mxu3 %v6637_v0  ;;  %v7543_v0 = vld [vmem:[#allocation16 + $0x4b0] sm:$0xff] }
0x1176   :  { %v3706_v52 = vpop.f32.mrf.mxu2 }
0x1177   :  { %v3707_v6 = vadd.f32 %v7680_v40, %v3706_v52  ;;  %v7504_v40 = vld [vmem:[#allocation13 + $0x474] sm:$0xf0] }
0x1179   :  { %v3710_v42 = vadd.f32 %v3707_v6, %v3625_v37  ;;  %v6654_v37 = vld [vmem:[#allocation13 + $0x470] sm:$0xf0]  ;;  %v6661_v6 = vor.u32 %v7504_v40, %v6660_v39 }
0x117a   :  { %v6657_v52 = vor.u32 %v7501_v34, %v6654_v37  ;;  %v3778_v34 = vld [vmem:[#allocation14 + $0x10] sm:$0xf] }
0x117b   :  { %3715 = vadd.xlane.f32.xlu1 %v3710_v42  ;;  %3978 = vmatpush.bf16.msra.mxu1 %v6661_v6  ;;  %v7528_v39 = vld [vmem:[#allocation16 + $0x438] sm:$0xff]  ;;  %v3780_v6 = vperm.slane %v3778_v34, 0 }
0x117c   :  { %3965 = vmatpush.bf16.msra.mxu0 %v6657_v52  ;;  %v7536_v40 = vld [vmem:[#allocation16 + $0x478] sm:$0xff]  ;;  %v3781_v52 = vperm.slane %v3778_v34, 1 }
0x117e   :  { %v3708_v14 = vpop.f32.mrf.mxu2 }
0x117f   :  { %v6662_v14 = vld [vmem:[#allocation13 + $0x478] sm:$0xf0]  ;;  %3979 = vmatpush.bf16.msra.mxu1 %v6645_v7 }
0x1180   :  { %3966 = vmatpush.bf16.msra.mxu0 %v6641_v57  ;;  %v7551_v57 = vld [vmem:[#allocation16 + $0x4f0] sm:$0xff] }
0x1183   :  { %3980 = vmatpush.bf16.msra.mxu1 %v6629_v12 }
0x1184   :  { %3967 = vmatpush.bf16.msra.mxu0 %v6625_v22  ;;  %v7550_v22 = vld [vmem:[#allocation16 + $0x4e8] sm:$0xff] }
0x1187   :  { %3981 = vmatpush.bf16.msra.mxu1 %v6613_v17 }
0x1188   :  { %3968 = vmatpush.bf16.msra.mxu0 %v6609_v9  ;;  %v7541_v9 = vld [vmem:[#allocation16 + $0x4a0] sm:$0xff] }
0x118c   :  { %4369 = vmatpush.bf16.msrb.mxu0 %v7536_v40 }
0x1190   :  { %4370 = vmatpush.bf16.msrb.mxu0 %v7535_v46 }
0x11ee   :  { %v3716_v48 = vpop.xlane.xlu1 %3715 }
0x11ef   :  { %v3717_v4 = vmul.f32 %v3716_v48, %v8272_v3  ;;  %v6649_v48 = vor.u32 %v7498_v2, %v6646_v8 }
0x11f1   :  { %v8491_v62 = vsub.f32 %v3710_v42, %v3717_v4  ;;  %v7502_v42 = vld [vmem:[#allocation13 + $0x46c] sm:$0xf]  ;;  %v6620_v4 = vld [vmem:[#allocation13 + $0x420] sm:$0xf] }
0x11f2   :  { %v6665_v43 = vor.u32 %v7502_v42, %v6662_v14  ;;  %v7552_v42 = vld [vmem:[#allocation16 + $0x4f8] sm:$0xff]  ;;  %v3782_v14 = vperm.slane %v3778_v34, 2 }
0x11f3   :  { %v3719_v49 = vmul.f32 %v8491_v62, %v8491_v62 }
0x11f4   :  { %3991 = vmatpush.bf16.msra.mxu2 %v6665_v43  ;;  %v3783_v43 = vperm.slane %v3778_v34, 3 }
0x11f5   :  { %3720 = vadd.xlane.f32.xlu2 %v3719_v49  ;;  %v7495_v49 = vld [vmem:[#allocation13 + $0x42c] sm:$0xf0] }
0x11f6   :  { %v6621_v51 = vor.u32 %v7495_v49, %v6620_v4 }
0x11f8   :  { %3992 = vmatpush.bf16.msra.mxu2 %v6649_v48  ;;  %3954 = vmatpush.bf16.msrb.mxu3 %v6621_v51  ;;  %v7534_v51 = vld [vmem:[#allocation16 + $0x468] sm:$0xff] }
0x11f9   :  { %4371 = vmatpush.bf16.msrb.mxu0 %v7534_v51 }
0x11fc   :  { %3993 = vmatpush.bf16.msra.mxu2 %v6633_v59  ;;  %3955 = vmatpush.bf16.msrb.mxu3 %v6605_v5  ;;  %v7533_v5 = vld [vmem:[#allocation16 + $0x460] sm:$0xff] }
0x11fd   :  { %4372 = vmatpush.bf16.msrb.mxu0 %v7533_v5 }
0x1200   :  { %3994 = vmatpush.bf16.msra.mxu2 %v6617_v19  ;;  %4356 = vmatpush.bf16.msra.mxu3 %v7528_v39  ;;  %v7532_v19 = vld [vmem:[#allocation16 + $0x458] sm:$0xff] }
0x1201   :  { %4373 = vmatpush.bf16.msrb.mxu0 %v7532_v19 }
0x1204   :  { %4395 = vmatpush.bf16.msrb.mxu2 %v7552_v42  ;;  %4357 = vmatpush.bf16.msra.mxu3 %v7527_v63 }
0x1208   :  { %4396 = vmatpush.bf16.msrb.mxu2 %v7551_v57  ;;  %4358 = vmatpush.bf16.msra.mxu3 %v7526_v50 }
0x120c   :  { %4397 = vmatpush.bf16.msrb.mxu2 %v7550_v22  ;;  %4359 = vmatpush.bf16.msra.mxu3 %v7525_v1 }
0x1210   :  { %4398 = vmatpush.bf16.msrb.mxu2 %v7549_v16  ;;  %4360 = vmatpush.bf16.msra.mxu3 %v7524_v18 }
0x1268   :  { %v3721_v20 = vpop.xlane.xlu2 %3720 }
0x1269   :  { %v3722_v23 = vmul.f32 %v3721_v20, %v8272_v3 }
0x126b   :  { %v3723_v35 = vadd.f32 1e-05, %v3722_v23 }
0x126d   :  { %7745 = vrsqrt.f32 %v3723_v35  ;;  %vm3730_vm11 = vweird.f32 %v3723_v35 }
0x1273   :  { %v7746_v24 = vpop.eup %7745 }
0x1274   :  { %v3725_v38 = vmul.f32 %v7746_v24, %v3723_v35  ;;  %vm3731_vm10 = vweird.f32 %v7746_v24  ;;  %v7540_v35 = vld [vmem:[#allocation16 + $0x498] sm:$0xff] }
0x1275   :  { %vm3732_vm12 = vmor %vm3730_vm11, %vm3731_vm10 }
0x1276   :  { %v3726_v25 = vmul.f32 %v7746_v24, %v3725_v38 }
0x1278   :  { %v3727_v26 = vmul.f32 0.5, %v3726_v25 }
0x127a   :  { %v3728_v41 = vsub.f32 1.5, %v3727_v26 }
0x127c   :  { %v3729_v27 = vmul.f32 %v7746_v24, %v3728_v41 }
0x127e   :  { %v3733_v29 = vsel %vm3732_vm12, %v7746_v24, %v3729_v27  ;;  %v7548_v24 = vld [vmem:[#allocation16 + $0x4d8] sm:$0xff] }
0x127f   :  { %v3734_v44 = vmul.f32 %v3733_v29, %v8491_v62  ;;  %v7544_v62 = vld [vmem:[#allocation16 + $0x4b8] sm:$0xff]  ;;  %v7523_v29 = vld [vmem:[#allocation16 + $0x410] sm:$0xff]  ;;  %4399 = vmatpush.bf16.msrb.mxu2 %v7548_v24 }
0x1280   :  { %4382 = vmatpush.bf16.msrb.mxu1 %v7544_v62  ;;  %4361 = vmatpush.bf16.msra.mxu3 %v7523_v29  ;;  %v7522_v62 = vld [vmem:[#allocation16 + $0x408] sm:$0xff] }
0x1281   :  { %v3738_v31 = vmul.f32 %v7681_v28, %v3734_v44  ;;  %v7531_v44 = vld [vmem:[#allocation16 + $0x450] sm:$0xff] }
0x1282   :  { %4374 = vmatpush.bf16.msrb.mxu0 %v7531_v44 }
0x1283   :  { %v8503_v32 = vadd.f32 %v7682_v30, %v3738_v31  ;;  %v7539_v31 = vld [vmem:[#allocation16 + $0x490] sm:$0xff] }
0x1284   :  { %4383 = vmatpush.bf16.msrb.mxu1 %v7543_v0  ;;  %4362 = vmatpush.bf16.msra.mxu3 %v7522_v62 }
0x1285   :  { %v3743_v33 = vpack.c.bf16 %v8503_v32, %v8503_v32 }
0x1287   :  { %3956 = vmatmul.bf16.vlgmr.msrb.gmra.mxu3 %v3743_v33  ;;  %3969 = vmatmul.bf16.vlgmr.msra.gmra.mxu0 %v3743_v33 }
0x1288   :  { %3982 = vmatmul.bf16.vlgmr.msra.gmra.mxu1 %v3743_v33  ;;  %3995 = vmatmul.bf16.vlgmr.msra.gmra.mxu2 %v3743_v33  ;;  %v7547_v33 = vld [vmem:[#allocation16 + $0x4d0] sm:$0xff] }
0x1289   :  { %4384 = vmatpush.bf16.msrb.mxu1 %v7542_v15  ;;  %4400 = vmatpush.bf16.msrb.mxu2 %v7547_v33 }
0x128d   :  { %4385 = vmatpush.bf16.msrb.mxu1 %v7541_v9 }
0x1291   :  { %4386 = vmatpush.bf16.msrb.mxu1 %v7540_v35 }
0x1295   :  { %4387 = vmatpush.bf16.msrb.mxu1 %v7539_v31 }
0x1304   :  { %v3970_v36 = vpop.f32.mrf.mxu0 }
0x1305   :  { %v3983_v37 = vpop.f32.mrf.mxu1  ;;  %v3971_v55 = vadd.f32 %v3970_v36, %v3781_v52  ;;  %v7530_v52 = vld [vmem:[#allocation16 + $0x448] sm:$0xff] }
0x1306   :  { %v3984_v7 = vadd.f32 %v3983_v37, %v3782_v14  ;;  %v7538_v14 = vld [vmem:[#allocation16 + $0x488] sm:$0xff]  ;;  %4375 = vmatpush.bf16.msrb.mxu0 %v7530_v52 }
0x1307   :  { %4388 = vmatpush.bf16.msrb.mxu1 %v7538_v14 }
0x130a   :  { %v3957_v45 = vpop.f32.mrf.mxu3 }
0x130b   :  { %v3958_v56 = vadd.f32 %v3957_v45, %v3780_v6  ;;  %v3996_v47 = vpop.f32.mrf.mxu2 }
0x130c   :  { %v3997_v2 = vadd.f32 %v3996_v47, %v3783_v43  ;;  %v3972_v8 = vpop.f32.mrf.mxu0  ;;  %v7546_v43 = vld [vmem:[#allocation16 + $0x4c8] sm:$0xff] }
0x130d   :  { %v4000_v48 = vpack.c.bf16 %v3971_v55, %v3958_v56  ;;  %v3985_v4 = vpop.f32.mrf.mxu1  ;;  %v7521_v55 = vld [vmem:[#allocation16 + $0x400] sm:$0xff]  ;;  %4401 = vmatpush.bf16.msrb.mxu2 %v7546_v43 }
0x130e   :  { %v4001_v49 = vpack.c.bf16 %v3997_v2, %v3984_v7  ;;  %v7529_v56 = vld [vmem:[#allocation16 + $0x440] sm:$0xff]  ;;  %4363 = vmatpush.bf16.msra.mxu3 %v7521_v55 }
0x130f   :  { %v8507_v21 = vunpack.c.l.bf16 %v4000_v48  ;;  %v8509_v53 = vunpack.c.h.bf16 %v4000_v48  ;;  %v7537_v7 = vld [vmem:[#allocation16 + $0x480] sm:$0xff]  ;;  %4376 = vmatpush.bf16.msrb.mxu0 %v7529_v56 }
0x1310   :  { %v8511_v12 = vunpack.c.l.bf16 %v4001_v49  ;;  %v8513_v54 = vunpack.c.h.bf16 %v4001_v49  ;;  %v7545_v2 = vld [vmem:[#allocation16 + $0x4c0] sm:$0xff]  ;;  %4389 = vmatpush.bf16.msrb.mxu1 %v7537_v7 }
0x1311   :  { %v4006_v13 = vmul.f32 %v8507_v21, %v8507_v21  ;;  %v4007_v58 = vmul.f32 %v8509_v53, %v8509_v53  ;;  %4402 = vmatpush.bf16.msrb.mxu2 %v7545_v2  ;;  %v4052_v35 = vmul.f32 0.5, %v8507_v21  ;;  %v4053_v24 = vmul.f32 0.5, %v8509_v53 }
0x1312   :  { %v4008_v59 = vmul.f32 %v8511_v12, %v8511_v12  ;;  %v4009_v60 = vmul.f32 %v8513_v54, %v8513_v54  ;;  %v3959_v61 = vpop.f32.mrf.mxu3 }
0x1313   :  { %v4010_v10 = vpack.c.bf16 %v4007_v58, %v4006_v13  ;;  %v3998_v11 = vpop.f32.mrf.mxu2 }
0x1314   :  { %v4011_v17 = vpack.c.bf16 %v4009_v60, %v4008_v59 }
0x1315   :  { %v4012_v20 = vunpack.c.l.bf16 %v4010_v10  ;;  %v4013_v23 = vunpack.c.h.bf16 %v4010_v10 }
0x1316   :  { %v4014_v38 = vunpack.c.l.bf16 %v4011_v17  ;;  %v4015_v25 = vunpack.c.h.bf16 %v4011_v17 }
0x1317   :  { %v4016_v26 = vmul.f32 %v4012_v20, %v8507_v21  ;;  %v4017_v41 = vmul.f32 %v4013_v23, %v8509_v53 }
0x1318   :  { %v4018_v27 = vmul.f32 %v4014_v38, %v8511_v12  ;;  %v4019_v28 = vmul.f32 %v4015_v25, %v8513_v54 }
0x1319   :  { %v4020_v30 = vpack.c.bf16 %v4017_v41, %v4016_v26  ;;  %v4054_v41 = vmul.f32 0.5, %v8511_v12 }
0x131a   :  { %v4021_v34 = vpack.c.bf16 %v4019_v28, %v4018_v27  ;;  %v4055_v27 = vmul.f32 0.5, %v8513_v54 }
0x131b   :  { %v4022_v36 = vunpack.c.l.bf16 %v4020_v30  ;;  %v4023_v37 = vunpack.c.h.bf16 %v4020_v30  ;;  %v4056_v30 = vpack.c.bf16 %v4053_v24, %v4052_v35 }
0x131c   :  { %v4024_v39 = vunpack.c.l.bf16 %v4021_v34  ;;  %v4025_v40 = vunpack.c.h.bf16 %v4021_v34 }
0x131d   :  { %v4026_v6 = vmul.f32 0.044677734, %v4022_v36  ;;  %v4027_v42 = vmul.f32 0.044677734, %v4023_v37  ;;  %v4057_v37 = vpack.c.bf16 %v4055_v27, %v4054_v41  ;;  %v4079_v52 = vunpack.c.h.bf16 %v4056_v30 }
0x131e   :  { %v4028_v45 = vmul.f32 0.044677734, %v4024_v39  ;;  %v4029_v63 = vmul.f32 0.044677734, %v4025_v40 }
0x131f   :  { %v4030_v46 = vpack.c.bf16 %v4027_v42, %v4026_v6  ;;  %v4081_v14 = vunpack.c.h.bf16 %v4057_v37 }
0x1320   :  { %v4031_v0 = vpack.c.bf16 %v4029_v63, %v4028_v45 }
0x1321   :  { %v4032_v47 = vunpack.c.l.bf16 %v4030_v46  ;;  %v4033_v57 = vunpack.c.h.bf16 %v4030_v46 }
0x1322   :  { %v4034_v8 = vunpack.c.l.bf16 %v4031_v0  ;;  %v4035_v48 = vunpack.c.h.bf16 %v4031_v0 }
0x1323   :  { %v4036_v4 = vadd.f32 %v4032_v47, %v8507_v21  ;;  %v4037_v49 = vadd.f32 %v4033_v57, %v8509_v53  ;;  %v4078_v53 = vunpack.c.l.bf16 %v4056_v30 }
0x1324   :  { %v4038_v50 = vadd.f32 %v4034_v8, %v8511_v12  ;;  %v4039_v51 = vadd.f32 %v4035_v48, %v8513_v54  ;;  %v4080_v12 = vunpack.c.l.bf16 %v4057_v37  ;;  %v7683_v8 = vld [vmem:[#allocation17 + $0x4] ss:$0 sm:$0xff]  ;;  %v7686_v37 = vld [vmem:[%s8633_s8 + $0x5] ss:$0 sm:$0xff]  ;;  %s5347_s8 = sshll.u32 %s8644_s19, 4  ;;  %s5348_s8 = int_to_ptr.hbm [resolvable:$true] %s5347_s8 }
0x1325   :  { %v4040_v15 = vpack.c.bf16 %v4037_v49, %v4036_v4 }
0x1326   :  { %v4041_v22 = vpack.c.bf16 %v4039_v51, %v4038_v50 }
0x1327   :  { %v4042_v13 = vunpack.c.l.bf16 %v4040_v15  ;;  %v4043_v58 = vunpack.c.h.bf16 %v4040_v15 }
0x1328   :  { %v4044_v59 = vunpack.c.l.bf16 %v4041_v22  ;;  %v4045_v60 = vunpack.c.h.bf16 %v4041_v22 }
0x1329   :  { %v4046_v61 = vmul.f32 0.796875, %v4042_v13  ;;  %v4047_v1 = vmul.f32 0.796875, %v4043_v58 }
0x132a   :  { %v4048_v5 = vmul.f32 0.796875, %v4044_v59  ;;  %v4049_v9 = vmul.f32 0.796875, %v4045_v60 }
0x132b   :  { %v4050_v10 = vpack.c.bf16 %v4047_v1, %v4046_v61  ;;  %v7560_v61 = vld [vmem:[#allocation11 + $0x178] sm:$0xff] }
0x132c   :  { %v4051_v11 = vpack.c.bf16 %v4049_v9, %v4048_v5  ;;  %4512 = vmatpush.bf16.msrb.mxu3 %v7560_v61  ;;  %v7581_v61 = vld [vmem:[#allocation13 + $0x5a4] sm:$0xf] }
0x132d   :  { %v4058_v16 = vunpack.c.l.bf16 %v4050_v10  ;;  %v4059_v17 = vunpack.c.h.bf16 %v4050_v10 }
0x132e   :  { %v4060_v18 = vunpack.c.l.bf16 %v4051_v11  ;;  %v4061_v19 = vunpack.c.h.bf16 %v4051_v11  ;;  %v7559_v11 = vld [vmem:[#allocation11 + $0x170] sm:$0xff] }
0x132f   :  { %7747 = vtanh.f32 %v4058_v16  ;;  %v7558_v16 = vld [vmem:[#allocation11 + $0x168] sm:$0xff] }
0x1330   :  { %7749 = vtanh.f32 %v4059_v17  ;;  %4513 = vmatpush.bf16.msrb.mxu3 %v7559_v11  ;;  %v7557_v17 = vld [vmem:[#allocation11 + $0x160] sm:$0xff] }
0x1331   :  { %7751 = vtanh.f32 %v4060_v18  ;;  %v7556_v18 = vld [vmem:[#allocation11 + $0x158] sm:$0xff] }
0x1332   :  { %7753 = vtanh.f32 %v4061_v19  ;;  %v7555_v19 = vld [vmem:[#allocation11 + $0x150] sm:$0xff] }
0x1334   :  { %4514 = vmatpush.bf16.msrb.mxu3 %v7558_v16 }
0x1335   :  { %v7748_v20 = vpop.eup %7747 }
0x1336   :  { %v7750_v23 = vpop.eup %7749 }
0x1337   :  { %v7752_v38 = vpop.eup %7751  ;;  %v4066_v25 = vpack.c.bf16 %v7750_v23, %v7748_v20  ;;  %v7553_v20 = vld [vmem:[#allocation11 + $0x140] sm:$0xff] }
0x1338   :  { %v7754_v26 = vpop.eup %7753  ;;  %4515 = vmatpush.bf16.msrb.mxu3 %v7557_v17  ;;  %v7582_v17 = vld [vmem:[#allocation13 + $0x5ac] sm:$0xf] }
0x1339   :  { %v4068_v28 = vunpack.c.l.bf16 %v4066_v25  ;;  %v4069_v29 = vunpack.c.h.bf16 %v4066_v25  ;;  %v4067_v44 = vpack.c.bf16 %v7754_v26, %v7752_v38 }
0x133b   :  { %v4072_v31 = vadd.f32 1.0, %v4068_v28  ;;  %v4073_v33 = vadd.f32 1.0, %v4069_v29  ;;  %v4070_v34 = vunpack.c.l.bf16 %v4067_v44  ;;  %v4071_v36 = vunpack.c.h.bf16 %v4067_v44  ;;  %v7684_v29 = vld [vmem:[#allocation19 + $0x4] ss:$0 sm:$0xff] }
0x133c   :  { %4516 = vmatpush.bf16.msrb.mxu3 %v7556_v18  ;;  %v6986_v18 = vld [vmem:[#allocation13 + $0x5b8] sm:$0xf0] }
0x133d   :  { %v4076_v39 = vpack.c.bf16 %v4073_v33, %v4072_v31  ;;  %v4074_v21 = vadd.f32 1.0, %v4070_v34  ;;  %v4075_v40 = vadd.f32 1.0, %v4071_v36  ;;  %v7685_v31 = vld [vmem:[%s8641_s16 + $0x4] ss:$0 sm:$0xff] }
0x133f   :  { %v4082_v62 = vunpack.c.l.bf16 %v4076_v39  ;;  %v4083_v6 = vunpack.c.h.bf16 %v4076_v39  ;;  %v4077_v42 = vpack.c.bf16 %v4075_v40, %v4074_v21 }
0x1340   :  { %4517 = vmatpush.bf16.msrb.mxu3 %v7555_v19  ;;  %v6989_v19 = vor.u32 %v7582_v17, %v6986_v18 }
0x1341   :  { %v4086_v54 = vmul.f32 %v4082_v62, %v4078_v53  ;;  %v4087_v43 = vmul.f32 %v4083_v6, %v4079_v52  ;;  %v4084_v45 = vunpack.c.l.bf16 %v4077_v42  ;;  %v4085_v63 = vunpack.c.h.bf16 %v4077_v42  ;;  %v7008_v62 = vld [vmem:[#allocation13 + $0x5e0] sm:$0xf]  ;;  %v7591_v52 = vld [vmem:[#allocation13 + $0x5ec] sm:$0xf0]  ;;  %v7589_v6 = vld [vmem:[#allocation13 + $0x5e4] sm:$0xf] }
0x1342   :  { %v7009_v42 = vor.u32 %v7591_v52, %v7008_v62  ;;  %v6928_v52 = vld [vmem:[#allocation13 + $0x540] sm:$0xf] }
0x1343   :  { %v4090_v46 = vpack.c.bf16 %v4086_v54, %v4086_v54  ;;  %v4091_v0 = vpack.c.bf16 %v4087_v43, %v4087_v43  ;;  %v4088_v55 = vmul.f32 %v4084_v45, %v4080_v12  ;;  %v4089_v56 = vmul.f32 %v4085_v63, %v4081_v14  ;;  %v7010_v12 = vld [vmem:[#allocation13 + $0x5f0] sm:$0xf0]  ;;  %v7016_v14 = vld [vmem:[#allocation13 + $0x5e8] sm:$0xf]  ;;  %v7592_v54 = vld [vmem:[#allocation13 + $0x5f4] sm:$0xf0] }
0x1344   :  { %v7013_v43 = vor.u32 %v7589_v6, %v7010_v12  ;;  %v7017_v45 = vor.u32 %v7592_v54, %v7016_v14  ;;  %v7590_v63 = vld [vmem:[#allocation13 + $0x5ec] sm:$0xf]  ;;  %4763 = vmatpush.bf16.msra.mxu0 %v7009_v42  ;;  %v7571_v6 = vld [vmem:[#allocation13 + $0x54c] sm:$0xf0]  ;;  %v7569_v42 = vld [vmem:[#allocation13 + $0x544] sm:$0xf] }
0x1345   :  { %4364 = vmatmul.bf16.vlgmr.msra.gmra.mxu3 %v4090_v46  ;;  %4377 = vmatmul.bf16.vlgmr.msrb.gmra.mxu0 %v4091_v0  ;;  %v4092_v47 = vpack.c.bf16 %v4088_v55, %v4088_v55  ;;  %v4093_v57 = vpack.c.bf16 %v4089_v56, %v4089_v56  ;;  %v7018_v46 = vld [vmem:[#allocation13 + $0x5f8] sm:$0xf0]  ;;  %v6929_v12 = vor.u32 %v7571_v6, %v6928_v52  ;;  %v6930_v14 = vld [vmem:[#allocation13 + $0x550] sm:$0xf0]  ;;  %v6936_v54 = vld [vmem:[#allocation13 + $0x548] sm:$0xf] }
0x1346   :  { %v7021_v0 = vor.u32 %v7590_v63, %v7018_v46  ;;  %4776 = vmatpush.bf16.msra.mxu1 %v7013_v43  ;;  %4789 = vmatpush.bf16.msra.mxu2 %v7017_v45  ;;  %v7572_v43 = vld [vmem:[#allocation13 + $0x554] sm:$0xf0]  ;;  %v6933_v45 = vor.u32 %v7569_v42, %v6930_v14  ;;  %v7570_v46 = vld [vmem:[#allocation13 + $0x54c] sm:$0xf]  ;;  %v7616_v52 = vld [vmem:[#allocation16 + $0x5b8] sm:$0xff] }
0x1347   :  { %4390 = vmatmul.bf16.vlgmr.msrb.gmra.mxu1 %v4092_v47  ;;  %4403 = vmatmul.bf16.vlgmr.msrb.gmra.mxu2 %v4093_v57  ;;  %v6937_v63 = vor.u32 %v7572_v43, %v6936_v54  ;;  %v7624_v6 = vld [vmem:[#allocation16 + $0x5f8] sm:$0xff]  ;;  %v7606_v14 = vld [vmem:[#allocation16 + $0x568] sm:$0xff] }
0x13c2   :  { %v4378_v7 = vpop.f32.mrf.mxu0 }
0x13c4   :  { %v4391_v2 = vpop.f32.mrf.mxu1 }
0x13c8   :  { %v4365_v48 = vpop.f32.mrf.mxu3 }
0x13c9   :  { %v4366_v4 = vadd.f32 %v7683_v8, %v4365_v48  ;;  %v7585_v8 = vld [vmem:[#allocation13 + $0x5c4] sm:$0xf] }
0x13ca   :  { %v4404_v49 = vpop.f32.mrf.mxu2  ;;  %v4380_v50 = vpop.f32.mrf.mxu0 }
0x13cb   :  { %v4379_v51 = vadd.f32 %v4378_v7, %v4366_v4  ;;  %v6992_v7 = vld [vmem:[#allocation13 + $0x5c0] sm:$0xf]  ;;  %v6994_v4 = vld [vmem:[#allocation13 + $0x5d0] sm:$0xf0]  ;;  %v7588_v50 = vld [vmem:[#allocation13 + $0x5d4] sm:$0xf0] }
0x13cc   :  { %v4393_v15 = vpop.f32.mrf.mxu1 }
0x13cd   :  { %v4392_v22 = vadd.f32 %v4391_v2, %v4379_v51  ;;  %v7587_v2 = vld [vmem:[#allocation13 + $0x5cc] sm:$0xf0]  ;;  %v6997_v51 = vor.u32 %v7585_v8, %v6994_v4  ;;  %v6914_v8 = vld [vmem:[#allocation13 + $0x530] sm:$0xf0]  ;;  %v7568_v4 = vld [vmem:[#allocation13 + $0x534] sm:$0xf0] }
0x13ce   :  { %v6993_v48 = vor.u32 %v7587_v2, %v6992_v7  ;;  %v7565_v7 = vld [vmem:[#allocation13 + $0x524] sm:$0xf] }
0x13cf   :  { %v4405_v13 = vadd.f32 %v4404_v49, %v4392_v22  ;;  %v7000_v49 = vld [vmem:[#allocation13 + $0x5c8] sm:$0xf]  ;;  %v7586_v22 = vld [vmem:[#allocation13 + $0x5cc] sm:$0xf]  ;;  %4777 = vmatpush.bf16.msra.mxu1 %v6997_v51 }
0x13d0   :  { %v4367_v58 = vpop.f32.mrf.mxu3  ;;  %v7001_v15 = vor.u32 %v7588_v50, %v7000_v49  ;;  %4764 = vmatpush.bf16.msra.mxu0 %v6993_v48  ;;  %v6920_v48 = vld [vmem:[#allocation13 + $0x528] sm:$0xf]  ;;  %v6917_v49 = vor.u32 %v7565_v7, %v6914_v8  ;;  %v7566_v51 = vld [vmem:[#allocation13 + $0x52c] sm:$0xf]  ;;  %v7605_v8 = vld [vmem:[#allocation16 + $0x560] sm:$0xff] }
0x13d1   :  { %v4408_v59 = vadd.f32 %v4405_v13, %v8503_v32  ;;  %v7554_v32 = vld [vmem:[#allocation11 + $0x148] sm:$0xff]  ;;  %v7002_v13 = vld [vmem:[#allocation13 + $0x5d8] sm:$0xf0]  ;;  %v6921_v50 = vor.u32 %v7568_v4, %v6920_v48 }
0x13d2   :  { %v4406_v60 = vpop.f32.mrf.mxu2  ;;  %4518 = vmatpush.bf16.msrb.mxu3 %v7554_v32  ;;  %v7005_v58 = vor.u32 %v7586_v22, %v7002_v13  ;;  %4790 = vmatpush.bf16.msra.mxu2 %v7001_v15  ;;  %v6960_v32 = vld [vmem:[#allocation13 + $0x580] sm:$0xf]  ;;  %v6922_v15 = vld [vmem:[#allocation13 + $0x538] sm:$0xf0] }
0x13d3   :  { %4413 = vadd.xlane.f32.xlu0 %v4408_v59  ;;  %v7583_v60 = vld [vmem:[#allocation13 + $0x5ac] sm:$0xf0]  ;;  %v6925_v22 = vor.u32 %v7566_v51, %v6922_v15  ;;  %v6896_v13 = vld [vmem:[#allocation13 + $0x500] sm:$0xf] }
0x13d4   :  { %v7614_v15 = vld [vmem:[#allocation16 + $0x5a8] sm:$0xff] }
0x13d6   :  { %4519 = vmatpush.bf16.msrb.mxu3 %v7553_v20  ;;  %v7579_v20 = vld [vmem:[#allocation13 + $0x58c] sm:$0xf0] }
0x13da   :  { %4802 = vmatpush.bf16.msra.mxu3 %v7021_v0  ;;  %v6938_v0 = vld [vmem:[#allocation13 + $0x558] sm:$0xf0] }
0x13de   :  { %4803 = vmatpush.bf16.msra.mxu3 %v7005_v58  ;;  %v7563_v58 = vld [vmem:[#allocation13 + $0x50c] sm:$0xf0] }
0x13e2   :  { %4804 = vmatpush.bf16.msra.mxu3 %v6989_v19 }
0x1446   :  { %v4414_v1 = vpop.xlane.xlu0 %4413 }
0x1447   :  { %v4415_v5 = vmul.f32 %v4414_v1, %v8272_v3 }
0x1449   :  { %v4416_v9 = vsub.f32 %v4408_v59, %v4415_v5  ;;  %v6976_v59 = vld [vmem:[#allocation13 + $0x5a0] sm:$0xf]  ;;  %v6978_v5 = vld [vmem:[#allocation13 + $0x5b0] sm:$0xf0] }
0x144a   :  { %v6977_v1 = vor.u32 %v7583_v60, %v6976_v59  ;;  %v6981_v11 = vor.u32 %v7581_v61, %v6978_v5  ;;  %v7561_v59 = vld [vmem:[#allocation13 + $0x504] sm:$0xf]  ;;  %v6897_v60 = vor.u32 %v7563_v58, %v6896_v13  ;;  %v6898_v61 = vld [vmem:[#allocation13 + $0x510] sm:$0xf0]  ;;  %v7564_v5 = vld [vmem:[#allocation13 + $0x514] sm:$0xf0] }
0x144b   :  { %v4417_v10 = vmul.f32 %v4416_v9, %v4416_v9 }
0x144c   :  { %4765 = vmatpush.bf16.msra.mxu0 %v6977_v1  ;;  %4778 = vmatpush.bf16.msra.mxu1 %v6981_v11  ;;  %v6904_v1 = vld [vmem:[#allocation13 + $0x508] sm:$0xf]  ;;  %v7562_v11 = vld [vmem:[#allocation13 + $0x50c] sm:$0xf] }
0x144d   :  { %4418 = vadd.xlane.f32.xlu1 %v4417_v10  ;;  %v7584_v10 = vld [vmem:[#allocation13 + $0x5b4] sm:$0xf0] }
0x14c0   :  { %v4419_v23 = vpop.xlane.xlu1 %4418 }
0x14c1   :  { %v4420_v35 = vmul.f32 %v4419_v23, %v8272_v3  ;;  %v7577_v23 = vld [vmem:[#allocation13 + $0x584] sm:$0xf] }
0x14c3   :  { %v4421_v24 = vadd.f32 1e-05, %v4420_v35  ;;  %v6961_v35 = vor.u32 %v7579_v20, %v6960_v32 }
0x14c5   :  { %7755 = vrsqrt.f32 %v4421_v24  ;;  %vm4428_vm14 = vweird.f32 %v4421_v24  ;;  %4766 = vmatpush.bf16.msra.mxu0 %v6961_v35 }
0x14cb   :  { %v7756_v38 = vpop.eup %7755 }
0x14cc   :  { %v4423_v25 = vmul.f32 %v7756_v38, %v4421_v24  ;;  %vm4429_vm13 = vweird.f32 %v7756_v38  ;;  %v6962_v24 = vld [vmem:[#allocation13 + $0x590] sm:$0xf0] }
0x14cd   :  { %vm4430_vm15 = vmor %vm4428_vm14, %vm4429_vm13 }
0x14ce   :  { %v4424_v26 = vmul.f32 %v7756_v38, %v4423_v25  ;;  %v7580_v25 = vld [vmem:[#allocation13 + $0x594] sm:$0xf0] }
0x14d0   :  { %v4425_v41 = vmul.f32 0.5, %v4424_v26  ;;  %v6965_v26 = vor.u32 %v7577_v23, %v6962_v24 }
0x14d2   :  { %v4426_v27 = vsub.f32 1.5, %v4425_v41  ;;  %4779 = vmatpush.bf16.msra.mxu1 %v6965_v26  ;;  %v7687_v26 = vld [vmem:[%s8634_s9 + $0x5] ss:$0 sm:$0xff] }
0x14d4   :  { %v4427_v28 = vmul.f32 %v7756_v38, %v4426_v27  ;;  %v7578_v27 = vld [vmem:[#allocation13 + $0x58c] sm:$0xf] }
0x14d6   :  { %v4431_v44 = vsel %vm4430_vm15, %v7756_v38, %v4427_v28  ;;  %v6968_v38 = vld [vmem:[#allocation13 + $0x588] sm:$0xf]  ;;  %v6970_v28 = vld [vmem:[#allocation13 + $0x598] sm:$0xf0] }
0x14d7   :  { %v4432_v30 = vmul.f32 %v4431_v44, %v4416_v9  ;;  %v6984_v9 = vld [vmem:[#allocation13 + $0x5a8] sm:$0xf]  ;;  %v6969_v41 = vor.u32 %v7580_v25, %v6968_v38  ;;  %v6944_v44 = vld [vmem:[#allocation13 + $0x560] sm:$0xf] }
0x14d8   :  { %v6985_v16 = vor.u32 %v7584_v10, %v6984_v9  ;;  %v6901_v9 = vor.u32 %v7561_v59, %v6898_v61  ;;  %v6905_v10 = vor.u32 %v7564_v5, %v6904_v1  ;;  %v7604_v61 = vld [vmem:[#allocation16 + $0x558] sm:$0xff] }
0x14d9   :  { %v4436_v33 = vmul.f32 %v7684_v29, %v4432_v30  ;;  %v6973_v29 = vor.u32 %v7578_v27, %v6970_v28  ;;  %v7575_v30 = vld [vmem:[#allocation13 + $0x56c] sm:$0xf0]  ;;  %v7688_v27 = vld [vmem:[%s8635_s10 + $0x5] ss:$0 sm:$0xff] }
0x14da   :  { %4791 = vmatpush.bf16.msra.mxu2 %v6985_v16  ;;  %v6906_v16 = vld [vmem:[#allocation13 + $0x518] sm:$0xf0] }
0x14db   :  { %v4440_v34 = vadd.f32 %v7685_v31, %v4436_v33  ;;  %v7573_v31 = vld [vmem:[#allocation13 + $0x564] sm:$0xf]  ;;  %4805 = vmatpush.bf16.msra.mxu3 %v6973_v29  ;;  %v6945_v33 = vor.u32 %v7575_v30, %v6944_v44  ;;  %v6909_v17 = vor.u32 %v7562_v11, %v6906_v16  ;;  %v7613_v11 = vld [vmem:[#allocation16 + $0x5a0] sm:$0xff] }
0x14dc   :  { %v7621_v16 = vld [vmem:[#allocation16 + $0x5e0] sm:$0xff] }
0x14dd   :  { %v4441_v36 = vpack.c.bf16 %v4440_v34, %v4440_v34  ;;  %4767 = vmatpush.bf16.msra.mxu0 %v6945_v33  ;;  %v7600_v33 = vld [vmem:[#allocation16 + $0x538] sm:$0xff] }
0x14de   :  { %4792 = vmatpush.bf16.msra.mxu2 %v6969_v41 }
0x14df   :  { %4520 = vmatmul.bf16.vlgmr.msrb.gmra.mxu3 %v4441_v36  ;;  %v6952_v36 = vld [vmem:[#allocation13 + $0x568] sm:$0xf] }
0x14e1   :  { %4768 = vmatpush.bf16.msra.mxu0 %v6929_v12  ;;  %v7598_v12 = vld [vmem:[#allocation16 + $0x528] sm:$0xff] }
0x1562   :  { %v4521_v39 = vpop.f32.mrf.mxu3 }
0x1563   :  { %v4522_v21 = vadd.f32 %v7686_v37, %v4521_v39  ;;  %v7576_v37 = vld [vmem:[#allocation13 + $0x574] sm:$0xf0] }
0x1565   :  { %v4525_v40 = vadd.f32 %v4522_v21, %v4440_v34  ;;  %v6946_v34 = vld [vmem:[#allocation13 + $0x570] sm:$0xf0]  ;;  %v6953_v21 = vor.u32 %v7576_v37, %v6952_v36 }
0x1566   :  { %v6949_v39 = vor.u32 %v7573_v31, %v6946_v34  ;;  %v4593_v31 = vld [vmem:[#allocation14 + $0x14] sm:$0xf] }
0x1567   :  { %4530 = vadd.xlane.f32.xlu2 %v4525_v40  ;;  %4793 = vmatpush.bf16.msra.mxu2 %v6953_v21  ;;  %v7608_v34 = vld [vmem:[#allocation16 + $0x578] sm:$0xff]  ;;  %v4595_v36 = vperm.slane %v4593_v31, 0  ;;  %v4596_v37 = vperm.slane %v4593_v31, 1  ;;  %v7607_v21 = vld [vmem:[#allocation16 + $0x570] sm:$0xff]  ;;  %v4597_v54 = vperm.slane %v4593_v31, 2  ;;  %v4598_v43 = vperm.slane %v4593_v31, 3 }
0x1568   :  { %4780 = vmatpush.bf16.msra.mxu1 %v6949_v39  ;;  %v7599_v39 = vld [vmem:[#allocation16 + $0x530] sm:$0xff] }
0x156a   :  { %v4523_v53 = vpop.f32.mrf.mxu3 }
0x156b   :  { %v6954_v53 = vld [vmem:[#allocation13 + $0x578] sm:$0xf0]  ;;  %4794 = vmatpush.bf16.msra.mxu2 %v6937_v63 }
0x156c   :  { %4781 = vmatpush.bf16.msra.mxu1 %v6933_v45 }
0x156f   :  { %4795 = vmatpush.bf16.msra.mxu2 %v6921_v50 }
0x1570   :  { %4782 = vmatpush.bf16.msra.mxu1 %v6917_v49 }
0x1573   :  { %4796 = vmatpush.bf16.msra.mxu2 %v6905_v10 }
0x1574   :  { %4783 = vmatpush.bf16.msra.mxu1 %v6901_v9 }
0x1577   :  { %5197 = vmatpush.bf16.msrb.mxu2 %v7616_v52 }
0x1578   :  { %5184 = vmatpush.bf16.msrb.mxu1 %v7608_v34  ;;  %v7611_v34 = vld [vmem:[#allocation16 + $0x590] sm:$0xff] }
0x157c   :  { %5185 = vmatpush.bf16.msrb.mxu1 %v7607_v21 }
0x1580   :  { %5186 = vmatpush.bf16.msrb.mxu1 %v7606_v14 }
0x1584   :  { %5187 = vmatpush.bf16.msrb.mxu1 %v7605_v8 }
0x1588   :  { %5188 = vmatpush.bf16.msrb.mxu1 %v7604_v61 }
0x15da   :  { %v4531_v55 = vpop.xlane.xlu2 %4530 }
0x15db   :  { %v4532_v56 = vmul.f32 %v4531_v55, %v8272_v3  ;;  %v6941_v55 = vor.u32 %v7570_v46, %v6938_v0  ;;  %v7615_v46 = vld [vmem:[#allocation16 + $0x5b0] sm:$0xff] }
0x15dc   :  { %v7623_v0 = vld [vmem:[#allocation16 + $0x5f0] sm:$0xff]  ;;  %5198 = vmatpush.bf16.msrb.mxu2 %v7615_v46 }
0x15dd   :  { %v8545_v47 = vsub.f32 %v4525_v40, %v4532_v56  ;;  %v7574_v40 = vld [vmem:[#allocation13 + $0x56c] sm:$0xf]  ;;  %v6912_v56 = vld [vmem:[#allocation13 + $0x520] sm:$0xf] }
0x15de   :  { %v6957_v62 = vor.u32 %v7574_v40, %v6954_v53 }
0x15df   :  { %v4534_v57 = vmul.f32 %v8545_v47, %v8545_v47 }
0x15e0   :  { %4806 = vmatpush.bf16.msra.mxu3 %v6957_v62  ;;  %5199 = vmatpush.bf16.msrb.mxu2 %v7614_v15 }
0x15e1   :  { %4535 = vadd.xlane.f32.xlu0 %v4534_v57  ;;  %v7567_v57 = vld [vmem:[#allocation13 + $0x52c] sm:$0xf0] }
0x15e2   :  { %v6913_v2 = vor.u32 %v7567_v57, %v6912_v56 }
0x15e4   :  { %4807 = vmatpush.bf16.msra.mxu3 %v6941_v55  ;;  %4769 = vmatpush.bf16.msra.mxu0 %v6913_v2  ;;  %v7597_v2 = vld [vmem:[#allocation16 + $0x520] sm:$0xff] }
0x15e5   :  { %5200 = vmatpush.bf16.msrb.mxu2 %v7613_v11 }
0x15e8   :  { %4808 = vmatpush.bf16.msra.mxu3 %v6925_v22  ;;  %4770 = vmatpush.bf16.msra.mxu0 %v6897_v60  ;;  %v7622_v22 = vld [vmem:[#allocation16 + $0x5e8] sm:$0xff]  ;;  %v7596_v60 = vld [vmem:[#allocation16 + $0x518] sm:$0xff] }
0x15ec   :  { %4809 = vmatpush.bf16.msra.mxu3 %v6909_v17  ;;  %5171 = vmatpush.bf16.msrb.mxu0 %v7600_v33  ;;  %v7595_v17 = vld [vmem:[#allocation16 + $0x510] sm:$0xff] }
0x15f0   :  { %5172 = vmatpush.bf16.msrb.mxu0 %v7599_v39  ;;  %5210 = vmatpush.bf16.msrb.mxu3 %v7624_v6  ;;  %v7610_v6 = vld [vmem:[#allocation16 + $0x588] sm:$0xff] }
0x15f4   :  { %5173 = vmatpush.bf16.msrb.mxu0 %v7598_v12  ;;  %5211 = vmatpush.bf16.msrb.mxu3 %v7623_v0 }
0x15f8   :  { %5174 = vmatpush.bf16.msrb.mxu0 %v7597_v2  ;;  %5212 = vmatpush.bf16.msrb.mxu3 %v7622_v22 }
0x15fc   :  { %5175 = vmatpush.bf16.msrb.mxu0 %v7596_v60  ;;  %5213 = vmatpush.bf16.msrb.mxu3 %v7621_v16 }
0x1600   :  { %5176 = vmatpush.bf16.msrb.mxu0 %v7595_v17 }
0x1654   :  { %v4536_v18 = vpop.xlane.xlu0 %4535 }
0x1655   :  { %v4537_v19 = vmul.f32 %v4536_v18, %v8272_v3 }
0x1657   :  { %v4538_v32 = vadd.f32 1e-05, %v4537_v19 }
0x1659   :  { %7757 = vrsqrt.f32 %v4538_v32  ;;  %vm4545_vm1 = vweird.f32 %v4538_v32 }
0x165f   :  { %v7758_v20 = vpop.eup %7757 }
0x1660   :  { %v4540_v23 = vmul.f32 %v7758_v20, %v4538_v32  ;;  %vm4546_vm0 = vweird.f32 %v7758_v20  ;;  %v7603_v32 = vld [vmem:[#allocation16 + $0x550] sm:$0xff] }
0x1661   :  { %vm4547_vm2 = vmor %vm4545_vm1, %vm4546_vm0  ;;  %5189 = vmatpush.bf16.msrb.mxu1 %v7603_v32 }
0x1662   :  { %v4541_v35 = vmul.f32 %v7758_v20, %v4540_v23 }
0x1664   :  { %v4542_v24 = vmul.f32 0.5, %v4541_v35 }
0x1666   :  { %v4543_v38 = vsub.f32 1.5, %v4542_v24  ;;  %v7612_v24 = vld [vmem:[#allocation16 + $0x598] sm:$0xff] }
0x1667   :  { %5201 = vmatpush.bf16.msrb.mxu2 %v7612_v24 }
0x1668   :  { %v4544_v25 = vmul.f32 %v7758_v20, %v4543_v38  ;;  %v7620_v38 = vld [vmem:[#allocation16 + $0x5d8] sm:$0xff] }
0x1669   :  { %5214 = vmatpush.bf16.msrb.mxu3 %v7620_v38 }
0x166a   :  { %v4548_v41 = vsel %vm4547_vm2, %v7758_v20, %v4544_v25 }
0x166b   :  { %v4549_v28 = vmul.f32 %v4548_v41, %v8545_v47  ;;  %5202 = vmatpush.bf16.msrb.mxu2 %v7611_v34 }
0x166d   :  { %v4553_v29 = vmul.f32 %v7687_v26, %v4549_v28  ;;  %v7602_v28 = vld [vmem:[#allocation16 + $0x548] sm:$0xff] }
0x166e   :  { %5190 = vmatpush.bf16.msrb.mxu1 %v7602_v28 }
0x166f   :  { %v8557_v44 = vadd.f32 %v7688_v27, %v4553_v29  ;;  %v7594_v27 = vld [vmem:[#allocation16 + $0x508] sm:$0xff]  ;;  %5203 = vmatpush.bf16.msrb.mxu2 %v7610_v6 }
0x1670   :  { %5177 = vmatpush.bf16.msrb.mxu0 %v7594_v27 }
0x1671   :  { %v4558_v30 = vpack.c.bf16 %v8557_v44, %v8557_v44 }
0x1673   :  { %4771 = vmatmul.bf16.vlgmr.msra.gmra.mxu0 %v4558_v30  ;;  %4784 = vmatmul.bf16.vlgmr.msra.gmra.mxu1 %v4558_v30 }
0x1674   :  { %4797 = vmatmul.bf16.vlgmr.msra.gmra.mxu2 %v4558_v30  ;;  %4810 = vmatmul.bf16.vlgmr.msra.gmra.mxu3 %v4558_v30 }
0x16f0   :  { %v4772_v47 = vpop.f32.mrf.mxu0  ;;  %v4785_v40 = vpop.f32.mrf.mxu1 }
0x16f1   :  { %v4773_v53 = vadd.f32 %v4772_v47, %v4595_v36  ;;  %v4786_v62 = vadd.f32 %v4785_v40, %v4596_v37  ;;  %v7619_v36 = vld [vmem:[#allocation16 + $0x5d0] sm:$0xff]  ;;  %v7593_v47 = vld [vmem:[#allocation16 + $0x500] sm:$0xff] }
0x16f2   :  { %v7601_v40 = vld [vmem:[#allocation16 + $0x540] sm:$0xff]  ;;  %5215 = vmatpush.bf16.msrb.mxu3 %v7619_v36  ;;  %5178 = vmatpush.bf16.msrb.mxu0 %v7593_v47 }
0x16f3   :  { %v4815_v42 = vpack.c.bf16 %v4786_v62, %v4773_v53  ;;  %5191 = vmatpush.bf16.msrb.mxu1 %v7601_v40 }
0x16f5   :  { %v8561_v45 = vunpack.c.l.bf16 %v4815_v42  ;;  %v8563_v63 = vunpack.c.h.bf16 %v4815_v42  ;;  %v7618_v42 = vld [vmem:[#allocation16 + $0x5c8] sm:$0xff] }
0x16f6   :  { %5216 = vmatpush.bf16.msrb.mxu3 %v7618_v42 }
0x16f7   :  { %v4821_v55 = vmul.f32 %v8561_v45, %v8561_v45  ;;  %v4822_v56 = vmul.f32 %v8563_v63, %v8563_v63  ;;  %v4798_v57 = vpop.f32.mrf.mxu2  ;;  %v4811_v7 = vpop.f32.mrf.mxu3  ;;  %v4867_v32 = vmul.f32 0.5, %v8561_v45 }
0x16f8   :  { %v4799_v48 = vadd.f32 %v4798_v57, %v4597_v54  ;;  %v4812_v4 = vadd.f32 %v4811_v7, %v4598_v43  ;;  %v4774_v49 = vpop.f32.mrf.mxu0  ;;  %v4787_v50 = vpop.f32.mrf.mxu1  ;;  %v7617_v57 = vld [vmem:[#allocation16 + $0x5c0] sm:$0xff] }
0x16f9   :  { %v4825_v51 = vpack.c.bf16 %v4822_v56, %v4821_v55  ;;  %v7609_v56 = vld [vmem:[#allocation16 + $0x580] sm:$0xff] }
0x16fa   :  { %v4816_v13 = vpack.c.bf16 %v4812_v4, %v4799_v48  ;;  %5204 = vmatpush.bf16.msrb.mxu2 %v7609_v56  ;;  %5217 = vmatpush.bf16.msrb.mxu3 %v7617_v57  ;;  %v7689_v56 = vld [vmem:[#allocation17 + $0x5] ss:$0 sm:$0xff] }
0x16fb   :  { %v4827_v58 = vunpack.c.l.bf16 %v4825_v51  ;;  %v4828_v59 = vunpack.c.h.bf16 %v4825_v51 }
0x16fc   :  { %v8569_v1 = vunpack.c.l.bf16 %v4816_v13  ;;  %v8571_v5 = vunpack.c.h.bf16 %v4816_v13 }
0x16fd   :  { %v4831_v9 = vmul.f32 %v4827_v58, %v8561_v45  ;;  %v4832_v10 = vmul.f32 %v4828_v59, %v8563_v63 }
0x16fe   :  { %v4823_v18 = vmul.f32 %v8569_v1, %v8569_v1  ;;  %v4824_v19 = vmul.f32 %v8571_v5, %v8571_v5 }
0x16ff   :  { %v4835_v20 = vpack.c.bf16 %v4832_v10, %v4831_v9  ;;  %v4800_v23 = vpop.f32.mrf.mxu2  ;;  %v4813_v35 = vpop.f32.mrf.mxu3 }
0x1700   :  { %v4826_v25 = vpack.c.bf16 %v4824_v19, %v4823_v18 }
0x1701   :  { %v4837_v26 = vunpack.c.l.bf16 %v4835_v20  ;;  %v4838_v41 = vunpack.c.h.bf16 %v4835_v20  ;;  %v4868_v20 = vmul.f32 0.5, %v8563_v63 }
0x1702   :  { %v4829_v29 = vunpack.c.l.bf16 %v4826_v25  ;;  %v4830_v30 = vunpack.c.h.bf16 %v4826_v25 }
0x1703   :  { %v4841_v31 = vmul.f32 0.044677734, %v4837_v26  ;;  %v4842_v33 = vmul.f32 0.044677734, %v4838_v41  ;;  %v4871_v38 = vpack.c.bf16 %v4868_v20, %v4867_v32 }
0x1704   :  { %v4833_v37 = vmul.f32 %v4829_v29, %v8569_v1  ;;  %v4834_v39 = vmul.f32 %v4830_v30, %v8571_v5  ;;  %v4869_v29 = vmul.f32 0.5, %v8569_v1  ;;  %v4870_v30 = vmul.f32 0.5, %v8571_v5 }
0x1705   :  { %v4845_v21 = vpack.c.bf16 %v4842_v33, %v4841_v31  ;;  %v4893_v33 = vunpack.c.l.bf16 %v4871_v38 }
0x1706   :  { %v4836_v53 = vpack.c.bf16 %v4834_v39, %v4833_v37  ;;  %v4872_v47 = vpack.c.bf16 %v4870_v30, %v4869_v29  ;;  %v7691_v29 = vld [vmem:[%s8641_s16 + $0x5] ss:$0 sm:$0xff] }
0x1707   :  { %v4847_v62 = vunpack.c.l.bf16 %v4845_v21  ;;  %v4848_v52 = vunpack.c.h.bf16 %v4845_v21 }
0x1708   :  { %v4839_v12 = vunpack.c.l.bf16 %v4836_v53  ;;  %v4840_v14 = vunpack.c.h.bf16 %v4836_v53 }
0x1709   :  { %v4851_v54 = vadd.f32 %v4847_v62, %v8561_v45  ;;  %v4852_v43 = vadd.f32 %v4848_v52, %v8563_v63  ;;  %v4894_v45 = vunpack.c.h.bf16 %v4871_v38 }
0x170a   :  { %v4843_v46 = vmul.f32 0.044677734, %v4839_v12  ;;  %v4844_v0 = vmul.f32 0.044677734, %v4840_v14 }
0x170b   :  { %v4855_v55 = vpack.c.bf16 %v4852_v43, %v4851_v54 }
0x170c   :  { %v4846_v7 = vpack.c.bf16 %v4844_v0, %v4843_v46 }
0x170d   :  { %v4857_v2 = vunpack.c.l.bf16 %v4855_v55  ;;  %v4858_v8 = vunpack.c.h.bf16 %v4855_v55 }
0x170e   :  { %v4849_v48 = vunpack.c.l.bf16 %v4846_v7  ;;  %v4850_v4 = vunpack.c.h.bf16 %v4846_v7 }
0x170f   :  { %v4861_v49 = vmul.f32 0.796875, %v4857_v2  ;;  %v4862_v50 = vmul.f32 0.796875, %v4858_v8 }
0x1710   :  { %v4853_v51 = vadd.f32 %v4849_v48, %v8569_v1  ;;  %v4854_v15 = vadd.f32 %v4850_v4, %v8571_v5  ;;  %v4895_v1 = vunpack.c.l.bf16 %v4872_v47  ;;  %v4896_v5 = vunpack.c.h.bf16 %v4872_v47 }
0x1711   :  { %v4865_v22 = vpack.c.bf16 %v4862_v50, %v4861_v49 }
0x1712   :  { %v4856_v13 = vpack.c.bf16 %v4854_v15, %v4853_v51 }
0x1713   :  { %v4873_v58 = vunpack.c.l.bf16 %v4865_v22  ;;  %v4874_v59 = vunpack.c.h.bf16 %v4865_v22 }
0x1714   :  { %v4859_v60 = vunpack.c.l.bf16 %v4856_v13  ;;  %v4860_v61 = vunpack.c.h.bf16 %v4856_v13  ;;  %v7632_v13 = vld [vmem:[%s8642_s17 + $0x38] sm:$0xff] }
0x1715   :  { %7759 = vtanh.f32 %v4873_v58  ;;  %5325 = vmatpush.bf16.msra.mxu0 %v7632_v13 }
0x1716   :  { %7761 = vtanh.f32 %v4874_v59  ;;  %v4863_v9 = vmul.f32 0.796875, %v4859_v60  ;;  %v4864_v10 = vmul.f32 0.796875, %v4860_v61 }
0x1718   :  { %v4866_v11 = vpack.c.bf16 %v4864_v10, %v4863_v9  ;;  %v7631_v9 = vld [vmem:[%s8642_s17 + $0x30] sm:$0xff]  ;;  %v7629_v10 = vld [vmem:[%s8642_s17 + $0x20] sm:$0xff] }
0x1719   :  { %5326 = vmatpush.bf16.msra.mxu0 %v7631_v9 }
0x171a   :  { %v4875_v16 = vunpack.c.l.bf16 %v4866_v11  ;;  %v4876_v17 = vunpack.c.h.bf16 %v4866_v11  ;;  %v7628_v11 = vld [vmem:[%s8642_s17 + $0x18] sm:$0xff] }
0x171b   :  { %v7760_v18 = vpop.eup %7759 }
0x171c   :  { %v7762_v19 = vpop.eup %7761  ;;  %7763 = vtanh.f32 %v4875_v16  ;;  %v7627_v16 = vld [vmem:[%s8642_s17 + $0x10] sm:$0xff] }
0x171d   :  { %7765 = vtanh.f32 %v4876_v17  ;;  %v4881_v23 = vpack.c.bf16 %v7762_v19, %v7760_v18  ;;  %v7626_v17 = vld [vmem:[%s8642_s17 + $0x8] sm:$0xff]  ;;  %v7625_v18 = vld [vmem:[%s8642_s17] sm:$0xff] }
0x171f   :  { %v4883_v35 = vunpack.c.l.bf16 %v4881_v23  ;;  %v4884_v24 = vunpack.c.h.bf16 %v4881_v23 }
0x1721   :  { %v4887_v25 = vadd.f32 1.0, %v4883_v35  ;;  %v4888_v26 = vadd.f32 1.0, %v4884_v24 }
0x1722   :  { %v7764_v41 = vpop.eup %7763 }
0x1723   :  { %v7766_v27 = vpop.eup %7765  ;;  %v4891_v28 = vpack.c.bf16 %v4888_v26, %v4887_v25 }
0x1724   :  { %v4882_v31 = vpack.c.bf16 %v7766_v27, %v7764_v41  ;;  %v7690_v41 = vld [vmem:[#allocation19 + $0x5] ss:$0 sm:$0xff] }
0x1725   :  { %v4897_v34 = vunpack.c.l.bf16 %v4891_v28  ;;  %v4898_v36 = vunpack.c.h.bf16 %v4891_v28 }
0x1726   :  { %v4885_v63 = vunpack.c.l.bf16 %v4882_v31  ;;  %v4886_v37 = vunpack.c.h.bf16 %v4882_v31 }
0x1727   :  { %v4901_v39 = vmul.f32 %v4897_v34, %v4893_v33  ;;  %v4902_v21 = vmul.f32 %v4898_v36, %v4894_v45  ;;  %v7692_v33 = vld [vmem:[%s8643_s18] ss:$0 sm:$0xff] }
0x1728   :  { %v4889_v40 = vadd.f32 1.0, %v4885_v63  ;;  %v4890_v53 = vadd.f32 1.0, %v4886_v37 }
0x1729   :  { %v4905_v62 = vpack.c.bf16 %v4901_v39, %v4901_v39  ;;  %v4906_v52 = vpack.c.bf16 %v4902_v21, %v4902_v21 }
0x172a   :  { %v4892_v6 = vpack.c.bf16 %v4890_v53, %v4889_v40 }
0x172b   :  { %5179 = vmatmul.bf16.vlgmr.msrb.gmra.mxu0 %v4905_v62  ;;  %5192 = vmatmul.bf16.vlgmr.msrb.gmra.mxu1 %v4906_v52 }
0x172c   :  { %v4899_v42 = vunpack.c.l.bf16 %v4892_v6  ;;  %v4900_v12 = vunpack.c.h.bf16 %v4892_v6 }
0x172e   :  { %v4903_v14 = vmul.f32 %v4899_v42, %v4895_v1  ;;  %v4904_v54 = vmul.f32 %v4900_v12, %v4896_v5 }
0x1730   :  { %v4907_v43 = vpack.c.bf16 %v4903_v14, %v4903_v14  ;;  %v4908_v46 = vpack.c.bf16 %v4904_v54, %v4904_v54 }
0x1732   :  { %5205 = vmatmul.bf16.vlgmr.msrb.gmra.mxu2 %v4907_v43  ;;  %5218 = vmatmul.bf16.vlgmr.msrb.gmra.mxu3 %v4908_v46 }
0x17a8   :  { %v5180_v0 = vpop.f32.mrf.mxu0  ;;  %v5193_v55 = vpop.f32.mrf.mxu1 }
0x17a9   :  { %v5181_v57 = vadd.f32 %v7689_v56, %v5180_v0 }
0x17ab   :  { %v5194_v8 = vadd.f32 %v5193_v55, %v5181_v57 }
0x17b0   :  { %v5182_v7 = vpop.f32.mrf.mxu0  ;;  %v5195_v2 = vpop.f32.mrf.mxu1 }
0x17b5   :  { %v5206_v48 = vpop.f32.mrf.mxu2  ;;  %v5219_v4 = vpop.f32.mrf.mxu3 }
0x17b6   :  { %v5207_v49 = vadd.f32 %v5206_v48, %v5194_v8 }
0x17b8   :  { %v5220_v50 = vadd.f32 %v5219_v4, %v5207_v49 }
0x17ba   :  { %v5223_v51 = vadd.f32 %v5220_v50, %v8557_v44  ;;  %v7630_v44 = vld [vmem:[%s8642_s17 + $0x28] sm:$0xff] }
0x17bb   :  { %5327 = vmatpush.bf16.msra.mxu0 %v7630_v44 }
0x17bc   :  { %5228 = vadd.xlane.f32.xlu1 %v5223_v51 }
0x17bd   :  { %v5208_v15 = vpop.f32.mrf.mxu2  ;;  %v5221_v22 = vpop.f32.mrf.mxu3 }
0x17bf   :  { %5328 = vmatpush.bf16.msra.mxu0 %v7629_v10 }
0x17c3   :  { %5329 = vmatpush.bf16.msra.mxu0 %v7628_v11 }
0x17c7   :  { %5330 = vmatpush.bf16.msra.mxu0 %v7627_v16 }
0x17cb   :  { %5331 = vmatpush.bf16.msra.mxu0 %v7626_v17 }
0x17cf   :  { %5332 = vmatpush.bf16.msra.mxu0 %v7625_v18 }
0x182f   :  { %v5229_v58 = vpop.xlane.xlu1 %5228 }
0x1830   :  { %v5230_v59 = vmul.f32 %v5229_v58, %v8272_v3 }
0x1832   :  { %v5231_v60 = vsub.f32 %v5223_v51, %v5230_v59 }
0x1834   :  { %v5232_v61 = vmul.f32 %v5231_v60, %v5231_v60 }
0x1836   :  { %5233 = vadd.xlane.f32.xlu2 %v5232_v61 }
0x18a9   :  { %v5234_v19 = vpop.xlane.xlu2 %5233 }
0x18aa   :  { %v5235_v32 = vmul.f32 %v5234_v19, %v8272_v3 }
0x18ac   :  { %v5236_v20 = vadd.f32 1e-05, %v5235_v32 }
0x18ae   :  { %7767 = vrsqrt.f32 %v5236_v20  ;;  %vm5243_vm4 = vweird.f32 %v5236_v20 }
0x18b4   :  { %v7768_v23 = vpop.eup %7767 }
0x18b5   :  { %v5238_v35 = vmul.f32 %v7768_v23, %v5236_v20  ;;  %vm5244_vm3 = vweird.f32 %v7768_v23 }
0x18b6   :  { %vm5245_vm5 = vmor %vm5243_vm4, %vm5244_vm3 }
0x18b7   :  { %v5239_v24 = vmul.f32 %v7768_v23, %v5238_v35 }
0x18b9   :  { %v5240_v38 = vmul.f32 0.5, %v5239_v24 }
0x18bb   :  { %v5241_v25 = vsub.f32 1.5, %v5240_v38 }
0x18bd   :  { %v5242_v26 = vmul.f32 %v7768_v23, %v5241_v25 }
0x18bf   :  { %v5246_v27 = vsel %vm5245_vm5, %v7768_v23, %v5242_v26 }
0x18c0   :  { %v5247_v28 = vmul.f32 %v5246_v27, %v5231_v60 }
0x18c2   :  { %v5251_v30 = vmul.f32 %v7690_v41, %v5247_v28 }
0x18c4   :  { %v5255_v3 = vadd.f32 %v7691_v29, %v5251_v30 }
0x18c6   :  { %v5256_v31 = vpack.c.bf16 %v5255_v3, %v5255_v3 }
0x18c8   :  { %5333 = vmatmul.bf16.vlgmr.msra.gmra.mxu0 %v5256_v31 }
0x1945   :  { %v5334_v34 = vpop.f32.mrf.mxu0 }
0x1946   :  { %v5335_v45 = vadd.f32 %v7692_v33, %v5334_v34 }
0x1948   :  { %5339 = vst.msk [vmem:[#allocation20] sm:$0xff] %vm5338_vm6, %v5335_v45 }
0x1949   :  { %5350 = dma.vmem_to_hbm [thread:$0]  %s5346_s30, 128, %s5348_s8, [#allocation4]  }
0x194d   :  { %v5336_v36 = vpop.f32.mrf.mxu0 }
0x194e   :  { %8069 = dma.done.wait [#allocation4], 128  }
0x194f   :  { %8070 = vsyncadd [#allocation4], 4294967168 }
0x1950   :  { %5355 = vsyncpa [#allocation3], 1 }
0x1951   :  { %5356 = vsyncpa [#allocation6], 1 }
0x1952   :  { %5357 = vsyncpa [#allocation9], 1 }
0x1953   :  { %5358 = vsyncpa [#allocation12], 1 }
0x1954   :  { %5359 = vsyncpa [#allocation15], 1 }
0x1955   :  { %5360 = vsyncpa [#allocation18], 1 }
0x1956   :  { %5361 = vsyncpa [#allocation4], 1 }

</bundles_post_ra>
